<compile_context>
chip_gen: v6e
topology: v6e:2x2x1
jax: 0.10.0
libtpu: 0.0.40
codegen_flags: <defaults>
</compile_context>

<pallas_src>
import functools

import jax
import jax.numpy as jnp
from jax.experimental import pallas as pl
from jax.experimental.pallas import tpu as pltpu  # noqa: F401

HIDDEN = 32      # hidden_dim (768 in the original; shrunk for the synthetic run)
NHEAD = 2        # nhead of every TransformerEncoderLayer
LABEL = 3        # label_dim
LN_EPS = 1e-5    # PyTorch LayerNorm default eps
NEG_INF = -1e9   # additive key-padding mask value (stand-in for -inf)
OUT_PAD = 128    # lane-dense classifier output width (first LABEL columns are real)


def _ceil8(n):
    return ((n + 7) // 8) * 8


# --------------------------------------------------------------------------
# The single fused kernel: poolers -> 3 encoder layers -> stacked heads.
# --------------------------------------------------------------------------
def _forward_kernel(feats_ref, pad_ref, adj_ref,
                    poolw_ref, poolb_ref,
                    wqkv_ref, bqkv_ref, wo_ref, wffn_ref, vecs_ref,
                    fcw_ref, fcb_ref,
                    out_ref, *, st_p, si_p):
    B, S2p, H = feats_ref.shape
    S0p = st_p + si_p                  # source-branch (text+image) aligned length
    hd = H // NHEAD
    scale = 1.0 / float(hd) ** 0.5
    bf16 = jnp.bfloat16

    pad = pad_ref[...]                 # (B, 1, S2p) additive key-padding bias

    def layer_norm(y, g, b):           # y: (M, H) f32; g/b: (1, H) f32
        mu = jnp.mean(y, axis=-1, keepdims=True)
        d = y - mu
        var = jnp.mean(d * d, axis=-1, keepdims=True)
        return d * jax.lax.rsqrt(var + LN_EPS) * g + b

    def encoder_layer(x, mask, layer):
        """Batched post-norm TransformerEncoderLayer (2-head MHA + ReLU FFN).
        x: (B, S, H) f32; mask: additive f32, (B, 1, S) or (B, S, S)."""
        S = x.shape[1]
        vec = vecs_ref[layer]          # (8, H): bo,b1,b2,g1,be1,g2,be2,pad
        bo, b1, b2 = vec[0:1], vec[1:2], vec[2:3]
        g1, be1, g2, be2 = vec[3:4], vec[4:5], vec[5:6], vec[6:7]

        x2 = x.reshape(B * S, H)       # one (B*S, H) slab for all weight matmuls
        xb = x2.astype(bf16)
        attn = None
        for h in range(NHEAD):         # static unroll over the 2 heads
            base = (layer * NHEAD + h) * 3
            q = jnp.dot(xb, wqkv_ref[base + 0],
                        preferred_element_type=jnp.float32) + bqkv_ref[base + 0]
            k = jnp.dot(xb, wqkv_ref[base + 1],
                        preferred_element_type=jnp.float32) + bqkv_ref[base + 1]
            v = jnp.dot(xb, wqkv_ref[base + 2],
                        preferred_element_type=jnp.float32) + bqkv_ref[base + 2]
            q3 = q.reshape(B, S, hd).astype(bf16)
            k3 = k.reshape(B, S, hd).astype(bf16)
            v3 = v.reshape(B, S, hd).astype(bf16)
            # TODO(synk): PyTorch's graph_mask.repeat(2,1,1) orders masks over
            # (batch*head); here the same per-batch mask feeds both heads.
            s = jnp.einsum('bqd,bkd->bqk', q3, k3,
                           preferred_element_type=jnp.float32) * scale + mask
            s = s - jnp.max(s, axis=-1, keepdims=True)
            p = jnp.exp(s)
            p = p / jnp.sum(p, axis=-1, keepdims=True)   # exact softmax
            o = jnp.einsum('bqk,bkd->bqd', p.astype(bf16), v3,
                           preferred_element_type=jnp.float32)
            # project each head through its row-slice of W_o and accumulate
            ph = jnp.dot(o.reshape(B * S, hd).astype(bf16),
                         wo_ref[layer * NHEAD + h],
                         preferred_element_type=jnp.float32)
            attn = ph if attn is None else attn + ph
        attn = attn + bo

        y = layer_norm(x2 + attn, g1, be1)               # residual + LayerNorm 1
        yb = y.astype(bf16)
        h1 = jnp.maximum(
            jnp.dot(yb, wffn_ref[2 * layer + 0],
                    preferred_element_type=jnp.float32) + b1, 0.0)
        z = y + jnp.dot(h1.astype(bf16), wffn_ref[2 * layer + 1],
                        preferred_element_type=jnp.float32) + b2
        return layer_norm(z, g2, be2).reshape(B, S, H)   # residual + LayerNorm 2

    # --- poolers: one batched matmul per modality (segments 8-row aligned) ----
    feats = feats_ref[...]

    def pool(seg, idx):                # tanh(Linear_idx(seg)); seg: (B, S, H)
        S = seg.shape[1]
        s2 = seg.reshape(B * S, H).astype(bf16)
        p = jnp.tanh(jnp.dot(s2, poolw_ref[idx],
                             preferred_element_type=jnp.float32) + poolb_ref[idx])
        return p.reshape(B, S, H)

    t_p = pool(feats[:, 0:st_p, :], 0)        # pooler_t
    i_p = pool(feats[:, st_p:S0p, :], 1)      # pooler_i
    x_p = pool(feats[:, S0p:S2p, :], 2)       # pooler_x

    # --- three transformer branches, fully batched over B ---------------------
    x0 = encoder_layer(jnp.concatenate([t_p, i_p], axis=1),
                       pad[:, :, 0:S0p], 0)                       # source branch
    x1 = encoder_layer(x_p, adj_ref[...] + pad[:, :, S0p:S2p], 1)  # graph branch
    x2 = encoder_layer(jnp.concatenate([x0, x1], axis=1), pad, 2)  # multi branch

    # --- stacked tail: CLS rows -> tanh(pooler_multi) -> fc_multi -------------
    cls = jnp.concatenate([x0[:, 0, :], x1[:, 0, :], x2[:, 0, :]], axis=0)  # (3B,H)
    pm = jnp.tanh(jnp.dot(cls.astype(bf16), poolw_ref[3],
                          preferred_element_type=jnp.float32) + poolb_ref[3])
    out = jnp.dot(pm.astype(bf16), fcw_ref[...],
                  preferred_element_type=jnp.float32) + fcb_ref[...]
    out_ref[...] = out.astype(out_ref.dtype)            # lane-dense (3B, OUT_PAD)


# --------------------------------------------------------------------------
# Parameter initialization (mirrors the PyTorch sub-modules actually used by
# forward()) and packing into contiguous, head-major, bf16 slabs.
# --------------------------------------------------------------------------
def init_linear_params(key, din, dout, scale=0.05):
    return {"w": scale * jax.random.normal(key, (din, dout), jnp.float32),
            "b": jnp.zeros((dout,), jnp.float32)}


def init_encoder_layer_params(key, h, scale=0.05):
    ks = jax.random.split(key, 6)
    z = jnp.zeros((h,), jnp.float32)
    return {
        "wq": scale * jax.random.normal(ks[0], (h, h), jnp.float32), "bq": z,
        "wk": scale * jax.random.normal(ks[1], (h, h), jnp.float32), "bk": z,
        "wv": scale * jax.random.normal(ks[2], (h, h), jnp.float32), "bv": z,
        "wo": scale * jax.random.normal(ks[3], (h, h), jnp.float32), "bo": z,
        "w1": scale * jax.random.normal(ks[4], (h, h), jnp.float32), "b1": z,
        "w2": scale * jax.random.normal(ks[5], (h, h), jnp.float32), "b2": z,
        "g1": jnp.ones((h,), jnp.float32), "be1": z,
        "g2": jnp.ones((h,), jnp.float32), "be2": z,
    }


def init_params(key, h=HIDDEN, label=LABEL):
    ks = jax.random.split(key, 8)
    # Only the sub-modules used by forward() are needed (pooler_source /
    # pooler_graph / fc_source / fc_graph / token_type_embeddings are unused).
    return {
        "pooler_t": init_linear_params(ks[0], h, h),
        "pooler_i": init_linear_params(ks[1], h, h),
        "pooler_x": init_linear_params(ks[2], h, h),
        "pooler_multi": init_linear_params(ks[3], h, h),
        "fc_multi": init_linear_params(ks[4], h, label),
        "transformer_source": init_encoder_layer_params(ks[5], h),
        "transformer_graph": init_encoder_layer_params(ks[6], h),
        "transformer_multi": init_encoder_layer_params(ks[7], h),
    }


def pack_params(p, nhead=NHEAD, out_pad=OUT_PAD):
    """Pack the per-module weights into a few contiguous slabs.  Attention
    weights are split head-major host-side (so the kernel never slices 16-lane
    head sub-ranges in-vreg) and all matmul weights are stored in bf16."""
    H = p["pooler_t"]["w"].shape[0]
    hd = H // nhead
    lbl = p["fc_multi"]["w"].shape[1]
    layers = [p["transformer_source"], p["transformer_graph"], p["transformer_multi"]]

    wqkv, bqkv, wo, wffn, vecs = [], [], [], [], []
    for lp in layers:
        for h in range(nhead):
            sl = slice(h * hd, (h + 1) * hd)
            for wname, bname in (("wq", "bq"), ("wk", "bk"), ("wv", "bv")):
                wqkv.append(lp[wname][:, sl])            # (H, hd) head-major
                bqkv.append(lp[bname][sl][None, :])      # (1, hd)
            wo.append(lp["wo"][sl, :])                   # (hd, H) head row-slice
        wffn.append(lp["w1"])
        wffn.append(lp["w2"])
        vecs.append(jnp.stack([lp["bo"], lp["b1"], lp["b2"], lp["g1"], lp["be1"],
                               lp["g2"], lp["be2"], jnp.zeros_like(lp["bo"])]))

    fcw = jnp.zeros((H, out_pad), jnp.float32).at[:, :lbl].set(p["fc_multi"]["w"])
    fcb = jnp.zeros((1, out_pad), jnp.float32).at[:, :lbl].set(p["fc_multi"]["b"][None, :])

    return {
        "wqkv": jnp.stack(wqkv).astype(jnp.bfloat16),    # (3*NHEAD*3, H, hd)
        "bqkv": jnp.stack(bqkv),                         # (3*NHEAD*3, 1, hd) f32
        "wo": jnp.stack(wo).astype(jnp.bfloat16),        # (3*NHEAD, hd, H)
        "wffn": jnp.stack(wffn).astype(jnp.bfloat16),    # (6, H, H): per layer w1,w2
        "vecs": jnp.stack(vecs),                         # (3, 8, H) f32
        "pool_w": jnp.stack([p["pooler_t"]["w"], p["pooler_i"]["w"],
                             p["pooler_x"]["w"], p["pooler_multi"]["w"]]
                            ).astype(jnp.bfloat16),                        # (4,H,H)
        "pool_b": jnp.stack([p["pooler_t"]["b"], p["pooler_i"]["b"],
                             p["pooler_x"]["b"], p["pooler_multi"]["b"]])[:, None, :],  # (4,1,H)
        "fc_w": fcw.astype(jnp.bfloat16),                # (H, OUT_PAD)
        "fc_b": fcb,                                     # (1, OUT_PAD) f32
    }


# --------------------------------------------------------------------------
# Forward pass (mirrors MultiModalGraphModel.forward after the frozen encoders).
#   t_feat:    (B, St, H) text-encoder hidden states of the source node
#   node_feat: (B, N,  H) per-node CLS embeddings
#   img_feat:  (B, Si, H) image-encoder patch embeddings
#   *_pad:     bool padding masks, True = position is padding (ignore)
#   adj:       (B, N, N) float 0/1 dense graph adjacency (to_dense_adj)
# --------------------------------------------------------------------------
def forward(packed, t_feat, t_pad, node_feat, node_pad, img_feat, img_pad, adj):
    B, St, H = t_feat.shape
    Si = img_feat.shape[1]
    N = node_feat.shape[1]
    St_p, Si_p, N_p = _ceil8(St), _ceil8(Si), _ceil8(N)
    S2_p = St_p + Si_p + N_p
    f32 = jnp.float32

    def pad_rows(x, n):
        b, k, h = x.shape
        x = x.astype(f32)
        return x if k == n else jnp.concatenate(
            [x, jnp.zeros((b, n - k, h), f32)], axis=1)

    def pad_mask(m, n):
        b, k = m.shape
        return m if k == n else jnp.concatenate(
            [m, jnp.ones((b, n - k), dtype=bool)], axis=1)

    # packed [text | image | node] features; every segment 8-row aligned
    feats = jnp.concatenate([pad_rows(t_feat, St_p), pad_rows(img_feat, Si_p),
                             pad_rows(node_feat, N_p)], axis=1)          # (B,S2_p,H)
    # key-padding bools (alignment filler rows masked) -> (B, 1, S2_p) bias
    pad_all = jnp.concatenate([pad_mask(t_pad, St_p), pad_mask(img_pad, Si_p),
                               pad_mask(node_pad, N_p)], axis=1)
    pad_bias = jnp.where(pad_all, NEG_INF, 0.0).astype(f32)[:, None, :]
    # dense graph adjacency, zero-padded to the aligned node segment
    adj_p = jnp.zeros((B, N_p, N_p), f32).at[:, :N, :N].set(adj.astype(f32))

    # TODO(synk): at the real H=768 scale this "everything resident, grid=()"
    # structure would need a batch grid + BlockSpecs (and bf16 slabs) to fit
    # v7x's 64 MiB VMEM; unnecessary at this synthetic size.
    kernel = functools.partial(_forward_kernel, st_p=St_p, si_p=Si_p)
    out = pl.pallas_call(
        kernel,
        out_shape=jax.ShapeDtypeStruct((3 * B, OUT_PAD), jnp.float32),
    )(feats, pad_bias, adj_p,
      packed["pool_w"], packed["pool_b"],
      packed["wqkv"], packed["bqkv"], packed["wo"], packed["wffn"],
      packed["vecs"], packed["fc_w"], packed["fc_b"])

    logits = out[:, :LABEL]
    return logits[0:B], logits[B:2 * B], logits[2 * B:3 * B]


if __name__ == "__main__":
    key = jax.random.PRNGKey(0)
    kp, k0, k1, k2, k3 = jax.random.split(key, 5)

    B, St, Si, N, H = 2, 8, 6, 4, HIDDEN
    params = init_params(kp, H, LABEL)
    packed = pack_params(params)

    t_feat = jax.random.normal(k0, (B, St, H), jnp.float32)
    node_feat = jax.random.normal(k1, (B, N, H), jnp.float32)
    img_feat = jax.random.normal(k2, (B, Si, H), jnp.float32)

    # padding masks: True = padding (ignored); keep position 0 valid everywhere
    t_pad = jnp.zeros((B, St), bool).at[:, St - 2:].set(True)
    node_pad = jnp.zeros((B, N), bool).at[1, N - 1].set(True)
    img_pad = jnp.zeros((B, Si), bool)

    # dense 0/1 graph adjacency (to_dense_adj output), used as additive bias
    adj = (jax.random.uniform(k3, (B, N, N)) > 0.5).astype(jnp.float32)

    fwd = jax.jit(forward)
    o0, o1, o2 = fwd(packed, t_feat, t_pad, node_feat, node_pad, img_feat, img_pad, adj)
    jax.block_until_ready((o0, o1, o2))

    assert o0.shape == (B, LABEL) and o1.shape == (B, LABEL) and o2.shape == (B, LABEL)
    assert jnp.all(jnp.isfinite(o0)) and jnp.all(jnp.isfinite(o1)) and jnp.all(jnp.isfinite(o2))
    print("KERNEL_OK")
</pallas_src>

<mosaic_0001>
module attributes {stable_mosaic.version = 11 : i64} {
  func.func @_forward_kernel(%arg0: memref<2x24x32xf32, #tpu.memory_space<vmem>>, %arg1: memref<2x1x24xf32, #tpu.memory_space<vmem>>, %arg2: memref<2x8x8xf32, #tpu.memory_space<vmem>>, %arg3: memref<4x32x32xbf16, #tpu.memory_space<vmem>>, %arg4: memref<4x1x32xf32, #tpu.memory_space<vmem>>, %arg5: memref<18x32x16xbf16, #tpu.memory_space<vmem>>, %arg6: memref<18x1x16xf32, #tpu.memory_space<vmem>>, %arg7: memref<6x16x32xbf16, #tpu.memory_space<vmem>>, %arg8: memref<6x32x32xbf16, #tpu.memory_space<vmem>>, %arg9: memref<3x8x32xf32, #tpu.memory_space<vmem>>, %arg10: memref<32x128xbf16, #tpu.memory_space<vmem>>, %arg11: memref<1x128xf32, #tpu.memory_space<vmem>>, %arg12: memref<6x128xf32, #tpu.memory_space<vmem>>) attributes {dimension_semantics = [], scalar_prefetch = 0 : i64, scratch_operands = 0 : i64, tpu.core_type = #tpu.core_type<tc>} {
    %c0 = arith.constant 0 : index
    %c0_0 = arith.constant 0 : index
    %c0_1 = arith.constant 0 : index
    %0 = vector.load %arg1[%c0, %c0_0, %c0_1] : memref<2x1x24xf32, #tpu.memory_space<vmem>>, vector<2x1x24xf32>
    %c0_2 = arith.constant 0 : index
    %c0_3 = arith.constant 0 : index
    %c0_4 = arith.constant 0 : index
    %1 = vector.load %arg0[%c0_2, %c0_3, %c0_4] : memref<2x24x32xf32, #tpu.memory_space<vmem>>, vector<2x24x32xf32>
    %2 = vector.extract_strided_slice %1 {offsets = [0, 0, 0], sizes = [2, 8, 32], strides = [1, 1, 1]} : vector<2x24x32xf32> to vector<2x8x32xf32>
    %3 = vector.shape_cast %2 : vector<2x8x32xf32> to vector<16x32xf32>
    %4 = arith.truncf %3 : vector<16x32xf32> to vector<16x32xbf16>
    %c0_5 = arith.constant 0 : index
    %c0_6 = arith.constant 0 : index
    %c0_7 = arith.constant 0 : index
    %5 = vector.load %arg3[%c0_5, %c0_6, %c0_7] : memref<4x32x32xbf16, #tpu.memory_space<vmem>>, vector<1x32x32xbf16>
    %6 = vector.shape_cast %5 : vector<1x32x32xbf16> to vector<32x32xbf16>
    %cst = arith.constant dense<0.000000e+00> : vector<16x32xf32>
    %7 = tpu.matmul %4, %6, %cst {dimension_numbers = #tpu.dot_dimension_numbers<[1], [0], [0], [1], [0, 0, 1, 1], [], []>} : vector<16x32xbf16>, vector<32x32xbf16>, vector<16x32xf32> -> vector<16x32xf32>
    %c0_8 = arith.constant 0 : index
    %c0_9 = arith.constant 0 : index
    %c0_10 = arith.constant 0 : index
    %8 = vector.load %arg4[%c0_8, %c0_9, %c0_10] : memref<4x1x32xf32, #tpu.memory_space<vmem>>, vector<1x1x32xf32>
    %9 = vector.shape_cast %8 : vector<1x1x32xf32> to vector<1x32xf32>
    %10 = vector.broadcast %9 : vector<1x32xf32> to vector<16x32xf32>
    %11 = arith.addf %7, %10 : vector<16x32xf32>
    %12 = math.tanh %11 : vector<16x32xf32>
    %13 = vector.shape_cast %12 : vector<16x32xf32> to vector<2x8x32xf32>
    %14 = vector.extract_strided_slice %1 {offsets = [0, 8, 0], sizes = [2, 8, 32], strides = [1, 1, 1]} : vector<2x24x32xf32> to vector<2x8x32xf32>
    %15 = vector.shape_cast %14 : vector<2x8x32xf32> to vector<16x32xf32>
    %16 = arith.truncf %15 : vector<16x32xf32> to vector<16x32xbf16>
    %c1 = arith.constant 1 : index
    %c0_11 = arith.constant 0 : index
    %c0_12 = arith.constant 0 : index
    %17 = vector.load %arg3[%c1, %c0_11, %c0_12] : memref<4x32x32xbf16, #tpu.memory_space<vmem>>, vector<1x32x32xbf16>
    %18 = vector.shape_cast %17 : vector<1x32x32xbf16> to vector<32x32xbf16>
    %cst_13 = arith.constant dense<0.000000e+00> : vector<16x32xf32>
    %19 = tpu.matmul %16, %18, %cst_13 {dimension_numbers = #tpu.dot_dimension_numbers<[1], [0], [0], [1], [0, 0, 1, 1], [], []>} : vector<16x32xbf16>, vector<32x32xbf16>, vector<16x32xf32> -> vector<16x32xf32>
    %c1_14 = arith.constant 1 : index
    %c0_15 = arith.constant 0 : index
    %c0_16 = arith.constant 0 : index
    %20 = vector.load %arg4[%c1_14, %c0_15, %c0_16] : memref<4x1x32xf32, #tpu.memory_space<vmem>>, vector<1x1x32xf32>
    %21 = vector.shape_cast %20 : vector<1x1x32xf32> to vector<1x32xf32>
    %22 = vector.broadcast %21 : vector<1x32xf32> to vector<16x32xf32>
    %23 = arith.addf %19, %22 : vector<16x32xf32>
    %24 = math.tanh %23 : vector<16x32xf32>
    %25 = vector.shape_cast %24 : vector<16x32xf32> to vector<2x8x32xf32>
    %26 = vector.extract_strided_slice %1 {offsets = [0, 16, 0], sizes = [2, 8, 32], strides = [1, 1, 1]} : vector<2x24x32xf32> to vector<2x8x32xf32>
    %27 = vector.shape_cast %26 : vector<2x8x32xf32> to vector<16x32xf32>
    %28 = arith.truncf %27 : vector<16x32xf32> to vector<16x32xbf16>
    %c2 = arith.constant 2 : index
    %c0_17 = arith.constant 0 : index
    %c0_18 = arith.constant 0 : index
    %29 = vector.load %arg3[%c2, %c0_17, %c0_18] : memref<4x32x32xbf16, #tpu.memory_space<vmem>>, vector<1x32x32xbf16>
    %30 = vector.shape_cast %29 : vector<1x32x32xbf16> to vector<32x32xbf16>
    %cst_19 = arith.constant dense<0.000000e+00> : vector<16x32xf32>
    %31 = tpu.matmul %28, %30, %cst_19 {dimension_numbers = #tpu.dot_dimension_numbers<[1], [0], [0], [1], [0, 0, 1, 1], [], []>} : vector<16x32xbf16>, vector<32x32xbf16>, vector<16x32xf32> -> vector<16x32xf32>
    %c2_20 = arith.constant 2 : index
    %c0_21 = arith.constant 0 : index
    %c0_22 = arith.constant 0 : index
    %32 = vector.load %arg4[%c2_20, %c0_21, %c0_22] : memref<4x1x32xf32, #tpu.memory_space<vmem>>, vector<1x1x32xf32>
    %33 = vector.shape_cast %32 : vector<1x1x32xf32> to vector<1x32xf32>
    %34 = vector.broadcast %33 : vector<1x32xf32> to vector<16x32xf32>
    %35 = arith.addf %31, %34 : vector<16x32xf32>
    %36 = math.tanh %35 : vector<16x32xf32>
    %37 = vector.shape_cast %36 : vector<16x32xf32> to vector<2x8x32xf32>
    %38 = tpu.concatenate %13, %25 in 1 : vector<2x8x32xf32>, vector<2x8x32xf32> -> vector<2x16x32xf32>
    %39 = vector.extract_strided_slice %0 {offsets = [0, 0, 0], sizes = [2, 1, 16], strides = [1, 1, 1]} : vector<2x1x24xf32> to vector<2x1x16xf32>
    %c0_23 = arith.constant 0 : index
    %c0_24 = arith.constant 0 : index
    %c0_25 = arith.constant 0 : index
    %40 = vector.load %arg9[%c0_23, %c0_24, %c0_25] : memref<3x8x32xf32, #tpu.memory_space<vmem>>, vector<1x8x32xf32>
    %41 = vector.shape_cast %40 : vector<1x8x32xf32> to vector<8x32xf32>
    %42 = vector.extract_strided_slice %41 {offsets = [0, 0], sizes = [1, 32], strides = [1, 1]} : vector<8x32xf32> to vector<1x32xf32>
    %43 = vector.extract_strided_slice %41 {offsets = [1, 0], sizes = [1, 32], strides = [1, 1]} : vector<8x32xf32> to vector<1x32xf32>
    %44 = vector.extract_strided_slice %41 {offsets = [2, 0], sizes = [1, 32], strides = [1, 1]} : vector<8x32xf32> to vector<1x32xf32>
    %45 = vector.extract_strided_slice %41 {offsets = [3, 0], sizes = [1, 32], strides = [1, 1]} : vector<8x32xf32> to vector<1x32xf32>
    %46 = vector.extract_strided_slice %41 {offsets = [4, 0], sizes = [1, 32], strides = [1, 1]} : vector<8x32xf32> to vector<1x32xf32>
    %47 = vector.extract_strided_slice %41 {offsets = [5, 0], sizes = [1, 32], strides = [1, 1]} : vector<8x32xf32> to vector<1x32xf32>
    %48 = vector.extract_strided_slice %41 {offsets = [6, 0], sizes = [1, 32], strides = [1, 1]} : vector<8x32xf32> to vector<1x32xf32>
    %49 = vector.shape_cast %38 : vector<2x16x32xf32> to vector<32x32xf32>
    %50 = arith.truncf %49 : vector<32x32xf32> to vector<32x32xbf16>
    %c0_26 = arith.constant 0 : index
    %c0_27 = arith.constant 0 : index
    %c0_28 = arith.constant 0 : index
    %51 = vector.load %arg5[%c0_26, %c0_27, %c0_28] : memref<18x32x16xbf16, #tpu.memory_space<vmem>>, vector<1x32x16xbf16>
    %52 = vector.shape_cast %51 : vector<1x32x16xbf16> to vector<32x16xbf16>
    %cst_29 = arith.constant dense<0.000000e+00> : vector<32x16xf32>
    %53 = tpu.matmul %50, %52, %cst_29 {dimension_numbers = #tpu.dot_dimension_numbers<[1], [0], [0], [1], [0, 0, 1, 1], [], []>} : vector<32x32xbf16>, vector<32x16xbf16>, vector<32x16xf32> -> vector<32x16xf32>
    %c0_30 = arith.constant 0 : index
    %c0_31 = arith.constant 0 : index
    %c0_32 = arith.constant 0 : index
    %54 = vector.load %arg6[%c0_30, %c0_31, %c0_32] : memref<18x1x16xf32, #tpu.memory_space<vmem>>, vector<1x1x16xf32>
    %55 = vector.shape_cast %54 : vector<1x1x16xf32> to vector<1x16xf32>
    %56 = vector.broadcast %55 : vector<1x16xf32> to vector<32x16xf32>
    %57 = arith.addf %53, %56 : vector<32x16xf32>
    %c1_33 = arith.constant 1 : index
    %c0_34 = arith.constant 0 : index
    %c0_35 = arith.constant 0 : index
    %58 = vector.load %arg5[%c1_33, %c0_34, %c0_35] : memref<18x32x16xbf16, #tpu.memory_space<vmem>>, vector<1x32x16xbf16>
    %59 = vector.shape_cast %58 : vector<1x32x16xbf16> to vector<32x16xbf16>
    %cst_36 = arith.constant dense<0.000000e+00> : vector<32x16xf32>
    %60 = tpu.matmul %50, %59, %cst_36 {dimension_numbers = #tpu.dot_dimension_numbers<[1], [0], [0], [1], [0, 0, 1, 1], [], []>} : vector<32x32xbf16>, vector<32x16xbf16>, vector<32x16xf32> -> vector<32x16xf32>
    %c1_37 = arith.constant 1 : index
    %c0_38 = arith.constant 0 : index
    %c0_39 = arith.constant 0 : index
    %61 = vector.load %arg6[%c1_37, %c0_38, %c0_39] : memref<18x1x16xf32, #tpu.memory_space<vmem>>, vector<1x1x16xf32>
    %62 = vector.shape_cast %61 : vector<1x1x16xf32> to vector<1x16xf32>
    %63 = vector.broadcast %62 : vector<1x16xf32> to vector<32x16xf32>
    %64 = arith.addf %60, %63 : vector<32x16xf32>
    %c2_40 = arith.constant 2 : index
    %c0_41 = arith.constant 0 : index
    %c0_42 = arith.constant 0 : index
    %65 = vector.load %arg5[%c2_40, %c0_41, %c0_42] : memref<18x32x16xbf16, #tpu.memory_space<vmem>>, vector<1x32x16xbf16>
    %66 = vector.shape_cast %65 : vector<1x32x16xbf16> to vector<32x16xbf16>
    %cst_43 = arith.constant dense<0.000000e+00> : vector<32x16xf32>
    %67 = tpu.matmul %50, %66, %cst_43 {dimension_numbers = #tpu.dot_dimension_numbers<[1], [0], [0], [1], [0, 0, 1, 1], [], []>} : vector<32x32xbf16>, vector<32x16xbf16>, vector<32x16xf32> -> vector<32x16xf32>
    %c2_44 = arith.constant 2 : index
    %c0_45 = arith.constant 0 : index
    %c0_46 = arith.constant 0 : index
    %68 = vector.load %arg6[%c2_44, %c0_45, %c0_46] : memref<18x1x16xf32, #tpu.memory_space<vmem>>, vector<1x1x16xf32>
    %69 = vector.shape_cast %68 : vector<1x1x16xf32> to vector<1x16xf32>
    %70 = vector.broadcast %69 : vector<1x16xf32> to vector<32x16xf32>
    %71 = arith.addf %67, %70 : vector<32x16xf32>
    %72 = vector.shape_cast %57 : vector<32x16xf32> to vector<2x16x16xf32>
    %73 = arith.truncf %72 : vector<2x16x16xf32> to vector<2x16x16xbf16>
    %74 = vector.shape_cast %64 : vector<32x16xf32> to vector<2x16x16xf32>
    %75 = arith.truncf %74 : vector<2x16x16xf32> to vector<2x16x16xbf16>
    %76 = vector.shape_cast %71 : vector<32x16xf32> to vector<2x16x16xf32>
    %77 = arith.truncf %76 : vector<2x16x16xf32> to vector<2x16x16xbf16>
    "tpu.trace_start"() <{level = 10 : i32, message = "bqd,bkd->bqk"}> : () -> ()
    %cst_47 = arith.constant dense<0.000000e+00> : vector<2x16x16xf32>
    %78 = tpu.matmul %73, %75, %cst_47 {dimension_numbers = #tpu.dot_dimension_numbers<[2], [2], [1], [1], [0, 0, 0, 1, 1, 1], [0], [0]>} : vector<2x16x16xbf16>, vector<2x16x16xbf16>, vector<2x16x16xf32> -> vector<2x16x16xf32>
    "tpu.trace_stop"() : () -> ()
    %cst_48 = arith.constant 2.500000e-01 : f32
    %79 = vector.broadcast %cst_48 : f32 to vector<2x16x16xf32>
    %80 = arith.mulf %78, %79 : vector<2x16x16xf32>
    %81 = vector.broadcast %39 : vector<2x1x16xf32> to vector<2x16x16xf32>
    %82 = arith.addf %80, %81 : vector<2x16x16xf32>
    %cst_49 = arith.constant dense<0xFF800000> : vector<2x16xf32>
    %83 = vector.multi_reduction <maximumf>, %82, %cst_49 [2] : vector<2x16x16xf32> to vector<2x16xf32>
    %84 = vector.shape_cast %83 : vector<2x16xf32> to vector<2x16x1xf32>
    %85 = vector.broadcast %84 : vector<2x16x1xf32> to vector<2x16x16xf32>
    %86 = arith.subf %82, %85 : vector<2x16x16xf32>
    %87 = math.exp %86 : vector<2x16x16xf32>
    %cst_50 = arith.constant dense<0.000000e+00> : vector<2x16xf32>
    %88 = vector.multi_reduction <add>, %87, %cst_50 [2] : vector<2x16x16xf32> to vector<2x16xf32>
    %89 = vector.shape_cast %88 : vector<2x16xf32> to vector<2x16x1xf32>
    %90 = vector.broadcast %89 : vector<2x16x1xf32> to vector<2x16x16xf32>
    %91 = arith.divf %87, %90 : vector<2x16x16xf32>
    %92 = arith.truncf %91 : vector<2x16x16xf32> to vector<2x16x16xbf16>
    "tpu.trace_start"() <{level = 10 : i32, message = "bqk,bkd->bqd"}> : () -> ()
    %cst_51 = arith.constant dense<0.000000e+00> : vector<2x16x16xf32>
    %93 = tpu.matmul %92, %77, %cst_51 {dimension_numbers = #tpu.dot_dimension_numbers<[2], [1], [1], [2], [0, 0, 0, 1, 1, 2], [0], [0]>} : vector<2x16x16xbf16>, vector<2x16x16xbf16>, vector<2x16x16xf32> -> vector<2x16x16xf32>
    "tpu.trace_stop"() : () -> ()
    %94 = vector.shape_cast %93 : vector<2x16x16xf32> to vector<32x16xf32>
    %95 = arith.truncf %94 : vector<32x16xf32> to vector<32x16xbf16>
    %c0_52 = arith.constant 0 : index
    %c0_53 = arith.constant 0 : index
    %c0_54 = arith.constant 0 : index
    %96 = vector.load %arg7[%c0_52, %c0_53, %c0_54] : memref<6x16x32xbf16, #tpu.memory_space<vmem>>, vector<1x16x32xbf16>
    %97 = vector.shape_cast %96 : vector<1x16x32xbf16> to vector<16x32xbf16>
    %cst_55 = arith.constant dense<0.000000e+00> : vector<32x32xf32>
    %98 = tpu.matmul %95, %97, %cst_55 {dimension_numbers = #tpu.dot_dimension_numbers<[1], [0], [0], [1], [0, 0, 1, 1], [], []>} : vector<32x16xbf16>, vector<16x32xbf16>, vector<32x32xf32> -> vector<32x32xf32>
    %c3 = arith.constant 3 : index
    %c0_56 = arith.constant 0 : index
    %c0_57 = arith.constant 0 : index
    %99 = vector.load %arg5[%c3, %c0_56, %c0_57] : memref<18x32x16xbf16, #tpu.memory_space<vmem>>, vector<1x32x16xbf16>
    %100 = vector.shape_cast %99 : vector<1x32x16xbf16> to vector<32x16xbf16>
    %cst_58 = arith.constant dense<0.000000e+00> : vector<32x16xf32>
    %101 = tpu.matmul %50, %100, %cst_58 {dimension_numbers = #tpu.dot_dimension_numbers<[1], [0], [0], [1], [0, 0, 1, 1], [], []>} : vector<32x32xbf16>, vector<32x16xbf16>, vector<32x16xf32> -> vector<32x16xf32>
    %c3_59 = arith.constant 3 : index
    %c0_60 = arith.constant 0 : index
    %c0_61 = arith.constant 0 : index
    %102 = vector.load %arg6[%c3_59, %c0_60, %c0_61] : memref<18x1x16xf32, #tpu.memory_space<vmem>>, vector<1x1x16xf32>
    %103 = vector.shape_cast %102 : vector<1x1x16xf32> to vector<1x16xf32>
    %104 = vector.broadcast %103 : vector<1x16xf32> to vector<32x16xf32>
    %105 = arith.addf %101, %104 : vector<32x16xf32>
    %c4 = arith.constant 4 : index
    %c0_62 = arith.constant 0 : index
    %c0_63 = arith.constant 0 : index
    %106 = vector.load %arg5[%c4, %c0_62, %c0_63] : memref<18x32x16xbf16, #tpu.memory_space<vmem>>, vector<1x32x16xbf16>
    %107 = vector.shape_cast %106 : vector<1x32x16xbf16> to vector<32x16xbf16>
    %cst_64 = arith.constant dense<0.000000e+00> : vector<32x16xf32>
    %108 = tpu.matmul %50, %107, %cst_64 {dimension_numbers = #tpu.dot_dimension_numbers<[1], [0], [0], [1], [0, 0, 1, 1], [], []>} : vector<32x32xbf16>, vector<32x16xbf16>, vector<32x16xf32> -> vector<32x16xf32>
    %c4_65 = arith.constant 4 : index
    %c0_66 = arith.constant 0 : index
    %c0_67 = arith.constant 0 : index
    %109 = vector.load %arg6[%c4_65, %c0_66, %c0_67] : memref<18x1x16xf32, #tpu.memory_space<vmem>>, vector<1x1x16xf32>
    %110 = vector.shape_cast %109 : vector<1x1x16xf32> to vector<1x16xf32>
    %111 = vector.broadcast %110 : vector<1x16xf32> to vector<32x16xf32>
    %112 = arith.addf %108, %111 : vector<32x16xf32>
    %c5 = arith.constant 5 : index
    %c0_68 = arith.constant 0 : index
    %c0_69 = arith.constant 0 : index
    %113 = vector.load %arg5[%c5, %c0_68, %c0_69] : memref<18x32x16xbf16, #tpu.memory_space<vmem>>, vector<1x32x16xbf16>
    %114 = vector.shape_cast %113 : vector<1x32x16xbf16> to vector<32x16xbf16>
    %cst_70 = arith.constant dense<0.000000e+00> : vector<32x16xf32>
    %115 = tpu.matmul %50, %114, %cst_70 {dimension_numbers = #tpu.dot_dimension_numbers<[1], [0], [0], [1], [0, 0, 1, 1], [], []>} : vector<32x32xbf16>, vector<32x16xbf16>, vector<32x16xf32> -> vector<32x16xf32>
    %c5_71 = arith.constant 5 : index
    %c0_72 = arith.constant 0 : index
    %c0_73 = arith.constant 0 : index
    %116 = vector.load %arg6[%c5_71, %c0_72, %c0_73] : memref<18x1x16xf32, #tpu.memory_space<vmem>>, vector<1x1x16xf32>
    %117 = vector.shape_cast %116 : vector<1x1x16xf32> to vector<1x16xf32>
    %118 = vector.broadcast %117 : vector<1x16xf32> to vector<32x16xf32>
    %119 = arith.addf %115, %118 : vector<32x16xf32>
    %120 = vector.shape_cast %105 : vector<32x16xf32> to vector<2x16x16xf32>
    %121 = arith.truncf %120 : vector<2x16x16xf32> to vector<2x16x16xbf16>
    %122 = vector.shape_cast %112 : vector<32x16xf32> to vector<2x16x16xf32>
    %123 = arith.truncf %122 : vector<2x16x16xf32> to vector<2x16x16xbf16>
    %124 = vector.shape_cast %119 : vector<32x16xf32> to vector<2x16x16xf32>
    %125 = arith.truncf %124 : vector<2x16x16xf32> to vector<2x16x16xbf16>
    "tpu.trace_start"() <{level = 10 : i32, message = "bqd,bkd->bqk"}> : () -> ()
    %cst_74 = arith.constant dense<0.000000e+00> : vector<2x16x16xf32>
    %126 = tpu.matmul %121, %123, %cst_74 {dimension_numbers = #tpu.dot_dimension_numbers<[2], [2], [1], [1], [0, 0, 0, 1, 1, 1], [0], [0]>} : vector<2x16x16xbf16>, vector<2x16x16xbf16>, vector<2x16x16xf32> -> vector<2x16x16xf32>
    "tpu.trace_stop"() : () -> ()
    %cst_75 = arith.constant 2.500000e-01 : f32
    %127 = vector.broadcast %cst_75 : f32 to vector<2x16x16xf32>
    %128 = arith.mulf %126, %127 : vector<2x16x16xf32>
    %129 = vector.broadcast %39 : vector<2x1x16xf32> to vector<2x16x16xf32>
    %130 = arith.addf %128, %129 : vector<2x16x16xf32>
    %cst_76 = arith.constant dense<0xFF800000> : vector<2x16xf32>
    %131 = vector.multi_reduction <maximumf>, %130, %cst_76 [2] : vector<2x16x16xf32> to vector<2x16xf32>
    %132 = vector.shape_cast %131 : vector<2x16xf32> to vector<2x16x1xf32>
    %133 = vector.broadcast %132 : vector<2x16x1xf32> to vector<2x16x16xf32>
    %134 = arith.subf %130, %133 : vector<2x16x16xf32>
    %135 = math.exp %134 : vector<2x16x16xf32>
    %cst_77 = arith.constant dense<0.000000e+00> : vector<2x16xf32>
    %136 = vector.multi_reduction <add>, %135, %cst_77 [2] : vector<2x16x16xf32> to vector<2x16xf32>
    %137 = vector.shape_cast %136 : vector<2x16xf32> to vector<2x16x1xf32>
    %138 = vector.broadcast %137 : vector<2x16x1xf32> to vector<2x16x16xf32>
    %139 = arith.divf %135, %138 : vector<2x16x16xf32>
    %140 = arith.truncf %139 : vector<2x16x16xf32> to vector<2x16x16xbf16>
    "tpu.trace_start"() <{level = 10 : i32, message = "bqk,bkd->bqd"}> : () -> ()
    %cst_78 = arith.constant dense<0.000000e+00> : vector<2x16x16xf32>
    %141 = tpu.matmul %140, %125, %cst_78 {dimension_numbers = #tpu.dot_dimension_numbers<[2], [1], [1], [2], [0, 0, 0, 1, 1, 2], [0], [0]>} : vector<2x16x16xbf16>, vector<2x16x16xbf16>, vector<2x16x16xf32> -> vector<2x16x16xf32>
    "tpu.trace_stop"() : () -> ()
    %142 = vector.shape_cast %141 : vector<2x16x16xf32> to vector<32x16xf32>
    %143 = arith.truncf %142 : vector<32x16xf32> to vector<32x16xbf16>
    %c1_79 = arith.constant 1 : index
    %c0_80 = arith.constant 0 : index
    %c0_81 = arith.constant 0 : index
    %144 = vector.load %arg7[%c1_79, %c0_80, %c0_81] : memref<6x16x32xbf16, #tpu.memory_space<vmem>>, vector<1x16x32xbf16>
    %145 = vector.shape_cast %144 : vector<1x16x32xbf16> to vector<16x32xbf16>
    %cst_82 = arith.constant dense<0.000000e+00> : vector<32x32xf32>
    %146 = tpu.matmul %143, %145, %cst_82 {dimension_numbers = #tpu.dot_dimension_numbers<[1], [0], [0], [1], [0, 0, 1, 1], [], []>} : vector<32x16xbf16>, vector<16x32xbf16>, vector<32x32xf32> -> vector<32x32xf32>
    %147 = arith.addf %98, %146 : vector<32x32xf32>
    %148 = vector.broadcast %42 : vector<1x32xf32> to vector<32x32xf32>
    %149 = arith.addf %147, %148 : vector<32x32xf32>
    %150 = arith.addf %49, %149 : vector<32x32xf32>
    %cst_83 = arith.constant dense<0.000000e+00> : vector<32xf32>
    %151 = vector.multi_reduction <add>, %150, %cst_83 [1] : vector<32x32xf32> to vector<32xf32>
    %152 = vector.shape_cast %151 : vector<32xf32> to vector<32x1xf32>
    %cst_84 = arith.constant 3.200000e+01 : f32
    %153 = vector.broadcast %cst_84 : f32 to vector<32x1xf32>
    %154 = arith.divf %152, %153 : vector<32x1xf32>
    %155 = vector.broadcast %154 : vector<32x1xf32> to vector<32x32xf32>
    %156 = arith.subf %150, %155 : vector<32x32xf32>
    %157 = arith.mulf %156, %156 : vector<32x32xf32>
    %cst_85 = arith.constant dense<0.000000e+00> : vector<32xf32>
    %158 = vector.multi_reduction <add>, %157, %cst_85 [1] : vector<32x32xf32> to vector<32xf32>
    %159 = vector.shape_cast %158 : vector<32xf32> to vector<32x1xf32>
    %cst_86 = arith.constant 3.200000e+01 : f32
    %160 = vector.broadcast %cst_86 : f32 to vector<32x1xf32>
    %161 = arith.divf %159, %160 : vector<32x1xf32>
    %cst_87 = arith.constant 9.99999974E-6 : f32
    %162 = vector.broadcast %cst_87 : f32 to vector<32x1xf32>
    %163 = arith.addf %161, %162 : vector<32x1xf32>
    %164 = math.rsqrt %163 : vector<32x1xf32>
    %165 = vector.broadcast %164 : vector<32x1xf32> to vector<32x32xf32>
    %166 = arith.mulf %156, %165 : vector<32x32xf32>
    %167 = vector.broadcast %45 : vector<1x32xf32> to vector<32x32xf32>
    %168 = arith.mulf %166, %167 : vector<32x32xf32>
    %169 = vector.broadcast %46 : vector<1x32xf32> to vector<32x32xf32>
    %170 = arith.addf %168, %169 : vector<32x32xf32>
    %171 = arith.truncf %170 : vector<32x32xf32> to vector<32x32xbf16>
    %c0_88 = arith.constant 0 : index
    %c0_89 = arith.constant 0 : index
    %c0_90 = arith.constant 0 : index
    %172 = vector.load %arg8[%c0_88, %c0_89, %c0_90] : memref<6x32x32xbf16, #tpu.memory_space<vmem>>, vector<1x32x32xbf16>
    %173 = vector.shape_cast %172 : vector<1x32x32xbf16> to vector<32x32xbf16>
    %cst_91 = arith.constant dense<0.000000e+00> : vector<32x32xf32>
    %174 = tpu.matmul %171, %173, %cst_91 {dimension_numbers = #tpu.dot_dimension_numbers<[1], [0], [0], [1], [0, 0, 1, 1], [], []>} : vector<32x32xbf16>, vector<32x32xbf16>, vector<32x32xf32> -> vector<32x32xf32>
    %175 = vector.broadcast %43 : vector<1x32xf32> to vector<32x32xf32>
    %176 = arith.addf %174, %175 : vector<32x32xf32>
    %cst_92 = arith.constant 0.000000e+00 : f32
    %177 = vector.broadcast %cst_92 : f32 to vector<32x32xf32>
    %178 = arith.maximumf %176, %177 : vector<32x32xf32>
    %179 = arith.truncf %178 : vector<32x32xf32> to vector<32x32xbf16>
    %c1_93 = arith.constant 1 : index
    %c0_94 = arith.constant 0 : index
    %c0_95 = arith.constant 0 : index
    %180 = vector.load %arg8[%c1_93, %c0_94, %c0_95] : memref<6x32x32xbf16, #tpu.memory_space<vmem>>, vector<1x32x32xbf16>
    %181 = vector.shape_cast %180 : vector<1x32x32xbf16> to vector<32x32xbf16>
    %cst_96 = arith.constant dense<0.000000e+00> : vector<32x32xf32>
    %182 = tpu.matmul %179, %181, %cst_96 {dimension_numbers = #tpu.dot_dimension_numbers<[1], [0], [0], [1], [0, 0, 1, 1], [], []>} : vector<32x32xbf16>, vector<32x32xbf16>, vector<32x32xf32> -> vector<32x32xf32>
    %183 = arith.addf %170, %182 : vector<32x32xf32>
    %184 = vector.broadcast %44 : vector<1x32xf32> to vector<32x32xf32>
    %185 = arith.addf %183, %184 : vector<32x32xf32>
    %cst_97 = arith.constant dense<0.000000e+00> : vector<32xf32>
    %186 = vector.multi_reduction <add>, %185, %cst_97 [1] : vector<32x32xf32> to vector<32xf32>
    %187 = vector.shape_cast %186 : vector<32xf32> to vector<32x1xf32>
    %cst_98 = arith.constant 3.200000e+01 : f32
    %188 = vector.broadcast %cst_98 : f32 to vector<32x1xf32>
    %189 = arith.divf %187, %188 : vector<32x1xf32>
    %190 = vector.broadcast %189 : vector<32x1xf32> to vector<32x32xf32>
    %191 = arith.subf %185, %190 : vector<32x32xf32>
    %192 = arith.mulf %191, %191 : vector<32x32xf32>
    %cst_99 = arith.constant dense<0.000000e+00> : vector<32xf32>
    %193 = vector.multi_reduction <add>, %192, %cst_99 [1] : vector<32x32xf32> to vector<32xf32>
    %194 = vector.shape_cast %193 : vector<32xf32> to vector<32x1xf32>
    %cst_100 = arith.constant 3.200000e+01 : f32
    %195 = vector.broadcast %cst_100 : f32 to vector<32x1xf32>
    %196 = arith.divf %194, %195 : vector<32x1xf32>
    %cst_101 = arith.constant 9.99999974E-6 : f32
    %197 = vector.broadcast %cst_101 : f32 to vector<32x1xf32>
    %198 = arith.addf %196, %197 : vector<32x1xf32>
    %199 = math.rsqrt %198 : vector<32x1xf32>
    %200 = vector.broadcast %199 : vector<32x1xf32> to vector<32x32xf32>
    %201 = arith.mulf %191, %200 : vector<32x32xf32>
    %202 = vector.broadcast %47 : vector<1x32xf32> to vector<32x32xf32>
    %203 = arith.mulf %201, %202 : vector<32x32xf32>
    %204 = vector.broadcast %48 : vector<1x32xf32> to vector<32x32xf32>
    %205 = arith.addf %203, %204 : vector<32x32xf32>
    %206 = vector.shape_cast %205 : vector<32x32xf32> to vector<2x16x32xf32>
    %c0_102 = arith.constant 0 : index
    %c0_103 = arith.constant 0 : index
    %c0_104 = arith.constant 0 : index
    %207 = vector.load %arg2[%c0_102, %c0_103, %c0_104] : memref<2x8x8xf32, #tpu.memory_space<vmem>>, vector<2x8x8xf32>
    %208 = vector.extract_strided_slice %0 {offsets = [0, 0, 16], sizes = [2, 1, 8], strides = [1, 1, 1]} : vector<2x1x24xf32> to vector<2x1x8xf32>
    %209 = vector.broadcast %208 : vector<2x1x8xf32> to vector<2x8x8xf32>
    %210 = arith.addf %207, %209 : vector<2x8x8xf32>
    %c1_105 = arith.constant 1 : index
    %c0_106 = arith.constant 0 : index
    %c0_107 = arith.constant 0 : index
    %211 = vector.load %arg9[%c1_105, %c0_106, %c0_107] : memref<3x8x32xf32, #tpu.memory_space<vmem>>, vector<1x8x32xf32>
    %212 = vector.shape_cast %211 : vector<1x8x32xf32> to vector<8x32xf32>
    %213 = vector.extract_strided_slice %212 {offsets = [0, 0], sizes = [1, 32], strides = [1, 1]} : vector<8x32xf32> to vector<1x32xf32>
    %214 = vector.extract_strided_slice %212 {offsets = [1, 0], sizes = [1, 32], strides = [1, 1]} : vector<8x32xf32> to vector<1x32xf32>
    %215 = vector.extract_strided_slice %212 {offsets = [2, 0], sizes = [1, 32], strides = [1, 1]} : vector<8x32xf32> to vector<1x32xf32>
    %216 = vector.extract_strided_slice %212 {offsets = [3, 0], sizes = [1, 32], strides = [1, 1]} : vector<8x32xf32> to vector<1x32xf32>
    %217 = vector.extract_strided_slice %212 {offsets = [4, 0], sizes = [1, 32], strides = [1, 1]} : vector<8x32xf32> to vector<1x32xf32>
    %218 = vector.extract_strided_slice %212 {offsets = [5, 0], sizes = [1, 32], strides = [1, 1]} : vector<8x32xf32> to vector<1x32xf32>
    %219 = vector.extract_strided_slice %212 {offsets = [6, 0], sizes = [1, 32], strides = [1, 1]} : vector<8x32xf32> to vector<1x32xf32>
    %220 = vector.shape_cast %37 : vector<2x8x32xf32> to vector<16x32xf32>
    %221 = arith.truncf %220 : vector<16x32xf32> to vector<16x32xbf16>
    %c6 = arith.constant 6 : index
    %c0_108 = arith.constant 0 : index
    %c0_109 = arith.constant 0 : index
    %222 = vector.load %arg5[%c6, %c0_108, %c0_109] : memref<18x32x16xbf16, #tpu.memory_space<vmem>>, vector<1x32x16xbf16>
    %223 = vector.shape_cast %222 : vector<1x32x16xbf16> to vector<32x16xbf16>
    %cst_110 = arith.constant dense<0.000000e+00> : vector<16x16xf32>
    %224 = tpu.matmul %221, %223, %cst_110 {dimension_numbers = #tpu.dot_dimension_numbers<[1], [0], [0], [1], [0, 0, 1, 1], [], []>} : vector<16x32xbf16>, vector<32x16xbf16>, vector<16x16xf32> -> vector<16x16xf32>
    %c6_111 = arith.constant 6 : index
    %c0_112 = arith.constant 0 : index
    %c0_113 = arith.constant 0 : index
    %225 = vector.load %arg6[%c6_111, %c0_112, %c0_113] : memref<18x1x16xf32, #tpu.memory_space<vmem>>, vector<1x1x16xf32>
    %226 = vector.shape_cast %225 : vector<1x1x16xf32> to vector<1x16xf32>
    %227 = vector.broadcast %226 : vector<1x16xf32> to vector<16x16xf32>
    %228 = arith.addf %224, %227 : vector<16x16xf32>
    %c7 = arith.constant 7 : index
    %c0_114 = arith.constant 0 : index
    %c0_115 = arith.constant 0 : index
    %229 = vector.load %arg5[%c7, %c0_114, %c0_115] : memref<18x32x16xbf16, #tpu.memory_space<vmem>>, vector<1x32x16xbf16>
    %230 = vector.shape_cast %229 : vector<1x32x16xbf16> to vector<32x16xbf16>
    %cst_116 = arith.constant dense<0.000000e+00> : vector<16x16xf32>
    %231 = tpu.matmul %221, %230, %cst_116 {dimension_numbers = #tpu.dot_dimension_numbers<[1], [0], [0], [1], [0, 0, 1, 1], [], []>} : vector<16x32xbf16>, vector<32x16xbf16>, vector<16x16xf32> -> vector<16x16xf32>
    %c7_117 = arith.constant 7 : index
    %c0_118 = arith.constant 0 : index
    %c0_119 = arith.constant 0 : index
    %232 = vector.load %arg6[%c7_117, %c0_118, %c0_119] : memref<18x1x16xf32, #tpu.memory_space<vmem>>, vector<1x1x16xf32>
    %233 = vector.shape_cast %232 : vector<1x1x16xf32> to vector<1x16xf32>
    %234 = vector.broadcast %233 : vector<1x16xf32> to vector<16x16xf32>
    %235 = arith.addf %231, %234 : vector<16x16xf32>
    %c8 = arith.constant 8 : index
    %c0_120 = arith.constant 0 : index
    %c0_121 = arith.constant 0 : index
    %236 = vector.load %arg5[%c8, %c0_120, %c0_121] : memref<18x32x16xbf16, #tpu.memory_space<vmem>>, vector<1x32x16xbf16>
    %237 = vector.shape_cast %236 : vector<1x32x16xbf16> to vector<32x16xbf16>
    %cst_122 = arith.constant dense<0.000000e+00> : vector<16x16xf32>
    %238 = tpu.matmul %221, %237, %cst_122 {dimension_numbers = #tpu.dot_dimension_numbers<[1], [0], [0], [1], [0, 0, 1, 1], [], []>} : vector<16x32xbf16>, vector<32x16xbf16>, vector<16x16xf32> -> vector<16x16xf32>
    %c8_123 = arith.constant 8 : index
    %c0_124 = arith.constant 0 : index
    %c0_125 = arith.constant 0 : index
    %239 = vector.load %arg6[%c8_123, %c0_124, %c0_125] : memref<18x1x16xf32, #tpu.memory_space<vmem>>, vector<1x1x16xf32>
    %240 = vector.shape_cast %239 : vector<1x1x16xf32> to vector<1x16xf32>
    %241 = vector.broadcast %240 : vector<1x16xf32> to vector<16x16xf32>
    %242 = arith.addf %238, %241 : vector<16x16xf32>
    %243 = vector.shape_cast %228 : vector<16x16xf32> to vector<2x8x16xf32>
    %244 = arith.truncf %243 : vector<2x8x16xf32> to vector<2x8x16xbf16>
    %245 = vector.shape_cast %235 : vector<16x16xf32> to vector<2x8x16xf32>
    %246 = arith.truncf %245 : vector<2x8x16xf32> to vector<2x8x16xbf16>
    %247 = vector.shape_cast %242 : vector<16x16xf32> to vector<2x8x16xf32>
    %248 = arith.truncf %247 : vector<2x8x16xf32> to vector<2x8x16xbf16>
    "tpu.trace_start"() <{level = 10 : i32, message = "bqd,bkd->bqk"}> : () -> ()
    %cst_126 = arith.constant dense<0.000000e+00> : vector<2x8x8xf32>
    %249 = tpu.matmul %244, %246, %cst_126 {dimension_numbers = #tpu.dot_dimension_numbers<[2], [2], [1], [1], [0, 0, 0, 1, 1, 1], [0], [0]>} : vector<2x8x16xbf16>, vector<2x8x16xbf16>, vector<2x8x8xf32> -> vector<2x8x8xf32>
    "tpu.trace_stop"() : () -> ()
    %cst_127 = arith.constant 2.500000e-01 : f32
    %250 = vector.broadcast %cst_127 : f32 to vector<2x8x8xf32>
    %251 = arith.mulf %249, %250 : vector<2x8x8xf32>
    %252 = arith.addf %251, %210 : vector<2x8x8xf32>
    %cst_128 = arith.constant dense<0xFF800000> : vector<2x8xf32>
    %253 = vector.multi_reduction <maximumf>, %252, %cst_128 [2] : vector<2x8x8xf32> to vector<2x8xf32>
    %254 = vector.shape_cast %253 : vector<2x8xf32> to vector<2x8x1xf32>
    %255 = vector.broadcast %254 : vector<2x8x1xf32> to vector<2x8x8xf32>
    %256 = arith.subf %252, %255 : vector<2x8x8xf32>
    %257 = math.exp %256 : vector<2x8x8xf32>
    %cst_129 = arith.constant dense<0.000000e+00> : vector<2x8xf32>
    %258 = vector.multi_reduction <add>, %257, %cst_129 [2] : vector<2x8x8xf32> to vector<2x8xf32>
    %259 = vector.shape_cast %258 : vector<2x8xf32> to vector<2x8x1xf32>
    %260 = vector.broadcast %259 : vector<2x8x1xf32> to vector<2x8x8xf32>
    %261 = arith.divf %257, %260 : vector<2x8x8xf32>
    %262 = arith.truncf %261 : vector<2x8x8xf32> to vector<2x8x8xbf16>
    "tpu.trace_start"() <{level = 10 : i32, message = "bqk,bkd->bqd"}> : () -> ()
    %cst_130 = arith.constant dense<0.000000e+00> : vector<2x8x16xf32>
    %263 = tpu.matmul %262, %248, %cst_130 {dimension_numbers = #tpu.dot_dimension_numbers<[2], [1], [1], [2], [0, 0, 0, 1, 1, 2], [0], [0]>} : vector<2x8x8xbf16>, vector<2x8x16xbf16>, vector<2x8x16xf32> -> vector<2x8x16xf32>
    "tpu.trace_stop"() : () -> ()
    %264 = vector.shape_cast %263 : vector<2x8x16xf32> to vector<16x16xf32>
    %265 = arith.truncf %264 : vector<16x16xf32> to vector<16x16xbf16>
    %c2_131 = arith.constant 2 : index
    %c0_132 = arith.constant 0 : index
    %c0_133 = arith.constant 0 : index
    %266 = vector.load %arg7[%c2_131, %c0_132, %c0_133] : memref<6x16x32xbf16, #tpu.memory_space<vmem>>, vector<1x16x32xbf16>
    %267 = vector.shape_cast %266 : vector<1x16x32xbf16> to vector<16x32xbf16>
    %cst_134 = arith.constant dense<0.000000e+00> : vector<16x32xf32>
    %268 = tpu.matmul %265, %267, %cst_134 {dimension_numbers = #tpu.dot_dimension_numbers<[1], [0], [0], [1], [0, 0, 1, 1], [], []>} : vector<16x16xbf16>, vector<16x32xbf16>, vector<16x32xf32> -> vector<16x32xf32>
    %c9 = arith.constant 9 : index
    %c0_135 = arith.constant 0 : index
    %c0_136 = arith.constant 0 : index
    %269 = vector.load %arg5[%c9, %c0_135, %c0_136] : memref<18x32x16xbf16, #tpu.memory_space<vmem>>, vector<1x32x16xbf16>
    %270 = vector.shape_cast %269 : vector<1x32x16xbf16> to vector<32x16xbf16>
    %cst_137 = arith.constant dense<0.000000e+00> : vector<16x16xf32>
    %271 = tpu.matmul %221, %270, %cst_137 {dimension_numbers = #tpu.dot_dimension_numbers<[1], [0], [0], [1], [0, 0, 1, 1], [], []>} : vector<16x32xbf16>, vector<32x16xbf16>, vector<16x16xf32> -> vector<16x16xf32>
    %c9_138 = arith.constant 9 : index
    %c0_139 = arith.constant 0 : index
    %c0_140 = arith.constant 0 : index
    %272 = vector.load %arg6[%c9_138, %c0_139, %c0_140] : memref<18x1x16xf32, #tpu.memory_space<vmem>>, vector<1x1x16xf32>
    %273 = vector.shape_cast %272 : vector<1x1x16xf32> to vector<1x16xf32>
    %274 = vector.broadcast %273 : vector<1x16xf32> to vector<16x16xf32>
    %275 = arith.addf %271, %274 : vector<16x16xf32>
    %c10 = arith.constant 10 : index
    %c0_141 = arith.constant 0 : index
    %c0_142 = arith.constant 0 : index
    %276 = vector.load %arg5[%c10, %c0_141, %c0_142] : memref<18x32x16xbf16, #tpu.memory_space<vmem>>, vector<1x32x16xbf16>
    %277 = vector.shape_cast %276 : vector<1x32x16xbf16> to vector<32x16xbf16>
    %cst_143 = arith.constant dense<0.000000e+00> : vector<16x16xf32>
    %278 = tpu.matmul %221, %277, %cst_143 {dimension_numbers = #tpu.dot_dimension_numbers<[1], [0], [0], [1], [0, 0, 1, 1], [], []>} : vector<16x32xbf16>, vector<32x16xbf16>, vector<16x16xf32> -> vector<16x16xf32>
    %c10_144 = arith.constant 10 : index
    %c0_145 = arith.constant 0 : index
    %c0_146 = arith.constant 0 : index
    %279 = vector.load %arg6[%c10_144, %c0_145, %c0_146] : memref<18x1x16xf32, #tpu.memory_space<vmem>>, vector<1x1x16xf32>
    %280 = vector.shape_cast %279 : vector<1x1x16xf32> to vector<1x16xf32>
    %281 = vector.broadcast %280 : vector<1x16xf32> to vector<16x16xf32>
    %282 = arith.addf %278, %281 : vector<16x16xf32>
    %c11 = arith.constant 11 : index
    %c0_147 = arith.constant 0 : index
    %c0_148 = arith.constant 0 : index
    %283 = vector.load %arg5[%c11, %c0_147, %c0_148] : memref<18x32x16xbf16, #tpu.memory_space<vmem>>, vector<1x32x16xbf16>
    %284 = vector.shape_cast %283 : vector<1x32x16xbf16> to vector<32x16xbf16>
    %cst_149 = arith.constant dense<0.000000e+00> : vector<16x16xf32>
    %285 = tpu.matmul %221, %284, %cst_149 {dimension_numbers = #tpu.dot_dimension_numbers<[1], [0], [0], [1], [0, 0, 1, 1], [], []>} : vector<16x32xbf16>, vector<32x16xbf16>, vector<16x16xf32> -> vector<16x16xf32>
    %c11_150 = arith.constant 11 : index
    %c0_151 = arith.constant 0 : index
    %c0_152 = arith.constant 0 : index
    %286 = vector.load %arg6[%c11_150, %c0_151, %c0_152] : memref<18x1x16xf32, #tpu.memory_space<vmem>>, vector<1x1x16xf32>
    %287 = vector.shape_cast %286 : vector<1x1x16xf32> to vector<1x16xf32>
    %288 = vector.broadcast %287 : vector<1x16xf32> to vector<16x16xf32>
    %289 = arith.addf %285, %288 : vector<16x16xf32>
    %290 = vector.shape_cast %275 : vector<16x16xf32> to vector<2x8x16xf32>
    %291 = arith.truncf %290 : vector<2x8x16xf32> to vector<2x8x16xbf16>
    %292 = vector.shape_cast %282 : vector<16x16xf32> to vector<2x8x16xf32>
    %293 = arith.truncf %292 : vector<2x8x16xf32> to vector<2x8x16xbf16>
    %294 = vector.shape_cast %289 : vector<16x16xf32> to vector<2x8x16xf32>
    %295 = arith.truncf %294 : vector<2x8x16xf32> to vector<2x8x16xbf16>
    "tpu.trace_start"() <{level = 10 : i32, message = "bqd,bkd->bqk"}> : () -> ()
    %cst_153 = arith.constant dense<0.000000e+00> : vector<2x8x8xf32>
    %296 = tpu.matmul %291, %293, %cst_153 {dimension_numbers = #tpu.dot_dimension_numbers<[2], [2], [1], [1], [0, 0, 0, 1, 1, 1], [0], [0]>} : vector<2x8x16xbf16>, vector<2x8x16xbf16>, vector<2x8x8xf32> -> vector<2x8x8xf32>
    "tpu.trace_stop"() : () -> ()
    %cst_154 = arith.constant 2.500000e-01 : f32
    %297 = vector.broadcast %cst_154 : f32 to vector<2x8x8xf32>
    %298 = arith.mulf %296, %297 : vector<2x8x8xf32>
    %299 = arith.addf %298, %210 : vector<2x8x8xf32>
    %cst_155 = arith.constant dense<0xFF800000> : vector<2x8xf32>
    %300 = vector.multi_reduction <maximumf>, %299, %cst_155 [2] : vector<2x8x8xf32> to vector<2x8xf32>
    %301 = vector.shape_cast %300 : vector<2x8xf32> to vector<2x8x1xf32>
    %302 = vector.broadcast %301 : vector<2x8x1xf32> to vector<2x8x8xf32>
    %303 = arith.subf %299, %302 : vector<2x8x8xf32>
    %304 = math.exp %303 : vector<2x8x8xf32>
    %cst_156 = arith.constant dense<0.000000e+00> : vector<2x8xf32>
    %305 = vector.multi_reduction <add>, %304, %cst_156 [2] : vector<2x8x8xf32> to vector<2x8xf32>
    %306 = vector.shape_cast %305 : vector<2x8xf32> to vector<2x8x1xf32>
    %307 = vector.broadcast %306 : vector<2x8x1xf32> to vector<2x8x8xf32>
    %308 = arith.divf %304, %307 : vector<2x8x8xf32>
    %309 = arith.truncf %308 : vector<2x8x8xf32> to vector<2x8x8xbf16>
    "tpu.trace_start"() <{level = 10 : i32, message = "bqk,bkd->bqd"}> : () -> ()
    %cst_157 = arith.constant dense<0.000000e+00> : vector<2x8x16xf32>
    %310 = tpu.matmul %309, %295, %cst_157 {dimension_numbers = #tpu.dot_dimension_numbers<[2], [1], [1], [2], [0, 0, 0, 1, 1, 2], [0], [0]>} : vector<2x8x8xbf16>, vector<2x8x16xbf16>, vector<2x8x16xf32> -> vector<2x8x16xf32>
    "tpu.trace_stop"() : () -> ()
    %311 = vector.shape_cast %310 : vector<2x8x16xf32> to vector<16x16xf32>
    %312 = arith.truncf %311 : vector<16x16xf32> to vector<16x16xbf16>
    %c3_158 = arith.constant 3 : index
    %c0_159 = arith.constant 0 : index
    %c0_160 = arith.constant 0 : index
    %313 = vector.load %arg7[%c3_158, %c0_159, %c0_160] : memref<6x16x32xbf16, #tpu.memory_space<vmem>>, vector<1x16x32xbf16>
    %314 = vector.shape_cast %313 : vector<1x16x32xbf16> to vector<16x32xbf16>
    %cst_161 = arith.constant dense<0.000000e+00> : vector<16x32xf32>
    %315 = tpu.matmul %312, %314, %cst_161 {dimension_numbers = #tpu.dot_dimension_numbers<[1], [0], [0], [1], [0, 0, 1, 1], [], []>} : vector<16x16xbf16>, vector<16x32xbf16>, vector<16x32xf32> -> vector<16x32xf32>
    %316 = arith.addf %268, %315 : vector<16x32xf32>
    %317 = vector.broadcast %213 : vector<1x32xf32> to vector<16x32xf32>
    %318 = arith.addf %316, %317 : vector<16x32xf32>
    %319 = arith.addf %220, %318 : vector<16x32xf32>
    %cst_162 = arith.constant dense<0.000000e+00> : vector<16xf32>
    %320 = vector.multi_reduction <add>, %319, %cst_162 [1] : vector<16x32xf32> to vector<16xf32>
    %321 = vector.shape_cast %320 : vector<16xf32> to vector<16x1xf32>
    %cst_163 = arith.constant 3.200000e+01 : f32
    %322 = vector.broadcast %cst_163 : f32 to vector<16x1xf32>
    %323 = arith.divf %321, %322 : vector<16x1xf32>
    %324 = vector.broadcast %323 : vector<16x1xf32> to vector<16x32xf32>
    %325 = arith.subf %319, %324 : vector<16x32xf32>
    %326 = arith.mulf %325, %325 : vector<16x32xf32>
    %cst_164 = arith.constant dense<0.000000e+00> : vector<16xf32>
    %327 = vector.multi_reduction <add>, %326, %cst_164 [1] : vector<16x32xf32> to vector<16xf32>
    %328 = vector.shape_cast %327 : vector<16xf32> to vector<16x1xf32>
    %cst_165 = arith.constant 3.200000e+01 : f32
    %329 = vector.broadcast %cst_165 : f32 to vector<16x1xf32>
    %330 = arith.divf %328, %329 : vector<16x1xf32>
    %cst_166 = arith.constant 9.99999974E-6 : f32
    %331 = vector.broadcast %cst_166 : f32 to vector<16x1xf32>
    %332 = arith.addf %330, %331 : vector<16x1xf32>
    %333 = math.rsqrt %332 : vector<16x1xf32>
    %334 = vector.broadcast %333 : vector<16x1xf32> to vector<16x32xf32>
    %335 = arith.mulf %325, %334 : vector<16x32xf32>
    %336 = vector.broadcast %216 : vector<1x32xf32> to vector<16x32xf32>
    %337 = arith.mulf %335, %336 : vector<16x32xf32>
    %338 = vector.broadcast %217 : vector<1x32xf32> to vector<16x32xf32>
    %339 = arith.addf %337, %338 : vector<16x32xf32>
    %340 = arith.truncf %339 : vector<16x32xf32> to vector<16x32xbf16>
    %c2_167 = arith.constant 2 : index
    %c0_168 = arith.constant 0 : index
    %c0_169 = arith.constant 0 : index
    %341 = vector.load %arg8[%c2_167, %c0_168, %c0_169] : memref<6x32x32xbf16, #tpu.memory_space<vmem>>, vector<1x32x32xbf16>
    %342 = vector.shape_cast %341 : vector<1x32x32xbf16> to vector<32x32xbf16>
    %cst_170 = arith.constant dense<0.000000e+00> : vector<16x32xf32>
    %343 = tpu.matmul %340, %342, %cst_170 {dimension_numbers = #tpu.dot_dimension_numbers<[1], [0], [0], [1], [0, 0, 1, 1], [], []>} : vector<16x32xbf16>, vector<32x32xbf16>, vector<16x32xf32> -> vector<16x32xf32>
    %344 = vector.broadcast %214 : vector<1x32xf32> to vector<16x32xf32>
    %345 = arith.addf %343, %344 : vector<16x32xf32>
    %cst_171 = arith.constant 0.000000e+00 : f32
    %346 = vector.broadcast %cst_171 : f32 to vector<16x32xf32>
    %347 = arith.maximumf %345, %346 : vector<16x32xf32>
    %348 = arith.truncf %347 : vector<16x32xf32> to vector<16x32xbf16>
    %c3_172 = arith.constant 3 : index
    %c0_173 = arith.constant 0 : index
    %c0_174 = arith.constant 0 : index
    %349 = vector.load %arg8[%c3_172, %c0_173, %c0_174] : memref<6x32x32xbf16, #tpu.memory_space<vmem>>, vector<1x32x32xbf16>
    %350 = vector.shape_cast %349 : vector<1x32x32xbf16> to vector<32x32xbf16>
    %cst_175 = arith.constant dense<0.000000e+00> : vector<16x32xf32>
    %351 = tpu.matmul %348, %350, %cst_175 {dimension_numbers = #tpu.dot_dimension_numbers<[1], [0], [0], [1], [0, 0, 1, 1], [], []>} : vector<16x32xbf16>, vector<32x32xbf16>, vector<16x32xf32> -> vector<16x32xf32>
    %352 = arith.addf %339, %351 : vector<16x32xf32>
    %353 = vector.broadcast %215 : vector<1x32xf32> to vector<16x32xf32>
    %354 = arith.addf %352, %353 : vector<16x32xf32>
    %cst_176 = arith.constant dense<0.000000e+00> : vector<16xf32>
    %355 = vector.multi_reduction <add>, %354, %cst_176 [1] : vector<16x32xf32> to vector<16xf32>
    %356 = vector.shape_cast %355 : vector<16xf32> to vector<16x1xf32>
    %cst_177 = arith.constant 3.200000e+01 : f32
    %357 = vector.broadcast %cst_177 : f32 to vector<16x1xf32>
    %358 = arith.divf %356, %357 : vector<16x1xf32>
    %359 = vector.broadcast %358 : vector<16x1xf32> to vector<16x32xf32>
    %360 = arith.subf %354, %359 : vector<16x32xf32>
    %361 = arith.mulf %360, %360 : vector<16x32xf32>
    %cst_178 = arith.constant dense<0.000000e+00> : vector<16xf32>
    %362 = vector.multi_reduction <add>, %361, %cst_178 [1] : vector<16x32xf32> to vector<16xf32>
    %363 = vector.shape_cast %362 : vector<16xf32> to vector<16x1xf32>
    %cst_179 = arith.constant 3.200000e+01 : f32
    %364 = vector.broadcast %cst_179 : f32 to vector<16x1xf32>
    %365 = arith.divf %363, %364 : vector<16x1xf32>
    %cst_180 = arith.constant 9.99999974E-6 : f32
    %366 = vector.broadcast %cst_180 : f32 to vector<16x1xf32>
    %367 = arith.addf %365, %366 : vector<16x1xf32>
    %368 = math.rsqrt %367 : vector<16x1xf32>
    %369 = vector.broadcast %368 : vector<16x1xf32> to vector<16x32xf32>
    %370 = arith.mulf %360, %369 : vector<16x32xf32>
    %371 = vector.broadcast %218 : vector<1x32xf32> to vector<16x32xf32>
    %372 = arith.mulf %370, %371 : vector<16x32xf32>
    %373 = vector.broadcast %219 : vector<1x32xf32> to vector<16x32xf32>
    %374 = arith.addf %372, %373 : vector<16x32xf32>
    %375 = vector.shape_cast %374 : vector<16x32xf32> to vector<2x8x32xf32>
    %376 = tpu.concatenate %206, %375 in 1 : vector<2x16x32xf32>, vector<2x8x32xf32> -> vector<2x24x32xf32>
    %c2_181 = arith.constant 2 : index
    %c0_182 = arith.constant 0 : index
    %c0_183 = arith.constant 0 : index
    %377 = vector.load %arg9[%c2_181, %c0_182, %c0_183] : memref<3x8x32xf32, #tpu.memory_space<vmem>>, vector<1x8x32xf32>
    %378 = vector.shape_cast %377 : vector<1x8x32xf32> to vector<8x32xf32>
    %379 = vector.extract_strided_slice %378 {offsets = [0, 0], sizes = [1, 32], strides = [1, 1]} : vector<8x32xf32> to vector<1x32xf32>
    %380 = vector.extract_strided_slice %378 {offsets = [1, 0], sizes = [1, 32], strides = [1, 1]} : vector<8x32xf32> to vector<1x32xf32>
    %381 = vector.extract_strided_slice %378 {offsets = [2, 0], sizes = [1, 32], strides = [1, 1]} : vector<8x32xf32> to vector<1x32xf32>
    %382 = vector.extract_strided_slice %378 {offsets = [3, 0], sizes = [1, 32], strides = [1, 1]} : vector<8x32xf32> to vector<1x32xf32>
    %383 = vector.extract_strided_slice %378 {offsets = [4, 0], sizes = [1, 32], strides = [1, 1]} : vector<8x32xf32> to vector<1x32xf32>
    %384 = vector.extract_strided_slice %378 {offsets = [5, 0], sizes = [1, 32], strides = [1, 1]} : vector<8x32xf32> to vector<1x32xf32>
    %385 = vector.extract_strided_slice %378 {offsets = [6, 0], sizes = [1, 32], strides = [1, 1]} : vector<8x32xf32> to vector<1x32xf32>
    %386 = vector.shape_cast %376 : vector<2x24x32xf32> to vector<48x32xf32>
    %387 = arith.truncf %386 : vector<48x32xf32> to vector<48x32xbf16>
    %c12 = arith.constant 12 : index
    %c0_184 = arith.constant 0 : index
    %c0_185 = arith.constant 0 : index
    %388 = vector.load %arg5[%c12, %c0_184, %c0_185] : memref<18x32x16xbf16, #tpu.memory_space<vmem>>, vector<1x32x16xbf16>
    %389 = vector.shape_cast %388 : vector<1x32x16xbf16> to vector<32x16xbf16>
    %cst_186 = arith.constant dense<0.000000e+00> : vector<48x16xf32>
    %390 = tpu.matmul %387, %389, %cst_186 {dimension_numbers = #tpu.dot_dimension_numbers<[1], [0], [0], [1], [0, 0, 1, 1], [], []>} : vector<48x32xbf16>, vector<32x16xbf16>, vector<48x16xf32> -> vector<48x16xf32>
    %c12_187 = arith.constant 12 : index
    %c0_188 = arith.constant 0 : index
    %c0_189 = arith.constant 0 : index
    %391 = vector.load %arg6[%c12_187, %c0_188, %c0_189] : memref<18x1x16xf32, #tpu.memory_space<vmem>>, vector<1x1x16xf32>
    %392 = vector.shape_cast %391 : vector<1x1x16xf32> to vector<1x16xf32>
    %393 = vector.broadcast %392 : vector<1x16xf32> to vector<48x16xf32>
    %394 = arith.addf %390, %393 : vector<48x16xf32>
    %c13 = arith.constant 13 : index
    %c0_190 = arith.constant 0 : index
    %c0_191 = arith.constant 0 : index
    %395 = vector.load %arg5[%c13, %c0_190, %c0_191] : memref<18x32x16xbf16, #tpu.memory_space<vmem>>, vector<1x32x16xbf16>
    %396 = vector.shape_cast %395 : vector<1x32x16xbf16> to vector<32x16xbf16>
    %cst_192 = arith.constant dense<0.000000e+00> : vector<48x16xf32>
    %397 = tpu.matmul %387, %396, %cst_192 {dimension_numbers = #tpu.dot_dimension_numbers<[1], [0], [0], [1], [0, 0, 1, 1], [], []>} : vector<48x32xbf16>, vector<32x16xbf16>, vector<48x16xf32> -> vector<48x16xf32>
    %c13_193 = arith.constant 13 : index
    %c0_194 = arith.constant 0 : index
    %c0_195 = arith.constant 0 : index
    %398 = vector.load %arg6[%c13_193, %c0_194, %c0_195] : memref<18x1x16xf32, #tpu.memory_space<vmem>>, vector<1x1x16xf32>
    %399 = vector.shape_cast %398 : vector<1x1x16xf32> to vector<1x16xf32>
    %400 = vector.broadcast %399 : vector<1x16xf32> to vector<48x16xf32>
    %401 = arith.addf %397, %400 : vector<48x16xf32>
    %c14 = arith.constant 14 : index
    %c0_196 = arith.constant 0 : index
    %c0_197 = arith.constant 0 : index
    %402 = vector.load %arg5[%c14, %c0_196, %c0_197] : memref<18x32x16xbf16, #tpu.memory_space<vmem>>, vector<1x32x16xbf16>
    %403 = vector.shape_cast %402 : vector<1x32x16xbf16> to vector<32x16xbf16>
    %cst_198 = arith.constant dense<0.000000e+00> : vector<48x16xf32>
    %404 = tpu.matmul %387, %403, %cst_198 {dimension_numbers = #tpu.dot_dimension_numbers<[1], [0], [0], [1], [0, 0, 1, 1], [], []>} : vector<48x32xbf16>, vector<32x16xbf16>, vector<48x16xf32> -> vector<48x16xf32>
    %c14_199 = arith.constant 14 : index
    %c0_200 = arith.constant 0 : index
    %c0_201 = arith.constant 0 : index
    %405 = vector.load %arg6[%c14_199, %c0_200, %c0_201] : memref<18x1x16xf32, #tpu.memory_space<vmem>>, vector<1x1x16xf32>
    %406 = vector.shape_cast %405 : vector<1x1x16xf32> to vector<1x16xf32>
    %407 = vector.broadcast %406 : vector<1x16xf32> to vector<48x16xf32>
    %408 = arith.addf %404, %407 : vector<48x16xf32>
    %409 = vector.shape_cast %394 : vector<48x16xf32> to vector<2x24x16xf32>
    %410 = arith.truncf %409 : vector<2x24x16xf32> to vector<2x24x16xbf16>
    %411 = vector.shape_cast %401 : vector<48x16xf32> to vector<2x24x16xf32>
    %412 = arith.truncf %411 : vector<2x24x16xf32> to vector<2x24x16xbf16>
    %413 = vector.shape_cast %408 : vector<48x16xf32> to vector<2x24x16xf32>
    %414 = arith.truncf %413 : vector<2x24x16xf32> to vector<2x24x16xbf16>
    "tpu.trace_start"() <{level = 10 : i32, message = "bqd,bkd->bqk"}> : () -> ()
    %cst_202 = arith.constant dense<0.000000e+00> : vector<2x24x24xf32>
    %415 = tpu.matmul %410, %412, %cst_202 {dimension_numbers = #tpu.dot_dimension_numbers<[2], [2], [1], [1], [0, 0, 0, 1, 1, 1], [0], [0]>} : vector<2x24x16xbf16>, vector<2x24x16xbf16>, vector<2x24x24xf32> -> vector<2x24x24xf32>
    "tpu.trace_stop"() : () -> ()
    %cst_203 = arith.constant 2.500000e-01 : f32
    %416 = vector.broadcast %cst_203 : f32 to vector<2x24x24xf32>
    %417 = arith.mulf %415, %416 : vector<2x24x24xf32>
    %418 = vector.broadcast %0 : vector<2x1x24xf32> to vector<2x24x24xf32>
    %419 = arith.addf %417, %418 : vector<2x24x24xf32>
    %cst_204 = arith.constant dense<0xFF800000> : vector<2x24xf32>
    %420 = vector.multi_reduction <maximumf>, %419, %cst_204 [2] : vector<2x24x24xf32> to vector<2x24xf32>
    %421 = vector.shape_cast %420 : vector<2x24xf32> to vector<2x24x1xf32>
    %422 = vector.broadcast %421 : vector<2x24x1xf32> to vector<2x24x24xf32>
    %423 = arith.subf %419, %422 : vector<2x24x24xf32>
    %424 = math.exp %423 : vector<2x24x24xf32>
    %cst_205 = arith.constant dense<0.000000e+00> : vector<2x24xf32>
    %425 = vector.multi_reduction <add>, %424, %cst_205 [2] : vector<2x24x24xf32> to vector<2x24xf32>
    %426 = vector.shape_cast %425 : vector<2x24xf32> to vector<2x24x1xf32>
    %427 = vector.broadcast %426 : vector<2x24x1xf32> to vector<2x24x24xf32>
    %428 = arith.divf %424, %427 : vector<2x24x24xf32>
    %429 = arith.truncf %428 : vector<2x24x24xf32> to vector<2x24x24xbf16>
    "tpu.trace_start"() <{level = 10 : i32, message = "bqk,bkd->bqd"}> : () -> ()
    %cst_206 = arith.constant dense<0.000000e+00> : vector<2x24x16xf32>
    %430 = tpu.matmul %429, %414, %cst_206 {dimension_numbers = #tpu.dot_dimension_numbers<[2], [1], [1], [2], [0, 0, 0, 1, 1, 2], [0], [0]>} : vector<2x24x24xbf16>, vector<2x24x16xbf16>, vector<2x24x16xf32> -> vector<2x24x16xf32>
    "tpu.trace_stop"() : () -> ()
    %431 = vector.shape_cast %430 : vector<2x24x16xf32> to vector<48x16xf32>
    %432 = arith.truncf %431 : vector<48x16xf32> to vector<48x16xbf16>
    %c4_207 = arith.constant 4 : index
    %c0_208 = arith.constant 0 : index
    %c0_209 = arith.constant 0 : index
    %433 = vector.load %arg7[%c4_207, %c0_208, %c0_209] : memref<6x16x32xbf16, #tpu.memory_space<vmem>>, vector<1x16x32xbf16>
    %434 = vector.shape_cast %433 : vector<1x16x32xbf16> to vector<16x32xbf16>
    %cst_210 = arith.constant dense<0.000000e+00> : vector<48x32xf32>
    %435 = tpu.matmul %432, %434, %cst_210 {dimension_numbers = #tpu.dot_dimension_numbers<[1], [0], [0], [1], [0, 0, 1, 1], [], []>} : vector<48x16xbf16>, vector<16x32xbf16>, vector<48x32xf32> -> vector<48x32xf32>
    %c15 = arith.constant 15 : index
    %c0_211 = arith.constant 0 : index
    %c0_212 = arith.constant 0 : index
    %436 = vector.load %arg5[%c15, %c0_211, %c0_212] : memref<18x32x16xbf16, #tpu.memory_space<vmem>>, vector<1x32x16xbf16>
    %437 = vector.shape_cast %436 : vector<1x32x16xbf16> to vector<32x16xbf16>
    %cst_213 = arith.constant dense<0.000000e+00> : vector<48x16xf32>
    %438 = tpu.matmul %387, %437, %cst_213 {dimension_numbers = #tpu.dot_dimension_numbers<[1], [0], [0], [1], [0, 0, 1, 1], [], []>} : vector<48x32xbf16>, vector<32x16xbf16>, vector<48x16xf32> -> vector<48x16xf32>
    %c15_214 = arith.constant 15 : index
    %c0_215 = arith.constant 0 : index
    %c0_216 = arith.constant 0 : index
    %439 = vector.load %arg6[%c15_214, %c0_215, %c0_216] : memref<18x1x16xf32, #tpu.memory_space<vmem>>, vector<1x1x16xf32>
    %440 = vector.shape_cast %439 : vector<1x1x16xf32> to vector<1x16xf32>
    %441 = vector.broadcast %440 : vector<1x16xf32> to vector<48x16xf32>
    %442 = arith.addf %438, %441 : vector<48x16xf32>
    %c16 = arith.constant 16 : index
    %c0_217 = arith.constant 0 : index
    %c0_218 = arith.constant 0 : index
    %443 = vector.load %arg5[%c16, %c0_217, %c0_218] : memref<18x32x16xbf16, #tpu.memory_space<vmem>>, vector<1x32x16xbf16>
    %444 = vector.shape_cast %443 : vector<1x32x16xbf16> to vector<32x16xbf16>
    %cst_219 = arith.constant dense<0.000000e+00> : vector<48x16xf32>
    %445 = tpu.matmul %387, %444, %cst_219 {dimension_numbers = #tpu.dot_dimension_numbers<[1], [0], [0], [1], [0, 0, 1, 1], [], []>} : vector<48x32xbf16>, vector<32x16xbf16>, vector<48x16xf32> -> vector<48x16xf32>
    %c16_220 = arith.constant 16 : index
    %c0_221 = arith.constant 0 : index
    %c0_222 = arith.constant 0 : index
    %446 = vector.load %arg6[%c16_220, %c0_221, %c0_222] : memref<18x1x16xf32, #tpu.memory_space<vmem>>, vector<1x1x16xf32>
    %447 = vector.shape_cast %446 : vector<1x1x16xf32> to vector<1x16xf32>
    %448 = vector.broadcast %447 : vector<1x16xf32> to vector<48x16xf32>
    %449 = arith.addf %445, %448 : vector<48x16xf32>
    %c17 = arith.constant 17 : index
    %c0_223 = arith.constant 0 : index
    %c0_224 = arith.constant 0 : index
    %450 = vector.load %arg5[%c17, %c0_223, %c0_224] : memref<18x32x16xbf16, #tpu.memory_space<vmem>>, vector<1x32x16xbf16>
    %451 = vector.shape_cast %450 : vector<1x32x16xbf16> to vector<32x16xbf16>
    %cst_225 = arith.constant dense<0.000000e+00> : vector<48x16xf32>
    %452 = tpu.matmul %387, %451, %cst_225 {dimension_numbers = #tpu.dot_dimension_numbers<[1], [0], [0], [1], [0, 0, 1, 1], [], []>} : vector<48x32xbf16>, vector<32x16xbf16>, vector<48x16xf32> -> vector<48x16xf32>
    %c17_226 = arith.constant 17 : index
    %c0_227 = arith.constant 0 : index
    %c0_228 = arith.constant 0 : index
    %453 = vector.load %arg6[%c17_226, %c0_227, %c0_228] : memref<18x1x16xf32, #tpu.memory_space<vmem>>, vector<1x1x16xf32>
    %454 = vector.shape_cast %453 : vector<1x1x16xf32> to vector<1x16xf32>
    %455 = vector.broadcast %454 : vector<1x16xf32> to vector<48x16xf32>
    %456 = arith.addf %452, %455 : vector<48x16xf32>
    %457 = vector.shape_cast %442 : vector<48x16xf32> to vector<2x24x16xf32>
    %458 = arith.truncf %457 : vector<2x24x16xf32> to vector<2x24x16xbf16>
    %459 = vector.shape_cast %449 : vector<48x16xf32> to vector<2x24x16xf32>
    %460 = arith.truncf %459 : vector<2x24x16xf32> to vector<2x24x16xbf16>
    %461 = vector.shape_cast %456 : vector<48x16xf32> to vector<2x24x16xf32>
    %462 = arith.truncf %461 : vector<2x24x16xf32> to vector<2x24x16xbf16>
    "tpu.trace_start"() <{level = 10 : i32, message = "bqd,bkd->bqk"}> : () -> ()
    %cst_229 = arith.constant dense<0.000000e+00> : vector<2x24x24xf32>
    %463 = tpu.matmul %458, %460, %cst_229 {dimension_numbers = #tpu.dot_dimension_numbers<[2], [2], [1], [1], [0, 0, 0, 1, 1, 1], [0], [0]>} : vector<2x24x16xbf16>, vector<2x24x16xbf16>, vector<2x24x24xf32> -> vector<2x24x24xf32>
    "tpu.trace_stop"() : () -> ()
    %cst_230 = arith.constant 2.500000e-01 : f32
    %464 = vector.broadcast %cst_230 : f32 to vector<2x24x24xf32>
    %465 = arith.mulf %463, %464 : vector<2x24x24xf32>
    %466 = vector.broadcast %0 : vector<2x1x24xf32> to vector<2x24x24xf32>
    %467 = arith.addf %465, %466 : vector<2x24x24xf32>
    %cst_231 = arith.constant dense<0xFF800000> : vector<2x24xf32>
    %468 = vector.multi_reduction <maximumf>, %467, %cst_231 [2] : vector<2x24x24xf32> to vector<2x24xf32>
    %469 = vector.shape_cast %468 : vector<2x24xf32> to vector<2x24x1xf32>
    %470 = vector.broadcast %469 : vector<2x24x1xf32> to vector<2x24x24xf32>
    %471 = arith.subf %467, %470 : vector<2x24x24xf32>
    %472 = math.exp %471 : vector<2x24x24xf32>
    %cst_232 = arith.constant dense<0.000000e+00> : vector<2x24xf32>
    %473 = vector.multi_reduction <add>, %472, %cst_232 [2] : vector<2x24x24xf32> to vector<2x24xf32>
    %474 = vector.shape_cast %473 : vector<2x24xf32> to vector<2x24x1xf32>
    %475 = vector.broadcast %474 : vector<2x24x1xf32> to vector<2x24x24xf32>
    %476 = arith.divf %472, %475 : vector<2x24x24xf32>
    %477 = arith.truncf %476 : vector<2x24x24xf32> to vector<2x24x24xbf16>
    "tpu.trace_start"() <{level = 10 : i32, message = "bqk,bkd->bqd"}> : () -> ()
    %cst_233 = arith.constant dense<0.000000e+00> : vector<2x24x16xf32>
    %478 = tpu.matmul %477, %462, %cst_233 {dimension_numbers = #tpu.dot_dimension_numbers<[2], [1], [1], [2], [0, 0, 0, 1, 1, 2], [0], [0]>} : vector<2x24x24xbf16>, vector<2x24x16xbf16>, vector<2x24x16xf32> -> vector<2x24x16xf32>
    "tpu.trace_stop"() : () -> ()
    %479 = vector.shape_cast %478 : vector<2x24x16xf32> to vector<48x16xf32>
    %480 = arith.truncf %479 : vector<48x16xf32> to vector<48x16xbf16>
    %c5_234 = arith.constant 5 : index
    %c0_235 = arith.constant 0 : index
    %c0_236 = arith.constant 0 : index
    %481 = vector.load %arg7[%c5_234, %c0_235, %c0_236] : memref<6x16x32xbf16, #tpu.memory_space<vmem>>, vector<1x16x32xbf16>
    %482 = vector.shape_cast %481 : vector<1x16x32xbf16> to vector<16x32xbf16>
    %cst_237 = arith.constant dense<0.000000e+00> : vector<48x32xf32>
    %483 = tpu.matmul %480, %482, %cst_237 {dimension_numbers = #tpu.dot_dimension_numbers<[1], [0], [0], [1], [0, 0, 1, 1], [], []>} : vector<48x16xbf16>, vector<16x32xbf16>, vector<48x32xf32> -> vector<48x32xf32>
    %484 = arith.addf %435, %483 : vector<48x32xf32>
    %485 = vector.broadcast %379 : vector<1x32xf32> to vector<48x32xf32>
    %486 = arith.addf %484, %485 : vector<48x32xf32>
    %487 = arith.addf %386, %486 : vector<48x32xf32>
    %cst_238 = arith.constant dense<0.000000e+00> : vector<48xf32>
    %488 = vector.multi_reduction <add>, %487, %cst_238 [1] : vector<48x32xf32> to vector<48xf32>
    %489 = vector.shape_cast %488 : vector<48xf32> to vector<48x1xf32>
    %cst_239 = arith.constant 3.200000e+01 : f32
    %490 = vector.broadcast %cst_239 : f32 to vector<48x1xf32>
    %491 = arith.divf %489, %490 : vector<48x1xf32>
    %492 = vector.broadcast %491 : vector<48x1xf32> to vector<48x32xf32>
    %493 = arith.subf %487, %492 : vector<48x32xf32>
    %494 = arith.mulf %493, %493 : vector<48x32xf32>
    %cst_240 = arith.constant dense<0.000000e+00> : vector<48xf32>
    %495 = vector.multi_reduction <add>, %494, %cst_240 [1] : vector<48x32xf32> to vector<48xf32>
    %496 = vector.shape_cast %495 : vector<48xf32> to vector<48x1xf32>
    %cst_241 = arith.constant 3.200000e+01 : f32
    %497 = vector.broadcast %cst_241 : f32 to vector<48x1xf32>
    %498 = arith.divf %496, %497 : vector<48x1xf32>
    %cst_242 = arith.constant 9.99999974E-6 : f32
    %499 = vector.broadcast %cst_242 : f32 to vector<48x1xf32>
    %500 = arith.addf %498, %499 : vector<48x1xf32>
    %501 = math.rsqrt %500 : vector<48x1xf32>
    %502 = vector.broadcast %501 : vector<48x1xf32> to vector<48x32xf32>
    %503 = arith.mulf %493, %502 : vector<48x32xf32>
    %504 = vector.broadcast %382 : vector<1x32xf32> to vector<48x32xf32>
    %505 = arith.mulf %503, %504 : vector<48x32xf32>
    %506 = vector.broadcast %383 : vector<1x32xf32> to vector<48x32xf32>
    %507 = arith.addf %505, %506 : vector<48x32xf32>
    %508 = arith.truncf %507 : vector<48x32xf32> to vector<48x32xbf16>
    %c4_243 = arith.constant 4 : index
    %c0_244 = arith.constant 0 : index
    %c0_245 = arith.constant 0 : index
    %509 = vector.load %arg8[%c4_243, %c0_244, %c0_245] : memref<6x32x32xbf16, #tpu.memory_space<vmem>>, vector<1x32x32xbf16>
    %510 = vector.shape_cast %509 : vector<1x32x32xbf16> to vector<32x32xbf16>
    %cst_246 = arith.constant dense<0.000000e+00> : vector<48x32xf32>
    %511 = tpu.matmul %508, %510, %cst_246 {dimension_numbers = #tpu.dot_dimension_numbers<[1], [0], [0], [1], [0, 0, 1, 1], [], []>} : vector<48x32xbf16>, vector<32x32xbf16>, vector<48x32xf32> -> vector<48x32xf32>
    %512 = vector.broadcast %380 : vector<1x32xf32> to vector<48x32xf32>
    %513 = arith.addf %511, %512 : vector<48x32xf32>
    %cst_247 = arith.constant 0.000000e+00 : f32
    %514 = vector.broadcast %cst_247 : f32 to vector<48x32xf32>
    %515 = arith.maximumf %513, %514 : vector<48x32xf32>
    %516 = arith.truncf %515 : vector<48x32xf32> to vector<48x32xbf16>
    %c5_248 = arith.constant 5 : index
    %c0_249 = arith.constant 0 : index
    %c0_250 = arith.constant 0 : index
    %517 = vector.load %arg8[%c5_248, %c0_249, %c0_250] : memref<6x32x32xbf16, #tpu.memory_space<vmem>>, vector<1x32x32xbf16>
    %518 = vector.shape_cast %517 : vector<1x32x32xbf16> to vector<32x32xbf16>
    %cst_251 = arith.constant dense<0.000000e+00> : vector<48x32xf32>
    %519 = tpu.matmul %516, %518, %cst_251 {dimension_numbers = #tpu.dot_dimension_numbers<[1], [0], [0], [1], [0, 0, 1, 1], [], []>} : vector<48x32xbf16>, vector<32x32xbf16>, vector<48x32xf32> -> vector<48x32xf32>
    %520 = arith.addf %507, %519 : vector<48x32xf32>
    %521 = vector.broadcast %381 : vector<1x32xf32> to vector<48x32xf32>
    %522 = arith.addf %520, %521 : vector<48x32xf32>
    %cst_252 = arith.constant dense<0.000000e+00> : vector<48xf32>
    %523 = vector.multi_reduction <add>, %522, %cst_252 [1] : vector<48x32xf32> to vector<48xf32>
    %524 = vector.shape_cast %523 : vector<48xf32> to vector<48x1xf32>
    %cst_253 = arith.constant 3.200000e+01 : f32
    %525 = vector.broadcast %cst_253 : f32 to vector<48x1xf32>
    %526 = arith.divf %524, %525 : vector<48x1xf32>
    %527 = vector.broadcast %526 : vector<48x1xf32> to vector<48x32xf32>
    %528 = arith.subf %522, %527 : vector<48x32xf32>
    %529 = arith.mulf %528, %528 : vector<48x32xf32>
    %cst_254 = arith.constant dense<0.000000e+00> : vector<48xf32>
    %530 = vector.multi_reduction <add>, %529, %cst_254 [1] : vector<48x32xf32> to vector<48xf32>
    %531 = vector.shape_cast %530 : vector<48xf32> to vector<48x1xf32>
    %cst_255 = arith.constant 3.200000e+01 : f32
    %532 = vector.broadcast %cst_255 : f32 to vector<48x1xf32>
    %533 = arith.divf %531, %532 : vector<48x1xf32>
    %cst_256 = arith.constant 9.99999974E-6 : f32
    %534 = vector.broadcast %cst_256 : f32 to vector<48x1xf32>
    %535 = arith.addf %533, %534 : vector<48x1xf32>
    %536 = math.rsqrt %535 : vector<48x1xf32>
    %537 = vector.broadcast %536 : vector<48x1xf32> to vector<48x32xf32>
    %538 = arith.mulf %528, %537 : vector<48x32xf32>
    %539 = vector.broadcast %384 : vector<1x32xf32> to vector<48x32xf32>
    %540 = arith.mulf %538, %539 : vector<48x32xf32>
    %541 = vector.broadcast %385 : vector<1x32xf32> to vector<48x32xf32>
    %542 = arith.addf %540, %541 : vector<48x32xf32>
    %543 = vector.shape_cast %542 : vector<48x32xf32> to vector<2x24x32xf32>
    %544 = vector.extract_strided_slice %206 {offsets = [0, 0, 0], sizes = [2, 1, 32], strides = [1, 1, 1]} : vector<2x16x32xf32> to vector<2x1x32xf32>
    %545 = vector.shape_cast %544 : vector<2x1x32xf32> to vector<2x32xf32>
    %546 = vector.extract_strided_slice %375 {offsets = [0, 0, 0], sizes = [2, 1, 32], strides = [1, 1, 1]} : vector<2x8x32xf32> to vector<2x1x32xf32>
    %547 = vector.shape_cast %546 : vector<2x1x32xf32> to vector<2x32xf32>
    %548 = vector.extract_strided_slice %543 {offsets = [0, 0, 0], sizes = [2, 1, 32], strides = [1, 1, 1]} : vector<2x24x32xf32> to vector<2x1x32xf32>
    %549 = vector.shape_cast %548 : vector<2x1x32xf32> to vector<2x32xf32>
    %550 = tpu.concatenate %545, %547, %549 in 0 : vector<2x32xf32>, vector<2x32xf32>, vector<2x32xf32> -> vector<6x32xf32>
    %551 = arith.truncf %550 : vector<6x32xf32> to vector<6x32xbf16>
    %c3_257 = arith.constant 3 : index
    %c0_258 = arith.constant 0 : index
    %c0_259 = arith.constant 0 : index
    %552 = vector.load %arg3[%c3_257, %c0_258, %c0_259] : memref<4x32x32xbf16, #tpu.memory_space<vmem>>, vector<1x32x32xbf16>
    %553 = vector.shape_cast %552 : vector<1x32x32xbf16> to vector<32x32xbf16>
    %cst_260 = arith.constant dense<0.000000e+00> : vector<6x32xf32>
    %554 = tpu.matmul %551, %553, %cst_260 {dimension_numbers = #tpu.dot_dimension_numbers<[1], [0], [0], [1], [0, 0, 1, 1], [], []>} : vector<6x32xbf16>, vector<32x32xbf16>, vector<6x32xf32> -> vector<6x32xf32>
    %c3_261 = arith.constant 3 : index
    %c0_262 = arith.constant 0 : index
    %c0_263 = arith.constant 0 : index
    %555 = vector.load %arg4[%c3_261, %c0_262, %c0_263] : memref<4x1x32xf32, #tpu.memory_space<vmem>>, vector<1x1x32xf32>
    %556 = vector.shape_cast %555 : vector<1x1x32xf32> to vector<1x32xf32>
    %557 = vector.broadcast %556 : vector<1x32xf32> to vector<6x32xf32>
    %558 = arith.addf %554, %557 : vector<6x32xf32>
    %559 = math.tanh %558 : vector<6x32xf32>
    %560 = arith.truncf %559 : vector<6x32xf32> to vector<6x32xbf16>
    %c0_264 = arith.constant 0 : index
    %c0_265 = arith.constant 0 : index
    %561 = vector.load %arg10[%c0_264, %c0_265] : memref<32x128xbf16, #tpu.memory_space<vmem>>, vector<32x128xbf16>
    %cst_266 = arith.constant dense<0.000000e+00> : vector<6x128xf32>
    %562 = tpu.matmul %560, %561, %cst_266 {dimension_numbers = #tpu.dot_dimension_numbers<[1], [0], [0], [1], [0, 0, 1, 1], [], []>} : vector<6x32xbf16>, vector<32x128xbf16>, vector<6x128xf32> -> vector<6x128xf32>
    %c0_267 = arith.constant 0 : index
    %c0_268 = arith.constant 0 : index
    %563 = vector.load %arg11[%c0_267, %c0_268] : memref<1x128xf32, #tpu.memory_space<vmem>>, vector<1x128xf32>
    %564 = vector.broadcast %563 : vector<1x128xf32> to vector<6x128xf32>
    %565 = arith.addf %562, %564 : vector<6x128xf32>
    %c0_269 = arith.constant 0 : index
    %c0_270 = arith.constant 0 : index
    %566 = vector.load %arg12[%c0_269, %c0_270] : memref<6x128xf32, #tpu.memory_space<vmem>>, vector<6x128xf32>
    tpu.vector_store %arg12[%c0_269, %c0_270], %565 {strides = array<i32>} : memref<6x128xf32, #tpu.memory_space<vmem>>, vector<6x128xf32>,
    return
  }
}

</mosaic_0001>

<bundles_post_ra>
// kernel: forward.1
= control target key start
LH: loop header
LB: loop body
LE: loop exit
PB: predicated region body
PF: predicated region fallthrough
CT: control target
= control target key end

     0   :  { %v5913_v0 = vmov 0.0   ;;  %vm5914_vm0 = vmmov 0   ;;  %vm74_vm1 = vcmask 261120   ;;  %vm500_vm2 = vcmask 130048   ;;  %s5915_s23 = smov 112   ;;  %s7053_s3 = inlined_call_operand.vmem [shape: bf16[4,32,32], index: 3, kind: input, shape index: {}]   ;;  %s7054_s0 = inlined_call_operand.vmem [shape: f32[2,24,32], index: 0, kind: input, shape index: {}]   ;;  %s7055_s5 = inlined_call_operand.vmem [shape: bf16[18,32,16], index: 5, kind: input, shape index: {}]   ;;  %s7056_s4 = inlined_call_operand.vmem [shape: f32[4,1,32], index: 4, kind: input, shape index: {}]   ;;  %s7057_s6 = inlined_call_operand.vmem [shape: f32[18,1,16], index: 6, kind: input, shape index: {}]   ;;  %s7058_s1 = inlined_call_operand.vmem [shape: f32[2,1,24], index: 1, kind: input, shape index: {}]   ;;  %s7059_s7 = inlined_call_operand.vmem [shape: bf16[6,16,32], index: 7, kind: input, shape index: {}]   ;;  %s7060_s9 = inlined_call_operand.vmem [shape: f32[3,8,32], index: 9, kind: input, shape index: {}]   ;;  %s7061_s8 = inlined_call_operand.vmem [shape: bf16[6,32,32], index: 8, kind: input, shape index: {}]   ;;  %s7062_s2 = inlined_call_operand.vmem [shape: f32[2,8,8], index: 2, kind: input, shape index: {}]   ;;  %s7063_s10 = inlined_call_operand.vmem [shape: bf16[32,128], index: 10, kind: input, shape index: {}]   ;;  %s7064_s11 = inlined_call_operand.vmem [shape: f32[1,128], index: 11, kind: input, shape index: {}]   ;;  %s7065_s12 = inlined_call_operand.vmem [shape: f32[6,128], index: 12, kind: output, shape index: {}]  }
   0x1   :  { %5173 = vmatprep.subr.bf16.mxu0 %v5913_v0  ;;  %5181 = vmatprep.subr.bf16.mxu1 %v5913_v0  ;;  %v5696_v1 = vld [vmem:[%s7053_s3 + $0x8] sm:$0xff]   ;;  %v5697_v2 = vld [vmem:[%s7053_s3 + $0x18] sm:$0xff]   ;;  %v5698_v3 = vld [vmem:[%s7053_s3] sm:$0xff]   ;;  %vm2004_vm3 = vcmask 1043456   ;;  %vm1976_vm4 = vcmask 64512   ;;  %vm3244_vm5 = vcmask 195584  }
   0x2   :  { %5177 = vmatprep.mubr.msk.bf16.mxu0 %vm5914_vm0, %v5913_v0  ;;  %5185 = vmatprep.mubr.msk.bf16.mxu1 %vm5914_vm0, %v5913_v0  ;;  %v5699_v4 = vld [vmem:[%s7053_s3 + $0x10] sm:$0xff]   ;;  %v44_v5 = vld [vmem:[%s7054_s0] sm:$0xff]  ;;  %v47_v6 = vld [vmem:[%s7054_s0 + $0x18] sm:$0xff]  ;;  %vm4507_vm6 = vcmask 1043459   ;;  %vm4500_vm7 = vcmask 1041409   ;;  %vm4514_vm8 = vcmask 1045509  }
   0x3   :  { %5174 = vmatpush3.bf16.msra.mxu0 %v5696_v1  ;;  %5182 = vmatpush3.bf16.msra.mxu1 %v5697_v2  ;;  %v45_v7 = vld [vmem:[%s7054_s0 + $0x8] sm:$0xff]  ;;  %v50_v8 = vpack.c.bf16 %v47_v6, %v44_v5  ;;  %v48_v9 = vld [vmem:[%s7054_s0 + $0x20] sm:$0xff]  ;;  %v46_v13 = vld [vmem:[%s7054_s0 + $0x10] sm:$0xff]  ;;  %vm4517_vm9 = vcmask 1041408  }
   0x4   :  { %5175 = vmatprep.subr.bf16.mxu0 %v5913_v0  ;;  %5183 = vmatprep.subr.bf16.mxu1 %v5913_v0  ;;  %v121_v10 = vpack.c.bf16 %v48_v9, %v45_v7  ;;  %v5700_v11 = vld [vmem:[%s7053_s3 + $0x28] sm:$0xff]   ;;  %v5701_v12 = vld [vmem:[%s7053_s3 + $0x20] sm:$0xff]   ;;  %v5703_v17 = vld [vmem:[%s7055_s5 + $0x18] sm:$0xff]  }
   0x5   :  { %v49_v14 = vld [vmem:[%s7054_s0 + $0x28] sm:$0xff]  ;;  %v5704_v18 = vld [vmem:[%s7055_s5] sm:$0xff]   ;;  %v5705_v19 = vld [vmem:[%s7055_s5 + $0x10] sm:$0xff]  }
   0x6   :  { %v193_v15 = vpack.c.bf16 %v49_v14, %v46_v13  ;;  %v5702_v16 = vld [vmem:[%s7055_s5 + $0x8] sm:$0xff]   ;;  %v4662_v21 = vld [vmem:[%s7056_s4] ss:$0 sm:$0xff]  ;;  %v4671_v22 = vld [vmem:[%s7056_s4 + $0x1] ss:$0 sm:$0xff] }
   0x7   :  { %5176 = vmatpush3.bf16.msra.mxu0 %v5698_v3  ;;  %5184 = vmatpush3.bf16.msra.mxu1 %v5699_v4  ;;  %v5706_v20 = vld [vmem:[%s7055_s5 + $0x28] sm:$0xff]   ;;  %v5707_v41 = vld [vmem:[%s7055_s5 + $0x20] sm:$0xff]  }
   0x8   :  { %5189 = vmatprep.subr.bf16.mxu0 %v5913_v0  ;;  %5197 = vmatprep.subr.bf16.mxu1 %v5702_v16  ;;  %v4694_v48 = vld [vmem:[%s7057_s6 + $0x1] ss:$0 sm:$0xff]  ;;  %v4684_v63 = vld [vmem:[%s7057_s6] ss:$0 sm:$0xff]  ;;  %v4704_v1 = vld [vmem:[%s7057_s6 + $0x2] ss:$0 sm:$0xff] }
   0xa   :  { %5178 = vmatmul.mubr.msk.bf16.vlgmr.msra.gmra.mxu0 %vm74_vm1, %v50_v8  ;;  %5186 = vmatmul.mubr.msk.bf16.vlgmr.msra.gmra.mxu1 %vm74_vm1, %v121_v10 }
   0xb   :  { %5193 = vmatprep.mubr.msk.bf16.mxu0 %vm5914_vm0, %v5913_v0  ;;  %5190 = vmatpush3.bf16.msra.mxu0 %v5700_v11 }
   0xc   :  { %5191 = vmatprep.subr.bf16.mxu0 %v5913_v0  ;;  %5198 = vmatpush3.bf16.msra.mxu1 %v5702_v16 }
   0xd   :  { %5199 = vmatprep.subr.bf16.mxu1 %v5704_v18 }
   0xf   :  { %5192 = vmatpush3.bf16.msra.mxu0 %v5701_v12 }
  0x10   :  { %5205 = vmatprep.subr.bf16.mxu0 %v5703_v17  ;;  %5200 = vmatpush3.bf16.msra.mxu1 %v5704_v18 }
  0x11   :  { %5213 = vmatprep.subr.bf16.mxu1 %v5706_v20 }
  0x12   :  { %5194 = vmatmul.mubr.msk.bf16.vlgmr.msra.gmra.mxu0 %vm74_vm1, %v193_v15 }
  0x13   :  { %5206 = vmatpush3.bf16.msra.mxu0 %v5703_v17 }
  0x14   :  { %5207 = vmatprep.subr.bf16.mxu0 %v5705_v19 }
  0x17   :  { %5208 = vmatpush3.bf16.msra.mxu0 %v5705_v19  ;;  %v6116_v19 = vld [vmem:[%s7058_s1 + $0x1] ss:$0 sm:$0xff] }
  0x18   :  { %5221 = vmatprep.subr.bf16.mxu0 %v5913_v0 }
  0xca   :  { %v112_v23 = vpop.f32.mrf.mxu0  ;;  %v184_v25 = vpop.f32.mrf.mxu1 }
  0xcb   :  { %v113_v24 = vadd.f32 %v4662_v21, %v112_v23  ;;  %v185_v26 = vadd.f32 %v4671_v22, %v184_v25  ;;  %v6121_v23 = vld [vmem:[%s7058_s1] ss:$0 sm:$0xff] }
  0xcc   :  { %v5179_v27 = vpop.f32.mrf.mxu0  ;;  %v5187_v28 = vpop.f32.mrf.mxu1 }
  0xcd   :  { %5760 = vtanh.f32 %v113_v24 }
  0xce   :  { %5762 = vtanh.f32 %v185_v26  ;;  %v115_v29 = vpop.f32.mrf.mxu0  ;;  %v187_v31 = vpop.f32.mrf.mxu1 }
  0xcf   :  { %v116_v30 = vadd.f32 %v4662_v21, %v115_v29  ;;  %v188_v32 = vadd.f32 %v4671_v22, %v187_v31 }
  0xd0   :  { %v5180_v33 = vpop.f32.mrf.mxu0  ;;  %v5188_v34 = vpop.f32.mrf.mxu1 }
  0xd1   :  { %5764 = vtanh.f32 %v116_v30 }
  0xd2   :  { %5766 = vtanh.f32 %v188_v32  ;;  %v6090_v42 = vpop.f32.mrf.mxu0 }
  0xd4   :  { %v5195_v43 = vpop.f32.mrf.mxu0 }
  0xd6   :  { %v6092_v44 = vpop.f32.mrf.mxu0 }
  0xd8   :  { %v5196_v45 = vpop.f32.mrf.mxu0 }
  0xda   :  { %v6054_v35 = vpop.eup %5760 }
  0xdb   :  { %v6056_v36 = vpop.eup %5762 }
  0xdc   :  { %v6060_v37 = vpack.c.bf16 %v6056_v36, %v6054_v35 }
  0xde   :  { %v6062_v38 = vpop.eup %5764  ;;  %5201 = vmatprep.mubr.msk.bf16.mxu1 %vm74_vm1, %v6060_v37  ;;  %5209 = vmatprep.mubr.msk.bf16.mxu0 %vm74_vm1, %v6060_v37 }
  0xdf   :  { %v6068_v39 = vpop.eup %5766 }
  0xe0   :  { %v6072_v40 = vpack.c.bf16 %v6068_v39, %v6062_v38 }
  0xe2   :  { %5202 = vmatmul.mubr.msk.bf16.vlgmr.msra.gmra.mxu1 %vm74_vm1, %v6072_v40  ;;  %5210 = vmatmul.mubr.msk.bf16.vlgmr.msra.gmra.mxu0 %vm74_vm1, %v6072_v40 }
  0xe3   :  { %5214 = vmatpush3.bf16.msra.mxu1 %v5706_v20  ;;  %5217 = vmatprep.mubr.msk.bf16.mxu1 %vm74_vm1, %v6060_v37 }
  0xe4   :  { %5215 = vmatprep.subr.bf16.mxu1 %v5707_v41  ;;  %5223 = vmatprep.mubr.msk.bf16.mxu0 %vm5914_vm0, %v5913_v0 }
  0xe7   :  { %5216 = vmatpush3.bf16.msra.mxu1 %v5707_v41 }
  0xe8   :  { %5227 = vmatprep.subr.bf16.mxu1 %v5913_v0 }
  0xea   :  { %5218 = vmatmul.mubr.msk.bf16.vlgmr.msra.gmra.mxu1 %vm74_vm1, %v6072_v40 }
  0xeb   :  { %5229 = vmatprep.mubr.msk.bf16.mxu1 %vm5914_vm0, %v5913_v0 }
 0x1a2   :  { %v5203_v46 = vpop.f32.mrf.mxu1  ;;  %v5211_v47 = vpop.f32.mrf.mxu0 }
 0x1a3   :  { %v414_v53 = vadd.f32 %v5211_v47, %v4694_v48  ;;  %v340_v6 = vadd.f32 %v5203_v46, %v4684_v63 }
 0x1a4   :  { %v331_v49 = vpop.f32.mrf.mxu1  ;;  %v405_v50 = vpop.f32.mrf.mxu0 }
 0x1a5   :  { %v406_v57 = vadd.f32 %v4694_v48, %v405_v50  ;;  %v332_v10 = vadd.f32 %v4684_v63, %v331_v49 }
 0x1a6   :  { %v5204_v51 = vpop.f32.mrf.mxu1  ;;  %v5212_v52 = vpop.f32.mrf.mxu0 }
 0x1a7   :  { %v417_v54 = vadd.f32 %v5212_v52, %v4694_v48  ;;  %v343_v3 = vadd.f32 %v5204_v51, %v4684_v63 }
 0x1a8   :  { %v334_v55 = vpop.f32.mrf.mxu1  ;;  %v408_v56 = vpop.f32.mrf.mxu0 }
 0x1a9   :  { %v497_v58 = vpack.c.bf16 %v417_v54, %v414_v53  ;;  %v409_v59 = vadd.f32 %v4694_v48, %v408_v56  ;;  %v335_v7 = vadd.f32 %v4684_v63, %v334_v55  ;;  %v495_v12 = vpack.c.bf16 %v343_v3, %v340_v6  ;;  %v5709_v6 = vld [vmem:[%s7055_s5 + $0x38] sm:$0xff]  }
 0x1aa   :  { %v5219_v60 = vpop.f32.mrf.mxu1 }
 0x1ab   :  { %v496_v61 = vpack.c.bf16 %v409_v59, %v406_v57  ;;  %v552_v62 = vsel %vm500_vm2, %v497_v58, 0  ;;  %v488_v8 = vadd.f32 %v5219_v60, %v4704_v1  ;;  %v494_v16 = vpack.c.bf16 %v335_v7, %v332_v10 }
 0x1ac   :  { %v479_v2 = vpop.f32.mrf.mxu1  ;;  %5228 = vmatpush3.bf16.xpose.msra.mxu1 %v552_v62 }
 0x1ad   :  { %v505_v4 = vsel %vm500_vm2, %v496_v61, 0  ;;  %5239 = vmatprep.subr.bf16.mxu1 %v5913_v0  ;;  %v480_v13 = vadd.f32 %v4704_v1, %v479_v2 }
 0x1ae   :  { %v5220_v5 = vpop.f32.mrf.mxu1  ;;  %5222 = vmatpush3.bf16.xpose.msra.mxu0 %v505_v4 }
 0x1af   :  { %v491_v9 = vadd.f32 %v5220_v5, %v4704_v1  ;;  %5233 = vmatprep.subr.bf16.mxu0 %v5913_v0  ;;  %v5708_v5 = vld [vmem:[%s7055_s5 + $0x48] sm:$0xff]  }
 0x1b0   :  { %v482_v11 = vpop.f32.mrf.mxu1 }
 0x1b1   :  { %v499_v14 = vpack.c.bf16 %v491_v9, %v488_v8  ;;  %v483_v15 = vadd.f32 %v4704_v1, %v482_v11 }
 0x1b3   :  { %v498_v17 = vpack.c.bf16 %v483_v15, %v480_v13  ;;  %5230 = vmatmul.mubr.msk.bf16.vlgmr.msra.gmra.mxu1 %vm500_vm2, %v495_v12 }
 0x1b4   :  { %5240 = vmatpush3.bf16.msra.mxu1 %v499_v14  ;;  %5241 = vmatprep.mubr.msk.bf16.mxu1 %vm5914_vm0, %v5913_v0 }
 0x1b5   :  { %5224 = vmatmul.mubr.msk.bf16.vlgmr.msra.gmra.mxu0 %vm500_vm2, %v494_v16  ;;  %5253 = vmatprep.subr.bf16.mxu1 %v5708_v5 }
 0x1b6   :  { %5234 = vmatpush3.bf16.msra.mxu0 %v498_v17  ;;  %5235 = vmatprep.mubr.msk.bf16.mxu0 %vm5914_vm0, %v5913_v0 }
 0x1b7   :  { %5245 = vmatprep.subr.bf16.mxu0 %v5709_v6 }
 0x273   :  { %v588_v18 = vpop.f32.mrf.mxu1 }
 0x274   :  { %v597_v20 = vmul.f32 0.25, %v588_v18  ;;  %v5710_v18 = vld [vmem:[%s7055_s5 + $0x40] sm:$0xff]  }
 0x275   :  { %v541_v21 = vpop.f32.mrf.mxu0  ;;  %v5231_v22 = vpop.f32.mrf.mxu1 }
 0x276   :  { %v595_v24 = vmul.f32 0.25, %v541_v21  ;;  %v613_v25 = vadd.f32 %v6116_v19, %v597_v20 }
 0x277   :  { %v5225_v26 = vpop.f32.mrf.mxu0  ;;  %v591_v27 = vpop.f32.mrf.mxu1 }
 0x278   :  { %v598_v28 = vmul.f32 0.25, %v591_v27  ;;  %v621_v29 = vsel %vm500_vm2, %v613_v25, -inf  ;;  %v611_v30 = vadd.f32 %v6121_v23, %v595_v24  ;;  %v5711_v24 = vld [vmem:[%s7055_s5 + $0x30] sm:$0xff]  }
 0x279   :  { %622 = vmax.xlane.f32.xlu0 %v621_v29  ;;  %v544_v31 = vpop.f32.mrf.mxu0  ;;  %v5232_v32 = vpop.f32.mrf.mxu1  ;;  %v5713_v26 = vld [vmem:[%s7055_s5 + $0x50] sm:$0xff]  }
 0x27a   :  { %v596_v33 = vmul.f32 0.25, %v544_v31  ;;  %v615_v34 = vsel %vm500_vm2, %v611_v30, -inf  ;;  %v614_v41 = vadd.f32 %v6116_v19, %v598_v28 }
 0x27b   :  { %616 = vmax.xlane.f32.xlu1 %v615_v34  ;;  %v5226_v43 = vpop.f32.mrf.mxu0 }
 0x27c   :  { %v624_v45 = vsel %vm500_vm2, %v614_v41, -inf  ;;  %v612_v46 = vadd.f32 %v6121_v23, %v596_v33  ;;  %v4730_v43 = vld [vmem:[%s7057_s6 + $0x4] ss:$0 sm:$0xff] }
 0x27d   :  { %625 = vmax.xlane.f32.xlu0 %v624_v45 }
 0x27e   :  { %v618_v47 = vsel %vm500_vm2, %v612_v46, -inf }
 0x27f   :  { %619 = vmax.xlane.f32.xlu1 %v618_v47 }
 0x302   :  { %v623_v48 = vpop.xlane.xlu0 %622 }
 0x303   :  { %v629_v49 = vsub.f32 %v613_v25, %v623_v48  ;;  %v5712_v25 = vld [vmem:[%s7055_s5 + $0x58] sm:$0xff]  }
 0x304   :  { %v617_v50 = vpop.xlane.xlu1 %616 }
 0x305   :  { %v635_v51 = vmul.f32 1.442695, %v629_v49  ;;  %v627_v52 = vsub.f32 %v611_v30, %v617_v50 }
 0x306   :  { %v626_v53 = vpop.xlane.xlu0 %625 }
 0x307   :  { %5768 = vpow2.f32 %v635_v51  ;;  %v631_v54 = vmul.f32 1.442695, %v627_v52  ;;  %v630_v55 = vsub.f32 %v614_v41, %v626_v53 }
 0x308   :  { %v620_v56 = vpop.xlane.xlu1 %619 }
 0x309   :  { %5770 = vpow2.f32 %v631_v54  ;;  %v637_v57 = vmul.f32 1.442695, %v630_v55  ;;  %v628_v58 = vsub.f32 %v612_v46, %v620_v56 }
 0x30b   :  { %5772 = vpow2.f32 %v637_v57  ;;  %v633_v59 = vmul.f32 1.442695, %v628_v58 }
 0x30d   :  { %5774 = vpow2.f32 %v633_v59  ;;  %v4720_v59 = vld [vmem:[%s7057_s6 + $0x3] ss:$0 sm:$0xff] }
 0x314   :  { %v5769_v60 = vpop.eup %5768 }
 0x315   :  { %v645_v61 = vsel %vm500_vm2, %v5769_v60, 0.0 }
 0x316   :  { %v5771_v62 = vpop.eup %5770  ;;  %646 = vadd.xlane.f32.xlu0 %v645_v61 }
 0x317   :  { %v639_v1 = vsel %vm500_vm2, %v5771_v62, 0.0 }
 0x318   :  { %v5773_v63 = vpop.eup %5772 }
 0x319   :  { %v648_v2 = vsel %vm500_vm2, %v5773_v63, 0.0 }
 0x31a   :  { %v5775_v3 = vpop.eup %5774  ;;  %640 = vadd.xlane.f32.xlu0 %v639_v1  ;;  %649 = vadd.xlane.f32.xlu1 %v648_v2  ;;  %v4740_v2 = vld [vmem:[%s7057_s6 + $0x5] ss:$0 sm:$0xff] }
 0x31b   :  { %v642_v4 = vsel %vm500_vm2, %v5775_v3, 0.0 }
 0x31e   :  { %643 = vadd.xlane.f32.xlu1 %v642_v4 }
 0x39f   :  { %v647_v7 = vpop.xlane.xlu0 %646 }
 0x3a0   :  { %5776 = vrcp.f32 %v647_v7 }
 0x3a3   :  { %v641_v8 = vpop.xlane.xlu0 %640  ;;  %v650_v9 = vpop.xlane.xlu1 %649 }
 0x3a4   :  { %5778 = vrcp.f32 %v650_v9 }
 0x3a5   :  { %5780 = vrcp.f32 %v641_v8 }
 0x3a7   :  { %v644_v10 = vpop.xlane.xlu1 %643 }
 0x3a8   :  { %5782 = vrcp.f32 %v644_v10 }
 0x3ad   :  { %v5777_v11 = vpop.eup %5776 }
 0x3ae   :  { %v656_v14 = vmul.f32 %v5777_v11, %v5769_v60 }
 0x3b1   :  { %v5779_v12 = vpop.eup %5778 }
 0x3b2   :  { %v5781_v13 = vpop.eup %5780  ;;  %v658_v15 = vmul.f32 %v5779_v12, %v5773_v63 }
 0x3b3   :  { %v652_v20 = vmul.f32 %v5781_v13, %v5771_v62 }
 0x3b4   :  { %v660_v17 = vpack.c.bf16 %v658_v15, %v656_v14 }
 0x3b5   :  { %v5783_v16 = vpop.eup %5782 }
 0x3b6   :  { %v654_v21 = vmul.f32 %v5783_v16, %v5775_v3  ;;  %5242 = vmatmul.mubr.msk.bf16.vlgmr.msra.gmra.mxu1 %vm500_vm2, %v660_v17 }
 0x3b7   :  { %5254 = vmatpush3.bf16.msra.mxu1 %v5708_v5  ;;  %5257 = vmatprep.mubr.msk.bf16.mxu1 %vm74_vm1, %v6060_v37 }
 0x3b8   :  { %v659_v22 = vpack.c.bf16 %v654_v21, %v652_v20  ;;  %5255 = vmatprep.subr.bf16.mxu1 %v5710_v18 }
 0x3ba   :  { %5236 = vmatmul.mubr.msk.bf16.vlgmr.msra.gmra.mxu0 %vm500_vm2, %v659_v22 }
 0x3bb   :  { %5246 = vmatpush3.bf16.msra.mxu0 %v5709_v6  ;;  %5249 = vmatprep.mubr.msk.bf16.mxu0 %vm74_vm1, %v6060_v37 }
 0x3bc   :  { %5256 = vmatpush3.bf16.msra.mxu1 %v5710_v18  ;;  %5247 = vmatprep.subr.bf16.mxu0 %v5711_v24 }
 0x3bd   :  { %5269 = vmatprep.subr.bf16.mxu1 %v5913_v0 }
 0x3bf   :  { %5258 = vmatmul.mubr.msk.bf16.vlgmr.msra.gmra.mxu1 %vm74_vm1, %v6072_v40  ;;  %5248 = vmatpush3.bf16.msra.mxu0 %v5711_v24 }
 0x3c0   :  { %5261 = vmatprep.subr.bf16.mxu0 %v5712_v25  ;;  %5271 = vmatprep.mubr.msk.bf16.mxu1 %vm5914_vm0, %v5913_v0 }
 0x3c2   :  { %5250 = vmatmul.mubr.msk.bf16.vlgmr.msra.gmra.mxu0 %vm74_vm1, %v6072_v40 }
 0x3c3   :  { %5262 = vmatpush3.bf16.msra.mxu0 %v5712_v25  ;;  %5265 = vmatprep.mubr.msk.bf16.mxu0 %vm74_vm1, %v6060_v37 }
 0x3c4   :  { %5263 = vmatprep.subr.bf16.mxu0 %v5713_v26 }
 0x3c7   :  { %5264 = vmatpush3.bf16.msra.mxu0 %v5713_v26 }
 0x3c8   :  { %5275 = vmatprep.subr.bf16.mxu0 %v5913_v0 }
 0x3ca   :  { %5266 = vmatmul.mubr.msk.bf16.vlgmr.msra.gmra.mxu0 %vm74_vm1, %v6072_v40 }
 0x3cb   :  { %5277 = vmatprep.mubr.msk.bf16.mxu0 %vm5914_vm0, %v5913_v0 }
 0x476   :  { %v6173_v27 = vpop.f32.mrf.mxu1 }
 0x478   :  { %v5243_v28 = vpop.f32.mrf.mxu1 }
 0x47a   :  { %v6175_v29 = vpop.f32.mrf.mxu0  ;;  %v6177_v30 = vpop.f32.mrf.mxu1 }
 0x47b   :  { %v750_v37 = vpack.c.bf16 %v6177_v30, %v6173_v27  ;;  %v1344_v30 = vlaneseq }
 0x47c   :  { %v5237_v31 = vpop.f32.mrf.mxu0  ;;  %v5244_v32 = vpop.f32.mrf.mxu1 }
 0x47e   :  { %v6181_v33 = vpop.f32.mrf.mxu0 }
 0x47f   :  { %v749_v40 = vpack.c.bf16 %v6181_v33, %v6175_v29  ;;  %v5259_v34 = vpop.f32.mrf.mxu1 }
 0x480   :  { %v5238_v41 = vpop.f32.mrf.mxu0  ;;  %v895_v48 = vadd.f32 %v5259_v34, %v4730_v43 }
 0x481   :  { %v886_v45 = vpop.f32.mrf.mxu1 }
 0x482   :  { %v5251_v46 = vpop.f32.mrf.mxu0  ;;  %v887_v52 = vadd.f32 %v4730_v43, %v886_v45 }
 0x483   :  { %v5260_v47 = vpop.f32.mrf.mxu1  ;;  %v821_v63 = vadd.f32 %v5251_v46, %v4720_v59 }
 0x484   :  { %v898_v49 = vadd.f32 %v5260_v47, %v4730_v43  ;;  %v812_v50 = vpop.f32.mrf.mxu0 }
 0x485   :  { %v889_v51 = vpop.f32.mrf.mxu1  ;;  %v813_v4 = vadd.f32 %v4720_v59, %v812_v50 }
 0x486   :  { %v978_v53 = vpack.c.bf16 %v898_v49, %v895_v48  ;;  %v890_v54 = vadd.f32 %v4730_v43, %v889_v51  ;;  %v5252_v55 = vpop.f32.mrf.mxu0 }
 0x487   :  { %v824_v60 = vadd.f32 %v5252_v55, %v4720_v59 }
 0x488   :  { %v977_v56 = vpack.c.bf16 %v890_v54, %v887_v52  ;;  %v815_v57 = vpop.f32.mrf.mxu0  ;;  %v1032_v58 = vsel %vm500_vm2, %v978_v53, 0 }
 0x489   :  { %5276 = vmatpush3.bf16.xpose.msra.mxu0 %v1032_v58  ;;  %v816_v1 = vadd.f32 %v4720_v59, %v815_v57  ;;  %v976_v5 = vpack.c.bf16 %v824_v60, %v821_v63 }
 0x48a   :  { %v5267_v61 = vpop.f32.mrf.mxu0  ;;  %v985_v62 = vsel %vm500_vm2, %v977_v56, 0  ;;  %5287 = vmatprep.subr.bf16.mxu0 %v5913_v0 }
 0x48b   :  { %5270 = vmatpush3.bf16.xpose.msra.mxu1 %v985_v62  ;;  %v969_v7 = vadd.f32 %v5267_v61, %v4740_v2  ;;  %v975_v9 = vpack.c.bf16 %v816_v1, %v813_v4 }
 0x48c   :  { %v960_v3 = vpop.f32.mrf.mxu0  ;;  %5281 = vmatprep.subr.bf16.mxu1 %v5913_v0 }
 0x48d   :  { %v961_v11 = vadd.f32 %v4740_v2, %v960_v3 }
 0x48e   :  { %v5268_v6 = vpop.f32.mrf.mxu0 }
 0x48f   :  { %v972_v8 = vadd.f32 %v5268_v6, %v4740_v2  ;;  %v5714_v6 = vld [vmem:[%s7059_s7] sm:$0xff]  }
 0x490   :  { %5278 = vmatmul.mubr.msk.bf16.vlgmr.msra.gmra.mxu0 %vm500_vm2, %v976_v5  ;;  %v963_v10 = vpop.f32.mrf.mxu0 }
 0x491   :  { %v980_v12 = vpack.c.bf16 %v972_v8, %v969_v7  ;;  %v964_v13 = vadd.f32 %v4740_v2, %v963_v10  ;;  %5289 = vmatprep.mubr.msk.bf16.mxu0 %vm5914_vm0, %v5913_v0 }
 0x492   :  { %5272 = vmatmul.mubr.msk.bf16.vlgmr.msra.gmra.mxu1 %vm500_vm2, %v975_v9 }
 0x493   :  { %v979_v14 = vpack.c.bf16 %v964_v13, %v961_v11  ;;  %5288 = vmatpush3.bf16.msra.mxu0 %v980_v12  ;;  %5283 = vmatprep.mubr.msk.bf16.mxu1 %vm5914_vm0, %v5913_v0 }
 0x494   :  { %5299 = vmatprep.subr.bf16.mxu0 %v5714_v6 }
 0x495   :  { %5282 = vmatpush3.bf16.msra.mxu1 %v979_v14 }
 0x550   :  { %v1068_v15 = vpop.f32.mrf.mxu0 }
 0x551   :  { %v1077_v18 = vmul.f32 0.25, %v1068_v15 }
 0x552   :  { %v1021_v16 = vpop.f32.mrf.mxu1  ;;  %v5279_v17 = vpop.f32.mrf.mxu0 }
 0x553   :  { %v1075_v20 = vmul.f32 0.25, %v1021_v16  ;;  %v1081_v34 = vadd.f32 %v6116_v19, %v1077_v18 }
 0x554   :  { %v5273_v21 = vpop.f32.mrf.mxu1  ;;  %v1071_v22 = vpop.f32.mrf.mxu0 }
 0x555   :  { %v1079_v24 = vadd.f32 %v6121_v23, %v1075_v20  ;;  %v1078_v28 = vmul.f32 0.25, %v1071_v22  ;;  %v1089_v45 = vsel %vm500_vm2, %v1081_v34, -inf  ;;  %v5715_v22 = vld [vmem:[%s7059_s7 + $0x8] sm:$0xff]  }
 0x556   :  { %v1024_v25 = vpop.f32.mrf.mxu1  ;;  %v5280_v26 = vpop.f32.mrf.mxu0  ;;  %5293 = vmatprep.subr.bf16.mxu1 %v5715_v22 }
 0x557   :  { %v1076_v31 = vmul.f32 0.25, %v1024_v25  ;;  %v1083_v32 = vsel %vm500_vm2, %v1079_v24, -inf  ;;  %v1082_v47 = vadd.f32 %v6116_v19, %v1078_v28 }
 0x558   :  { %1084 = vmax.xlane.f32.xlu0 %v1083_v32  ;;  %v5274_v41 = vpop.f32.mrf.mxu1 }
 0x559   :  { %v1080_v43 = vadd.f32 %v6121_v23, %v1076_v31  ;;  %v1092_v48 = vsel %vm500_vm2, %v1082_v47, -inf }
 0x55b   :  { %v1086_v46 = vsel %vm500_vm2, %v1080_v43, -inf }
 0x55c   :  { %1090 = vmax.xlane.f32.xlu0 %v1089_v45  ;;  %1087 = vmax.xlane.f32.xlu1 %v1086_v46  ;;  %v6242_v45 = vld [vmem:[%s7060_s9] sm:$0xff] }
 0x560   :  { %1093 = vmax.xlane.f32.xlu1 %v1092_v48 }
 0x5e1   :  { %v1085_v49 = vpop.xlane.xlu0 %1084 }
 0x5e2   :  { %v1095_v50 = vsub.f32 %v1079_v24, %v1085_v49 }
 0x5e4   :  { %v1099_v51 = vmul.f32 1.442695, %v1095_v50 }
 0x5e5   :  { %v1091_v52 = vpop.xlane.xlu0 %1090  ;;  %v1088_v53 = vpop.xlane.xlu1 %1087 }
 0x5e6   :  { %5784 = vpow2.f32 %v1099_v51  ;;  %v1097_v54 = vsub.f32 %v1081_v34, %v1091_v52  ;;  %v1096_v55 = vsub.f32 %v1080_v43, %v1088_v53 }
 0x5e8   :  { %v1103_v56 = vmul.f32 1.442695, %v1097_v54  ;;  %v1101_v57 = vmul.f32 1.442695, %v1096_v55 }
 0x5e9   :  { %v1094_v58 = vpop.xlane.xlu1 %1093 }
 0x5ea   :  { %5786 = vpow2.f32 %v1103_v56  ;;  %v1098_v59 = vsub.f32 %v1082_v47, %v1094_v58 }
 0x5eb   :  { %5788 = vpow2.f32 %v1101_v57 }
 0x5ec   :  { %v1105_v60 = vmul.f32 1.442695, %v1098_v59 }
 0x5ee   :  { %5790 = vpow2.f32 %v1105_v60 }
 0x5f3   :  { %v5785_v61 = vpop.eup %5784 }
 0x5f4   :  { %v1107_v62 = vsel %vm500_vm2, %v5785_v61, 0.0 }
 0x5f5   :  { %1108 = vadd.xlane.f32.xlu0 %v1107_v62 }
 0x5f7   :  { %v5787_v63 = vpop.eup %5786 }
 0x5f8   :  { %v5789_v1 = vpop.eup %5788  ;;  %v1113_v2 = vsel %vm500_vm2, %v5787_v63, 0.0 }
 0x5f9   :  { %1114 = vadd.xlane.f32.xlu0 %v1113_v2  ;;  %v1110_v3 = vsel %vm500_vm2, %v5789_v1, 0.0 }
 0x5fa   :  { %1111 = vadd.xlane.f32.xlu1 %v1110_v3 }
 0x5fb   :  { %v5791_v4 = vpop.eup %5790 }
 0x5fc   :  { %v1116_v5 = vsel %vm500_vm2, %v5791_v4, 0.0 }
 0x5fe   :  { %1117 = vadd.xlane.f32.xlu1 %v1116_v5 }
 0x67e   :  { %v1109_v7 = vpop.xlane.xlu0 %1108 }
 0x67f   :  { %5792 = vrcp.f32 %v1109_v7 }
 0x682   :  { %v1115_v8 = vpop.xlane.xlu0 %1114 }
 0x683   :  { %v1112_v9 = vpop.xlane.xlu1 %1111 }
 0x684   :  { %5794 = vrcp.f32 %v1112_v9 }
 0x685   :  { %5796 = vrcp.f32 %v1115_v8 }
 0x687   :  { %v1118_v10 = vpop.xlane.xlu1 %1117 }
 0x688   :  { %5798 = vrcp.f32 %v1118_v10 }
 0x68c   :  { %v5793_v11 = vpop.eup %5792 }
 0x68d   :  { %v1120_v13 = vmul.f32 %v5793_v11, %v5785_v61 }
 0x691   :  { %v5795_v12 = vpop.eup %5794 }
 0x692   :  { %v1122_v14 = vmul.f32 %v5795_v12, %v5789_v1  ;;  %v5797_v15 = vpop.eup %5796 }
 0x693   :  { %v1124_v18 = vmul.f32 %v5797_v15, %v5787_v63 }
 0x694   :  { %v1127_v16 = vpack.c.bf16 %v1122_v14, %v1120_v13 }
 0x695   :  { %v5799_v17 = vpop.eup %5798 }
 0x696   :  { %5284 = vmatmul.mubr.msk.bf16.vlgmr.msra.gmra.mxu1 %vm500_vm2, %v1127_v16  ;;  %v1126_v20 = vmul.f32 %v5799_v17, %v5791_v4 }
 0x697   :  { %5294 = vmatpush3.bf16.msra.mxu1 %v5715_v22 }
 0x698   :  { %v1128_v21 = vpack.c.bf16 %v1126_v20, %v1124_v18 }
 0x69a   :  { %5290 = vmatmul.mubr.msk.bf16.vlgmr.msra.gmra.mxu0 %vm500_vm2, %v1128_v21 }
 0x69b   :  { %5301 = vmatprep.mubr.msk.bf16.mxu0 %vm500_vm2, %v749_v40  ;;  %5300 = vmatpush3.bf16.msra.mxu0 %v5714_v6 }
 0x6a2   :  { %5302 = vmatmul.mubr.msk.bf16.vlgmr.msra.gmra.mxu0 %vm500_vm2, %v750_v37  ;;  %v6234_v37 = vshrl.u32 %v1344_v30, 7 }
 0x6a4   :  { %v6237_v41 = vsub.s32 0, %v6234_v37 }
 0x6a6   :  { %v1347_v48 = vrot.slane %v6242_v45, %v6237_v41 }
 0x756   :  { %v1166_v24 = vpop.f32.mrf.mxu1 }
 0x758   :  { %v5285_v25 = vpop.f32.mrf.mxu1 }
 0x759   :  { %v5717_v25 = vld [vmem:[%s7061_s8] sm:$0xff]  }
 0x75a   :  { %v1169_v26 = vpop.f32.mrf.mxu1  ;;  %v1210_v28 = vpop.f32.mrf.mxu0 }
 0x75b   :  { %v1217_v31 = vpack.c.bf16 %v1169_v26, %v1166_v24  ;;  %v5716_v24 = vld [vmem:[%s7061_s8 + $0x8] sm:$0xff]  }
 0x75c   :  { %v5286_v29 = vpop.f32.mrf.mxu1  ;;  %v5291_v33 = vpop.f32.mrf.mxu0  ;;  %5305 = vmatprep.subr.bf16.mxu1 %v5716_v24 }
 0x75d   :  { %5295 = vmatprep.mubr.msk.bf16.mxu1 %vm500_vm2, %v1217_v31 }
 0x75e   :  { %v1213_v40 = vpop.f32.mrf.mxu0 }
 0x75f   :  { %v1218_v32 = vpack.c.bf16 %v1213_v40, %v1210_v28 }
 0x760   :  { %v5292_v27 = vpop.f32.mrf.mxu0 }
 0x761   :  { %5296 = vmatmul.mubr.msk.bf16.vlgmr.msra.gmra.mxu1 %vm500_vm2, %v1218_v32 }
 0x762   :  { %v5303_v34 = vpop.f32.mrf.mxu0  ;;  %5306 = vmatpush3.bf16.msra.mxu1 %v5716_v24 }
 0x763   :  { %5307 = vmatprep.subr.bf16.mxu1 %v5717_v25 }
 0x764   :  { %v1329_v43 = vpop.f32.mrf.mxu0 }
 0x766   :  { %v5304_v49 = vpop.f32.mrf.mxu0  ;;  %5308 = vmatpush3.bf16.msra.mxu1 %v5717_v25 }
 0x767   :  { %5321 = vmatprep.subr.bf16.mxu1 %v5913_v0 }
 0x768   :  { %v1332_v56 = vpop.f32.mrf.mxu0 }
 0x821   :  { %v5297_v46 = vpop.f32.mrf.mxu1 }
 0x822   :  { %v1338_v47 = vadd.f32 %v5303_v34, %v5297_v46 }
 0x823   :  { %v1268_v50 = vpop.f32.mrf.mxu1 }
 0x824   :  { %v1330_v51 = vadd.f32 %v1329_v43, %v1268_v50  ;;  %v1350_v53 = vadd.f32 %v1347_v48, %v1338_v47  ;;  %v6266_v47 = vsub.s32 3, %v6234_v37 }
 0x825   :  { %v5298_v52 = vpop.f32.mrf.mxu1 }
 0x826   :  { %v1348_v54 = vadd.f32 %v1347_v48, %v1330_v51  ;;  %v1341_v55 = vadd.f32 %v5304_v49, %v5298_v52  ;;  %v1354_v63 = vadd.f32 %v6062_v38, %v1350_v53  ;;  %v1412_v52 = vrot.slane %v6242_v45, %v6266_v47 }
 0x827   :  { %v1271_v57 = vpop.f32.mrf.mxu1  ;;  %v6275_v53 = vsub.s32 4, %v6234_v37 }
 0x828   :  { %v1333_v58 = vadd.f32 %v1332_v56, %v1271_v57  ;;  %v1352_v59 = vadd.f32 %v6054_v35, %v1348_v54  ;;  %v1351_v60 = vadd.f32 %v1347_v48, %v1341_v55  ;;  %v1362_v2 = vsel %vm74_vm1, %v1354_v63, 0.0 }
 0x82a   :  { %v1349_v61 = vadd.f32 %v1347_v48, %v1333_v58  ;;  %v1356_v62 = vsel %vm74_vm1, %v1352_v59, 0.0  ;;  %v1355_v4 = vadd.f32 %v6068_v39, %v1351_v60  ;;  %v4680_v48 = vld [vmem:[%s7056_s4 + $0x2] ss:$0 sm:$0xff]  ;;  %v1420_v60 = vrot.slane %v6242_v45, %v6275_v53 }
 0x82b   :  { %1357 = vadd.xlane.f32.xlu0 %v1356_v62  ;;  %v257_v50 = vadd.f32 %v4680_v48, %v6090_v42  ;;  %v260_v54 = vadd.f32 %v4680_v48, %v6092_v44 }
 0x82c   :  { %v1353_v1 = vadd.f32 %v6056_v36, %v1349_v61  ;;  %v1365_v5 = vsel %vm74_vm1, %v1355_v4, 0.0 }
 0x82e   :  { %v1359_v3 = vsel %vm74_vm1, %v1353_v1, 0.0 }
 0x82f   :  { %1363 = vadd.xlane.f32.xlu0 %v1362_v2  ;;  %1360 = vadd.xlane.f32.xlu1 %v1359_v3 }
 0x833   :  { %1366 = vadd.xlane.f32.xlu1 %v1365_v5 }
 0x8b4   :  { %v1358_v35 = vpop.xlane.xlu0 %1357 }
 0x8b5   :  { %v1369_v6 = vmul.f32 0.03125, %v1358_v35  ;;  %v5718_v35 = vld [vmem:[%s7055_s5 + $0x68] sm:$0xff]  }
 0x8b7   :  { %v1373_v7 = vsub.f32 %v1352_v59, %v1369_v6 }
 0x8b8   :  { %v1364_v8 = vpop.xlane.xlu0 %1363  ;;  %v1361_v9 = vpop.xlane.xlu1 %1360 }
 0x8b9   :  { %v1371_v38 = vmul.f32 0.03125, %v1364_v8  ;;  %v1370_v10 = vmul.f32 0.03125, %v1361_v9  ;;  %v1377_v11 = vmul.f32 %v1373_v7, %v1373_v7 }
 0x8bb   :  { %v1375_v36 = vsub.f32 %v1354_v63, %v1371_v38  ;;  %v1374_v12 = vsub.f32 %v1353_v1, %v1370_v10  ;;  %v1381_v13 = vsel %vm74_vm1, %v1377_v11, 0.0  ;;  %v5720_v38 = vld [vmem:[%s7055_s5 + $0x88] sm:$0xff]   ;;  %v5721_v11 = vld [vmem:[%s7055_s5 + $0x80] sm:$0xff]  }
 0x8bc   :  { %1382 = vadd.xlane.f32.xlu0 %v1381_v13  ;;  %v1367_v14 = vpop.xlane.xlu1 %1366  ;;  %v6336_v13 = vsub.s32 1, %v6234_v37 }
 0x8bd   :  { %v1372_v39 = vmul.f32 0.03125, %v1367_v14  ;;  %v1379_v15 = vmul.f32 %v1375_v36, %v1375_v36  ;;  %v1378_v16 = vmul.f32 %v1374_v12, %v1374_v12 }
 0x8bf   :  { %v1376_v17 = vsub.f32 %v1355_v4, %v1372_v39  ;;  %v1387_v18 = vsel %vm74_vm1, %v1379_v15, 0.0  ;;  %v1384_v20 = vsel %vm74_vm1, %v1378_v16, 0.0  ;;  %v1434_v39 = vrot.slane %v6242_v45, %v6336_v13 }
 0x8c0   :  { %1388 = vadd.xlane.f32.xlu0 %v1387_v18  ;;  %1385 = vadd.xlane.f32.xlu1 %v1384_v20 }
 0x8c1   :  { %v1380_v21 = vmul.f32 %v1376_v17, %v1376_v17 }
 0x8c3   :  { %v1390_v22 = vsel %vm74_vm1, %v1380_v21, 0.0 }
 0x8c4   :  { %1391 = vadd.xlane.f32.xlu1 %v1390_v22 }
 0x8d5   :  { %1662 = vrot.lane.b32.xlu1 %v6121_v23, %s5915_s23  ;;  %v4793_v23 = vld [vmem:[%s7057_s6 + $0x8] ss:$0 sm:$0xff] }
 0x8d6   :  { %1664 = vrot.lane.b32.xlu0 %v6116_v19, %s5915_s23 }
 0x945   :  { %v1383_v26 = vpop.xlane.xlu0 %1382 }
 0x946   :  { %v1393_v28 = vmul.f32 0.03125, %v1383_v26 }
 0x948   :  { %v1397_v31 = vadd.f32 1e-05, %v1393_v28 }
 0x949   :  { %v1389_v29 = vpop.xlane.xlu0 %1388  ;;  %v1386_v33 = vpop.xlane.xlu1 %1385 }
 0x94a   :  { %5800 = vrsqrt.f32 %v1397_v31  ;;  %v1395_v40 = vmul.f32 0.03125, %v1389_v29  ;;  %v1394_v32 = vmul.f32 0.03125, %v1386_v33 }
 0x94c   :  { %v1399_v27 = vadd.f32 1e-05, %v1395_v40  ;;  %v1398_v30 = vadd.f32 1e-05, %v1394_v32  ;;  %v5724_v40 = vld [vmem:[%s7055_s5 + $0x78] sm:$0xff]  }
 0x94d   :  { %v1392_v34 = vpop.xlane.xlu1 %1391 }
 0x94e   :  { %5802 = vrsqrt.f32 %v1399_v27  ;;  %v1396_v43 = vmul.f32 0.03125, %v1392_v34  ;;  %v5725_v34 = vld [vmem:[%s7055_s5 + $0x70] sm:$0xff]  }
 0x94f   :  { %5804 = vrsqrt.f32 %v1398_v30 }
 0x950   :  { %v1400_v46 = vadd.f32 1e-05, %v1396_v43 }
 0x952   :  { %5806 = vrsqrt.f32 %v1400_v46 }
 0x953   :  { %5808 = vtanh.f32 %v257_v50 }
 0x954   :  { %5810 = vtanh.f32 %v260_v54 }
 0x957   :  { %v5801_v49 = vpop.eup %5800 }
 0x958   :  { %v1405_v51 = vmul.f32 %v5801_v49, %v1373_v7  ;;  %v5719_v7 = vld [vmem:[%s7055_s5 + $0x60] sm:$0xff]  }
 0x95a   :  { %v1413_v59 = vmul.f32 %v1412_v52, %v1405_v51 }
 0x95b   :  { %v5803_v55 = vpop.eup %5802 }
 0x95c   :  { %v5805_v56 = vpop.eup %5804  ;;  %v1407_v57 = vmul.f32 %v5803_v55, %v1375_v36  ;;  %v6280_v1 = vadd.f32 %v1420_v60, %v1413_v59  ;;  %v5722_v36 = vld [vmem:[%s7061_s8 + $0x18] sm:$0xff]   ;;  %v4784_v55 = vld [vmem:[%s7057_s6 + $0x7] ss:$0 sm:$0xff]  ;;  %v4775_v59 = vld [vmem:[%s7057_s6 + $0x6] ss:$0 sm:$0xff] }
 0x95d   :  { %v1406_v58 = vmul.f32 %v5805_v56, %v1374_v12  ;;  %5313 = vmatprep.subr.bf16.mxu0 %v5722_v36  ;;  %v5723_v12 = vld [vmem:[%s7061_s8 + $0x10] sm:$0xff]  }
 0x95e   :  { %v1415_v63 = vmul.f32 %v1412_v52, %v1407_v57  ;;  %5314 = vmatpush3.bf16.msra.mxu0 %v5722_v36 }
 0x95f   :  { %v5807_v42 = vpop.eup %5806  ;;  %v1414_v61 = vmul.f32 %v1412_v52, %v1406_v58  ;;  %5315 = vmatprep.subr.bf16.mxu0 %v5723_v12 }
 0x960   :  { %v1408_v62 = vmul.f32 %v5807_v42, %v1376_v17  ;;  %v6286_v4 = vadd.f32 %v1420_v60, %v1415_v63  ;;  %v6302_v8 = vpop.eup %5808 }
 0x961   :  { %v6282_v2 = vadd.f32 %v1420_v60, %v1414_v61  ;;  %v6305_v9 = vpop.eup %5810 }
 0x962   :  { %v1416_v3 = vmul.f32 %v1412_v52, %v1408_v62  ;;  %v6312_v10 = vpack.c.bf16 %v6305_v9, %v6302_v8  ;;  %5316 = vmatpush3.bf16.msra.mxu0 %v5723_v12 }
 0x963   :  { %v1425_v44 = vpack.c.bf16 %v6282_v2, %v6280_v1  ;;  %5329 = vmatprep.subr.bf16.mxu0 %v5913_v0 }
 0x964   :  { %v6288_v5 = vadd.f32 %v1420_v60, %v1416_v3 }
 0x965   :  { %5309 = vmatprep.mubr.msk.bf16.mxu1 %vm74_vm1, %v1425_v44 }
 0x966   :  { %v1426_v6 = vpack.c.bf16 %v6288_v5, %v6286_v4 }
 0x968   :  { %5310 = vmatmul.mubr.msk.bf16.vlgmr.msra.gmra.mxu1 %vm74_vm1, %v1426_v6 }
 0x969   :  { %5322 = vmatpush3.bf16.msra.mxu1 %v5718_v35  ;;  %5325 = vmatprep.mubr.msk.bf16.mxu1 %vm5914_vm0, %v5913_v0 }
 0x96a   :  { %5323 = vmatprep.subr.bf16.mxu1 %v5913_v0 }
 0x96d   :  { %5324 = vmatpush3.bf16.msra.mxu1 %v5719_v7 }
 0x96e   :  { %5337 = vmatprep.subr.bf16.mxu1 %v5913_v0 }
 0x970   :  { %5326 = vmatmul.mubr.msk.bf16.vlgmr.msra.gmra.mxu1 %vm74_vm1, %v6312_v10 }
 0x971   :  { %5338 = vmatpush3.bf16.msra.mxu1 %v5720_v38  ;;  %5341 = vmatprep.mubr.msk.bf16.mxu1 %vm5914_vm0, %v5913_v0 }
 0x972   :  { %5339 = vmatprep.subr.bf16.mxu1 %v5913_v0 }
 0x975   :  { %5340 = vmatpush3.bf16.msra.mxu1 %v5721_v11 }
 0x976   :  { %5351 = vmatprep.subr.bf16.mxu1 %v5913_v0 }
 0x978   :  { %5342 = vmatmul.mubr.msk.bf16.vlgmr.msra.gmra.mxu1 %vm74_vm1, %v6312_v10 }
 0x979   :  { %5353 = vmatprep.mubr.msk.bf16.mxu1 %vm5914_vm0, %v5913_v0 }
 0xa28   :  { %v5311_v14 = vpop.f32.mrf.mxu1 }
 0xa29   :  { %v1496_v20 = vadd.f32 %v5311_v14, %v1434_v39 }
 0xa2a   :  { %v1487_v15 = vpop.f32.mrf.mxu1 }
 0xa2b   :  { %v1488_v17 = vadd.f32 %v1487_v15, %v1434_v39  ;;  %v1504_v31 = vmax.f32 %v1496_v20, 0.0  ;;  %v1660_v15 = vld [vmem:[%s7062_s2] sm:$0xff]  ;;  %v1661_v20 = vld [vmem:[%s7062_s2 + $0x8] sm:$0xff] }
 0xa2c   :  { %v5312_v16 = vpop.f32.mrf.mxu1 }
 0xa2d   :  { %v1499_v18 = vadd.f32 %v5312_v16, %v1434_v39  ;;  %v1502_v26 = vmax.f32 %v1488_v17, 0.0  ;;  %v1663_v16 = vpop.permute.xlu1 %1662 }
 0xa2e   :  { %v1490_v21 = vpop.f32.mrf.mxu1  ;;  %v6392_v17 = vadd.f32 %v1663_v16, %v1660_v15 }
 0xa2f   :  { %v1491_v22 = vadd.f32 %v1490_v21, %v1434_v39  ;;  %v1505_v24 = vmax.f32 %v1499_v18, 0.0  ;;  %v1665_v21 = vpop.permute.xlu0 %1664 }
 0xa30   :  { %v1735_v25 = vpop.f32.mrf.mxu1 }
 0xa31   :  { %v1503_v28 = vmax.f32 %v1491_v22, 0.0  ;;  %v1507_v32 = vpack.c.bf16 %v1505_v24, %v1504_v31  ;;  %v1736_v3 = vadd.f32 %v4775_v59, %v1735_v25  ;;  %v6397_v25 = vadd.f32 %v1665_v21, %v1661_v20 }
 0xa32   :  { %v5327_v29 = vpop.f32.mrf.mxu1 }
 0xa33   :  { %v1506_v33 = vpack.c.bf16 %v1503_v28, %v1502_v26  ;;  %v1874_v38 = vpack.c.bf16 %v1736_v3, %v1736_v3 }
 0xa34   :  { %v1738_v27 = vpop.f32.mrf.mxu1 }
 0xa35   :  { %5317 = vmatprep.mubr.msk.bf16.mxu0 %vm74_vm1, %v1506_v33  ;;  %v1739_v11 = vadd.f32 %v4775_v59, %v1738_v27 }
 0xa36   :  { %5318 = vmatmul.mubr.msk.bf16.vlgmr.msra.gmra.mxu0 %vm74_vm1, %v1507_v32  ;;  %v5328_v30 = vpop.f32.mrf.mxu1 }
 0xa37   :  { %5330 = vmatpush3.bf16.msra.mxu0 %v5724_v40  ;;  %5333 = vmatprep.mubr.msk.bf16.mxu0 %vm5914_vm0, %v5913_v0  ;;  %v1875_v14 = vpack.c.bf16 %v1739_v11, %v1739_v11  ;;  %v5729_v11 = vld [vmem:[%s7055_s5 + $0xa0] sm:$0xff]  }
 0xa38   :  { %v1867_v43 = vpop.f32.mrf.mxu1  ;;  %5331 = vmatprep.subr.bf16.mxu0 %v5913_v0 }
 0xa39   :  { %v1868_v42 = vadd.f32 %v4793_v23, %v1867_v43 }
 0xa3a   :  { %v5343_v46 = vpop.f32.mrf.mxu1 }
 0xa3b   :  { %5332 = vmatpush3.bf16.msra.mxu0 %v5725_v34  ;;  %v1878_v35 = vpack.c.bf16 %v1868_v42, %v1868_v42 }
 0xa3c   :  { %v1870_v48 = vpop.f32.mrf.mxu1  ;;  %5345 = vmatprep.subr.bf16.mxu0 %v5913_v0 }
 0xa3d   :  { %v1871_v6 = vadd.f32 %v4793_v23, %v1870_v48  ;;  %v2006_v36 = vsel %vm2004_vm3, %v1878_v35, 0 }
 0xa3e   :  { %5334 = vmatmul.mubr.msk.bf16.vlgmr.msra.gmra.mxu0 %vm74_vm1, %v6312_v10  ;;  %v5344_v49 = vpop.f32.mrf.mxu1 }
 0xa3f   :  { %5347 = vmatprep.mubr.msk.bf16.mxu0 %vm5914_vm0, %v5913_v0  ;;  %v1879_v12 = vpack.c.bf16 %v1871_v6, %v1871_v6  ;;  %v5727_v6 = vld [vmem:[%s7055_s5 + $0x90] sm:$0xff]  }
 0xa41   :  { %v2052_v39 = vsel %vm2004_vm3, %v1879_v12, 0  ;;  %v5731_v12 = vld [vmem:[%s7055_s5 + $0xb0] sm:$0xff]  }
 0xaf6   :  { %v6358_v50 = vpop.f32.mrf.mxu0 }
 0xaf8   :  { %v6360_v51 = vpop.f32.mrf.mxu0 }
 0xafa   :  { %v6362_v52 = vpop.f32.mrf.mxu0 }
 0xafc   :  { %v6364_v54 = vpop.f32.mrf.mxu0 }
 0xafe   :  { %v1801_v56 = vpop.f32.mrf.mxu0 }
 0xaff   :  { %v1802_v57 = vadd.f32 %v4784_v55, %v1801_v56 }
 0xb00   :  { %v5335_v58 = vpop.f32.mrf.mxu0 }
 0xb01   :  { %v1876_v19 = vpack.c.bf16 %v1802_v57, %v1802_v57 }
 0xb02   :  { %v1804_v60 = vpop.f32.mrf.mxu0 }
 0xb03   :  { %v1884_v61 = vsel %vm500_vm2, %v1876_v19, 0  ;;  %v1805_v62 = vadd.f32 %v4784_v55, %v1804_v60 }
 0xb04   :  { %v5336_v63 = vpop.f32.mrf.mxu0  ;;  %5346 = vmatpush3.bf16.xpose.msra.mxu0 %v1884_v61 }
 0xb05   :  { %v1877_v44 = vpack.c.bf16 %v1805_v62, %v1805_v62  ;;  %5357 = vmatprep.subr.bf16.mxu0 %v5913_v0  ;;  %v5726_v63 = vld [vmem:[%s7055_s5 + $0x98] sm:$0xff]  }
 0xb07   :  { %v1930_v7 = vsel %vm500_vm2, %v1877_v44, 0 }
 0xb08   :  { %5352 = vmatpush3.bf16.xpose.msra.mxu1 %v1930_v7  ;;  %v5728_v7 = vld [vmem:[%s7055_s5 + $0xa8] sm:$0xff]  }
 0xb09   :  { %5363 = vmatprep.subr.bf16.mxu1 %v5913_v0 }
 0xb0b   :  { %5348 = vmatmul.mubr.msk.bf16.vlgmr.msra.gmra.mxu0 %vm500_vm2, %v1874_v38 }
 0xb0c   :  { %5358 = vmatpush3.bf16.msra.mxu0 %v2006_v36  ;;  %5359 = vmatprep.mubr.msk.bf16.mxu0 %vm5914_vm0, %v5913_v0  ;;  %v5730_v36 = vld [vmem:[%s7055_s5 + $0xb8] sm:$0xff]  }
 0xb0d   :  { %5369 = vmatprep.subr.bf16.mxu0 %v5913_v0 }
 0xb0f   :  { %5354 = vmatmul.mubr.msk.bf16.vlgmr.msra.gmra.mxu1 %vm500_vm2, %v1875_v14 }
 0xb10   :  { %5364 = vmatpush3.bf16.msra.mxu1 %v2052_v39  ;;  %5365 = vmatprep.mubr.msk.bf16.mxu1 %vm5914_vm0, %v5913_v0 }
 0xb11   :  { %5377 = vmatprep.subr.bf16.mxu1 %v5913_v0 }
 0xbcb   :  { %v1920_v18 = vpop.f32.mrf.mxu0 }
 0xbcc   :  { %v1972_v22 = vmul.f32 0.25, %v1920_v18 }
 0xbcd   :  { %v5349_v24 = vpop.f32.mrf.mxu0 }
 0xbce   :  { %v1974_v26 = vadd.f32 %v1972_v22, %v6392_v17 }
 0xbcf   :  { %v1923_v28 = vpop.f32.mrf.mxu0  ;;  %v1966_v31 = vpop.f32.mrf.mxu1 }
 0xbd0   :  { %v1973_v29 = vmul.f32 0.25, %v1966_v31  ;;  %v1977_v33 = vsel %vm1976_vm4, %v1974_v26, -inf }
 0xbd1   :  { %v5350_v40 = vpop.f32.mrf.mxu0  ;;  %v5355_v32 = vpop.f32.mrf.mxu1  ;;  %1978 = vmax.xlane.f32.xlu0 %v1977_v33 }
 0xbd2   :  { %v1975_v27 = vadd.f32 %v1973_v29, %v6397_v25 }
 0xbd3   :  { %v1969_v30 = vpop.f32.mrf.mxu1 }
 0xbd4   :  { %v1980_v34 = vsel %vm1976_vm4, %v1975_v27, -inf }
 0xbd5   :  { %1981 = vmax.xlane.f32.xlu1 %v1980_v34  ;;  %v5356_v43 = vpop.f32.mrf.mxu1  ;;  %v4808_v34 = vld [vmem:[%s7057_s6 + $0x9] ss:$0 sm:$0xff] }
 0xc5a   :  { %v1979_v46 = vpop.xlane.xlu0 %1978 }
 0xc5b   :  { %v1983_v48 = vsub.f32 %v1974_v26, %v1979_v46 }
 0xc5d   :  { %v1985_v49 = vmul.f32 1.442695, %v1983_v48 }
 0xc5e   :  { %v1982_v55 = vpop.xlane.xlu1 %1981 }
 0xc5f   :  { %5812 = vpow2.f32 %v1985_v49  ;;  %v1984_v56 = vsub.f32 %v1975_v27, %v1982_v55  ;;  %v4826_v27 = vld [vmem:[%s7057_s6 + $0xb] ss:$0 sm:$0xff] }
 0xc61   :  { %v1987_v57 = vmul.f32 1.442695, %v1984_v56 }
 0xc63   :  { %5814 = vpow2.f32 %v1987_v57 }
 0xc6c   :  { %v5813_v23 = vpop.eup %5812 }
 0xc6d   :  { %v1989_v58 = vsel %vm1976_vm4, %v5813_v23, 0.0 }
 0xc6e   :  { %1990 = vadd.xlane.f32.xlu1 %v1989_v58 }
 0xc70   :  { %v5815_v19 = vpop.eup %5814 }
 0xc71   :  { %v1992_v59 = vsel %vm1976_vm4, %v5815_v19, 0.0 }
 0xc72   :  { %1993 = vadd.xlane.f32.xlu0 %v1992_v59 }
 0xcf7   :  { %v1991_v60 = vpop.xlane.xlu1 %1990 }
 0xcf8   :  { %5816 = vrcp.f32 %v1991_v60 }
 0xcfb   :  { %v1994_v42 = vpop.xlane.xlu0 %1993 }
 0xcfc   :  { %5818 = vrcp.f32 %v1994_v42 }
 0xd05   :  { %v5817_v61 = vpop.eup %5816 }
 0xd06   :  { %v1996_v62 = vmul.f32 %v5817_v61, %v5813_v23 }
 0xd08   :  { %v1999_v3 = vpack.c.bf16 %v1996_v62, %v1996_v62 }
 0xd09   :  { %v5819_v44 = vpop.eup %5818 }
 0xd0a   :  { %5360 = vmatmul.mubr.msk.bf16.vlgmr.msra.gmra.mxu0 %vm1976_vm4, %v1999_v3  ;;  %v1998_v35 = vmul.f32 %v5819_v44, %v5815_v19 }
 0xd0b   :  { %5370 = vmatpush3.bf16.msra.mxu0 %v5726_v63  ;;  %5373 = vmatprep.mubr.msk.bf16.mxu0 %vm5914_vm0, %v5913_v0 }
 0xd0c   :  { %v2000_v38 = vpack.c.bf16 %v1998_v35, %v1998_v35  ;;  %5371 = vmatprep.subr.bf16.mxu0 %v5913_v0 }
 0xd0e   :  { %5366 = vmatmul.mubr.msk.bf16.vlgmr.msra.gmra.mxu1 %vm1976_vm4, %v2000_v38 }
 0xd0f   :  { %5372 = vmatpush3.bf16.msra.mxu0 %v5727_v6  ;;  %5378 = vmatpush3.bf16.msra.mxu1 %v5728_v7 }
 0xd10   :  { %5379 = vmatprep.subr.bf16.mxu1 %v5913_v0  ;;  %5385 = vmatprep.subr.bf16.mxu0 %v5913_v0 }
 0xd11   :  { %5381 = vmatprep.mubr.msk.bf16.mxu1 %vm5914_vm0, %v5913_v0 }
 0xd12   :  { %5374 = vmatmul.mubr.msk.bf16.vlgmr.msra.gmra.mxu0 %vm74_vm1, %v6312_v10 }
 0xd13   :  { %5380 = vmatpush3.bf16.msra.mxu1 %v5729_v11  ;;  %5386 = vmatpush3.bf16.msra.mxu0 %v5730_v36 }
 0xd14   :  { %5387 = vmatprep.subr.bf16.mxu0 %v5913_v0  ;;  %5389 = vmatprep.mubr.msk.bf16.mxu0 %vm5914_vm0, %v5913_v0 }
 0xd15   :  { %5393 = vmatprep.subr.bf16.mxu1 %v5913_v0 }
 0xd16   :  { %5382 = vmatmul.mubr.msk.bf16.vlgmr.msra.gmra.mxu1 %vm74_vm1, %v6312_v10 }
 0xd17   :  { %5388 = vmatpush3.bf16.msra.mxu0 %v5731_v12  ;;  %5395 = vmatprep.mubr.msk.bf16.mxu1 %vm5914_vm0, %v5913_v0 }
 0xd18   :  { %5399 = vmatprep.subr.bf16.mxu0 %v5913_v0 }
 0xd1a   :  { %5390 = vmatmul.mubr.msk.bf16.vlgmr.msra.gmra.mxu0 %vm74_vm1, %v6312_v10  ;;  %v4817_v10 = vld [vmem:[%s7057_s6 + $0xa] ss:$0 sm:$0xff] }
 0xd1b   :  { %5401 = vmatprep.mubr.msk.bf16.mxu0 %vm5914_vm0, %v5913_v0 }
 0xdca   :  { %v6447_v14 = vpop.f32.mrf.mxu0 }
 0xdcc   :  { %v5361_v39 = vpop.f32.mrf.mxu0 }
 0xdce   :  { %v2045_v15 = vpop.f32.mrf.mxu0  ;;  %v6449_v16 = vpop.f32.mrf.mxu1 }
 0xdcf   :  { %v2094_v18 = vpack.c.bf16 %v6449_v16, %v6447_v14 }
 0xdd0   :  { %v5362_v20 = vpop.f32.mrf.mxu0  ;;  %v5367_v21 = vpop.f32.mrf.mxu1 }
 0xdd2   :  { %v2091_v22 = vpop.f32.mrf.mxu1  ;;  %v2157_v24 = vpop.f32.mrf.mxu0 }
 0xdd3   :  { %v2158_v23 = vadd.f32 %v4808_v34, %v2157_v24 }
 0xdd4   :  { %v5368_v26 = vpop.f32.mrf.mxu1  ;;  %v5375_v28 = vpop.f32.mrf.mxu0 }
 0xdd5   :  { %v2296_v62 = vpack.c.bf16 %v2158_v23, %v2158_v23  ;;  %v5732_v23 = vld [vmem:[%s7059_s7 + $0x10] sm:$0xff]  }
 0xdd6   :  { %v2160_v31 = vpop.f32.mrf.mxu0  ;;  %v2223_v29 = vpop.f32.mrf.mxu1 }
 0xdd7   :  { %v2224_v33 = vadd.f32 %v4817_v10, %v2223_v29  ;;  %v2161_v63 = vadd.f32 %v4808_v34, %v2160_v31 }
 0xdd8   :  { %v5376_v40 = vpop.f32.mrf.mxu0  ;;  %v5383_v32 = vpop.f32.mrf.mxu1 }
 0xdd9   :  { %v2298_v30 = vpack.c.bf16 %v2224_v33, %v2224_v33  ;;  %v2297_v35 = vpack.c.bf16 %v2161_v63, %v2161_v63 }
 0xdda   :  { %v2226_v43 = vpop.f32.mrf.mxu1  ;;  %v2289_v46 = vpop.f32.mrf.mxu0 }
 0xddb   :  { %v2306_v48 = vsel %vm500_vm2, %v2298_v30, 0  ;;  %v2227_v49 = vadd.f32 %v4817_v10, %v2226_v43  ;;  %v2290_v55 = vadd.f32 %v4826_v27, %v2289_v46 }
 0xddc   :  { %v5384_v56 = vpop.f32.mrf.mxu1  ;;  %v5391_v57 = vpop.f32.mrf.mxu0  ;;  %5394 = vmatpush3.bf16.xpose.msra.mxu1 %v2306_v48 }
 0xddd   :  { %v2299_v58 = vpack.c.bf16 %v2227_v49, %v2227_v49  ;;  %5405 = vmatprep.subr.bf16.mxu1 %v5913_v0  ;;  %v2300_v60 = vpack.c.bf16 %v2290_v55, %v2290_v55 }
 0xdde   :  { %v2292_v19 = vpop.f32.mrf.mxu0 }
 0xddf   :  { %v2352_v59 = vsel %vm500_vm2, %v2299_v58, 0  ;;  %v2293_v42 = vadd.f32 %v4826_v27, %v2292_v19  ;;  %v2426_v3 = vsel %vm2004_vm3, %v2300_v60, 0  ;;  %v5733_v19 = vld [vmem:[%s7059_s7 + $0x18] sm:$0xff]  }
 0xde0   :  { %v5392_v61 = vpop.f32.mrf.mxu0  ;;  %5400 = vmatpush3.bf16.xpose.msra.mxu0 %v2352_v59 }
 0xde1   :  { %5411 = vmatprep.subr.bf16.mxu0 %v5913_v0  ;;  %v2301_v44 = vpack.c.bf16 %v2293_v42, %v2293_v42 }
 0xde3   :  { %5396 = vmatmul.mubr.msk.bf16.vlgmr.msra.gmra.mxu1 %vm500_vm2, %v2296_v62  ;;  %v2472_v6 = vsel %vm2004_vm3, %v2301_v44, 0 }
 0xde4   :  { %5406 = vmatpush3.bf16.msra.mxu1 %v2426_v3  ;;  %5407 = vmatprep.mubr.msk.bf16.mxu1 %vm5914_vm0, %v5913_v0 }
 0xde5   :  { %5417 = vmatprep.subr.bf16.mxu1 %v5913_v0 }
 0xde7   :  { %5402 = vmatmul.mubr.msk.bf16.vlgmr.msra.gmra.mxu0 %vm500_vm2, %v2297_v35 }
 0xde8   :  { %5412 = vmatpush3.bf16.msra.mxu0 %v2472_v6  ;;  %5413 = vmatprep.mubr.msk.bf16.mxu0 %vm5914_vm0, %v5913_v0 }
 0xde9   :  { %5423 = vmatprep.subr.bf16.mxu0 %v5913_v0 }
 0xea3   :  { %v2342_v7 = vpop.f32.mrf.mxu1 }
 0xea4   :  { %v2394_v38 = vmul.f32 0.25, %v2342_v7  ;;  %v6508_v7 = vld [vmem:[%s7060_s9 + $0x8] sm:$0xff] }
 0xea5   :  { %v5397_v11 = vpop.f32.mrf.mxu1 }
 0xea6   :  { %v2396_v36 = vadd.f32 %v2394_v38, %v6392_v17  ;;  %v2621_v38 = vrot.slane %v6508_v7, %v6237_v41 }
 0xea7   :  { %v2345_v12 = vpop.f32.mrf.mxu1  ;;  %v2388_v39 = vpop.f32.mrf.mxu0 }
 0xea8   :  { %v2395_v15 = vmul.f32 0.25, %v2388_v39  ;;  %v2398_v20 = vsel %vm1976_vm4, %v2396_v36, -inf }
 0xea9   :  { %2399 = vmax.xlane.f32.xlu0 %v2398_v20  ;;  %v5398_v21 = vpop.f32.mrf.mxu1  ;;  %v5403_v22 = vpop.f32.mrf.mxu0 }
 0xeaa   :  { %v2397_v24 = vadd.f32 %v2395_v15, %v6397_v25 }
 0xeab   :  { %v2391_v26 = vpop.f32.mrf.mxu0 }
 0xeac   :  { %v2401_v28 = vsel %vm1976_vm4, %v2397_v24, -inf }
 0xead   :  { %2402 = vmax.xlane.f32.xlu1 %v2401_v28  ;;  %v5404_v10 = vpop.f32.mrf.mxu0 }
 0xf32   :  { %v2400_v31 = vpop.xlane.xlu0 %2399 }
 0xf33   :  { %v2404_v29 = vsub.f32 %v2396_v36, %v2400_v31 }
 0xf35   :  { %v2406_v33 = vmul.f32 1.442695, %v2404_v29 }
 0xf36   :  { %v2403_v40 = vpop.xlane.xlu1 %2402 }
 0xf37   :  { %5820 = vpow2.f32 %v2406_v33  ;;  %v2405_v17 = vsub.f32 %v2397_v24, %v2403_v40  ;;  %v6517_v33 = vsub.s32 2, %v6234_v37  ;;  %v1580_v40 = vadd.f32 %v6360_v51, %v6280_v1 }
 0xf38   :  { %v1583_v51 = vadd.f32 %v6362_v52, %v6288_v5  ;;  %v5734_v5 = vld [vmem:[%s7061_s8 + $0x28] sm:$0xff]   ;;  %v5735_v52 = vld [vmem:[%s7061_s8 + $0x20] sm:$0xff]  }
 0xf39   :  { %v2408_v32 = vmul.f32 1.442695, %v2405_v17 }
 0xf3b   :  { %5822 = vpow2.f32 %v2408_v32 }
 0xf44   :  { %v5821_v27 = vpop.eup %5820 }
 0xf45   :  { %v2410_v30 = vsel %vm1976_vm4, %v5821_v27, 0.0 }
 0xf46   :  { %2411 = vadd.xlane.f32.xlu0 %v2410_v30  ;;  %v1587_v30 = vrot.slane %v6242_v45, %v6517_v33 }
 0xf48   :  { %v5823_v34 = vpop.eup %5822 }
 0xf49   :  { %v2413_v25 = vsel %vm1976_vm4, %v5823_v34, 0.0 }
 0xf4a   :  { %2414 = vadd.xlane.f32.xlu1 %v2413_v25 }
 0xfcf   :  { %v2412_v43 = vpop.xlane.xlu0 %2411 }
 0xfd0   :  { %5824 = vrcp.f32 %v2412_v43 }
 0xfd3   :  { %v2415_v46 = vpop.xlane.xlu1 %2414 }
 0xfd4   :  { %5826 = vrcp.f32 %v2415_v46  ;;  %v1588_v46 = vadd.f32 %v1587_v30, %v1580_v40  ;;  %v5737_v40 = vld [vmem:[%s7061_s8 + $0x30] sm:$0xff]  }
 0xfdd   :  { %v5825_v48 = vpop.eup %5824 }
 0xfde   :  { %v2417_v49 = vmul.f32 %v5825_v48, %v5821_v27 }
 0xfe0   :  { %v2420_v55 = vpack.c.bf16 %v2417_v49, %v2417_v49  ;;  %v1592_v49 = vsel %vm74_vm1, %v1588_v46, 0.0 }
 0xfe1   :  { %v5827_v56 = vpop.eup %5826 }
 0xfe2   :  { %5408 = vmatmul.mubr.msk.bf16.vlgmr.msra.gmra.mxu1 %vm1976_vm4, %v2420_v55  ;;  %v2419_v57 = vmul.f32 %v5827_v56, %v5823_v34  ;;  %v1581_v34 = vadd.f32 %v6364_v54, %v6282_v2 }
 0xfe3   :  { %5419 = vmatprep.mubr.msk.bf16.mxu1 %vm5914_vm0, %v5913_v0  ;;  %5418 = vmatpush3.bf16.msra.mxu1 %v5733_v19 }
 0xfe4   :  { %v2421_v58 = vpack.c.bf16 %v2419_v57, %v2419_v57  ;;  %5429 = vmatprep.subr.bf16.mxu1 %v5913_v0  ;;  %v6532_v55 = vadd.f32 %v1587_v30, %v1581_v34 }
 0xfe6   :  { %5414 = vmatmul.mubr.msk.bf16.vlgmr.msra.gmra.mxu0 %vm1976_vm4, %v2421_v58 }
 0xfe7   :  { %5424 = vmatpush3.bf16.msra.mxu0 %v5732_v23  ;;  %5425 = vmatprep.mubr.msk.bf16.mxu0 %vm5914_vm0, %v5913_v0 }
 0xfe8   :  { %5437 = vmatprep.subr.bf16.mxu0 %v5913_v0 }
 0xfee   :  { %5426 = vmatmul.mubr.msk.bf16.vlgmr.msra.gmra.mxu0 %vm500_vm2, %v2094_v18 }
 0xfef   :  { %5441 = vmatprep.mubr.msk.bf16.mxu0 %vm5914_vm0, %v5913_v0 }
0x10a2   :  { %v2462_v59 = vpop.f32.mrf.mxu1 }
0x10a4   :  { %v5409_v60 = vpop.f32.mrf.mxu1 }
0x10a6   :  { %v2465_v42 = vpop.f32.mrf.mxu1  ;;  %v2508_v61 = vpop.f32.mrf.mxu0 }
0x10a7   :  { %v2514_v62 = vpack.c.bf16 %v2508_v61, %v2462_v59 }
0x10a8   :  { %v5410_v63 = vpop.f32.mrf.mxu1  ;;  %v5415_v3 = vpop.f32.mrf.mxu0 }
0x10a9   :  { %5420 = vmatmul.mubr.msk.bf16.vlgmr.msra.gmra.mxu1 %vm500_vm2, %v2514_v62 }
0x10aa   :  { %v2511_v14 = vpop.f32.mrf.mxu0  ;;  %5433 = vmatprep.mubr.msk.bf16.mxu1 %vm5914_vm0, %v5913_v0  ;;  %5430 = vmatpush3.bf16.msra.mxu1 %v5734_v5 }
0x10ab   :  { %5431 = vmatprep.subr.bf16.mxu1 %v5913_v0 }
0x10ac   :  { %v5416_v16 = vpop.f32.mrf.mxu0 }
0x10ae   :  { %v2611_v18 = vpop.f32.mrf.mxu0  ;;  %5432 = vmatpush3.bf16.msra.mxu1 %v5735_v52 }
0x10af   :  { %5445 = vmatprep.subr.bf16.mxu1 %v5913_v0 }
0x10b0   :  { %v5427_v44 = vpop.f32.mrf.mxu0 }
0x10b2   :  { %v2614_v35 = vpop.f32.mrf.mxu0 }
0x10b4   :  { %v5428_v6 = vpop.f32.mrf.mxu0 }
0x1169   :  { %v2561_v11 = vpop.f32.mrf.mxu1 }
0x116a   :  { %v2612_v36 = vadd.f32 %v2611_v18, %v2561_v11 }
0x116b   :  { %v5421_v12 = vpop.f32.mrf.mxu1 }
0x116c   :  { %v2622_v39 = vadd.f32 %v2621_v38, %v2612_v36 }
0x116d   :  { %v2564_v15 = vpop.f32.mrf.mxu1 }
0x116e   :  { %v2615_v20 = vadd.f32 %v2614_v35, %v2564_v15  ;;  %v2624_v21 = vadd.f32 %v6302_v8, %v2622_v39  ;;  %v2655_v15 = vrot.slane %v6508_v7, %v6266_v47 }
0x116f   :  { %v5422_v22 = vpop.f32.mrf.mxu1 }
0x1170   :  { %v2623_v24 = vadd.f32 %v2621_v38, %v2615_v20  ;;  %v2626_v26 = vsel %vm74_vm1, %v2624_v21, 0.0 }
0x1171   :  { %2627 = vadd.xlane.f32.xlu0 %v2626_v26 }
0x1172   :  { %v2625_v28 = vadd.f32 %v6305_v9, %v2623_v24  ;;  %v1582_v9 = vadd.f32 %v6358_v50, %v6286_v4  ;;  %v1595_v4 = vsel %vm74_vm1, %v6532_v55, 0.0  ;;  %v1591_v50 = vadd.f32 %v1587_v30, %v1583_v51 }
0x1173   :  { %v2661_v24 = vrot.slane %v6508_v7, %v6275_v53 }
0x1174   :  { %v2629_v10 = vsel %vm74_vm1, %v2625_v28, 0.0  ;;  %v1590_v1 = vadd.f32 %v1587_v30, %v1582_v9  ;;  %v1601_v54 = vsel %vm74_vm1, %v1591_v50, 0.0 }
0x1175   :  { %2630 = vadd.xlane.f32.xlu1 %v2629_v10 }
0x1176   :  { %v1598_v2 = vsel %vm74_vm1, %v1590_v1, 0.0 }
0x11fa   :  { %v2628_v31 = vpop.xlane.xlu0 %2627 }
0x11fb   :  { %v2632_v29 = vmul.f32 0.03125, %v2628_v31 }
0x11fd   :  { %v2634_v17 = vsub.f32 %v2624_v21, %v2632_v29  ;;  %v5736_v29 = vld [vmem:[%s7061_s8 + $0x38] sm:$0xff]  }
0x11fe   :  { %v2631_v8 = vpop.xlane.xlu1 %2630  ;;  %5438 = vmatpush3.bf16.msra.mxu0 %v5736_v29 }
0x11ff   :  { %v2633_v32 = vmul.f32 0.03125, %v2631_v8  ;;  %v2636_v27 = vmul.f32 %v2634_v17, %v2634_v17  ;;  %5439 = vmatprep.subr.bf16.mxu0 %v5913_v0 }
0x1201   :  { %v2635_v25 = vsub.f32 %v2625_v28, %v2633_v32  ;;  %v2638_v43 = vsel %vm74_vm1, %v2636_v27, 0.0 }
0x1202   :  { %2639 = vadd.xlane.f32.xlu0 %v2638_v43  ;;  %5440 = vmatpush3.bf16.msra.mxu0 %v5737_v40 }
0x1203   :  { %v2637_v48 = vmul.f32 %v2635_v25, %v2635_v25  ;;  %5461 = vmatprep.subr.bf16.mxu0 %v5913_v0 }
0x1205   :  { %v2641_v45 = vsel %vm74_vm1, %v2637_v48, 0.0 }
0x1206   :  { %1593 = vadd.xlane.f32.xlu0 %v1592_v49  ;;  %2642 = vadd.xlane.f32.xlu1 %v2641_v45 }
0x120a   :  { %1599 = vadd.xlane.f32.xlu0 %v1598_v2  ;;  %1596 = vadd.xlane.f32.xlu1 %v1595_v4 }
0x120e   :  { %1602 = vadd.xlane.f32.xlu0 %v1601_v54 }
0x128b   :  { %v2640_v56 = vpop.xlane.xlu0 %2639 }
0x128c   :  { %v2644_v57 = vmul.f32 0.03125, %v2640_v56 }
0x128e   :  { %v2646_v23 = vadd.f32 1e-05, %v2644_v57 }
0x128f   :  { %v1594_v58 = vpop.xlane.xlu0 %1593  ;;  %v2643_v19 = vpop.xlane.xlu1 %2642 }
0x1290   :  { %5828 = vrsqrt.f32 %v2646_v23  ;;  %v1604_v59 = vmul.f32 0.03125, %v1594_v58  ;;  %v2645_v60 = vmul.f32 0.03125, %v2643_v19 }
0x1292   :  { %v6546_v42 = vsub.f32 %v1588_v46, %v1604_v59  ;;  %v2647_v61 = vadd.f32 1e-05, %v2645_v60  ;;  %v5738_v59 = vld [vmem:[%s7055_s5 + $0xc8] sm:$0xff]   ;;  %v5740_v60 = vld [vmem:[%s7055_s5 + $0xc0] sm:$0xff]  }
0x1293   :  { %v1600_v62 = vpop.xlane.xlu0 %1599  ;;  %v1597_v48 = vpop.xlane.xlu1 %1596 }
0x1294   :  { %5830 = vrsqrt.f32 %v2647_v61  ;;  %v1606_v63 = vmul.f32 0.03125, %v1600_v62  ;;  %v1612_v3 = vmul.f32 %v6546_v42, %v6546_v42  ;;  %v1605_v49 = vmul.f32 0.03125, %v1597_v48  ;;  %v5741_v61 = vld [vmem:[%s7055_s5 + $0xd0] sm:$0xff]  }
0x1296   :  { %v6550_v14 = vsub.f32 %v1590_v1, %v1606_v63  ;;  %v1616_v16 = vsel %vm74_vm1, %v1612_v3, 0.0  ;;  %v2799_v1 = vrot.slane %v6508_v7, %v6517_v33  ;;  %v1609_v54 = vsub.f32 %v6532_v55, %v1605_v49  ;;  %v5739_v55 = vld [vmem:[%s7055_s5 + $0xd8] sm:$0xff]  }
0x1297   :  { %1617 = vadd.xlane.f32.xlu0 %v1616_v16  ;;  %v1603_v18 = vpop.xlane.xlu0 %1602 }
0x1298   :  { %v1607_v44 = vmul.f32 0.03125, %v1603_v18  ;;  %v1614_v35 = vmul.f32 %v6550_v14, %v6550_v14  ;;  %v1613_v58 = vmul.f32 %v1609_v54, %v1609_v54 }
0x129a   :  { %v6555_v6 = vsub.f32 %v1591_v50, %v1607_v44  ;;  %v1622_v38 = vsel %vm74_vm1, %v1614_v35, 0.0  ;;  %v1619_v19 = vsel %vm74_vm1, %v1613_v58, 0.0 }
0x129b   :  { %1623 = vadd.xlane.f32.xlu0 %v1622_v38 }
0x129c   :  { %v1615_v11 = vmul.f32 %v6555_v6, %v6555_v6 }
0x129d   :  { %v5829_v36 = vpop.eup %5828 }
0x129e   :  { %v2650_v12 = vmul.f32 %v5829_v36, %v2634_v17  ;;  %v1625_v39 = vsel %vm74_vm1, %v1615_v11, 0.0  ;;  %v2673_v17 = vrot.slane %v6508_v7, %v6336_v13 }
0x129f   :  { %1626 = vadd.xlane.f32.xlu0 %v1625_v39 }
0x12a0   :  { %v2656_v22 = vmul.f32 %v2655_v15, %v2650_v12 }
0x12a1   :  { %v5831_v20 = vpop.eup %5830 }
0x12a2   :  { %v2651_v21 = vmul.f32 %v5831_v20, %v2635_v25  ;;  %v2662_v28 = vadd.f32 %v2661_v24, %v2656_v22 }
0x12a4   :  { %v2657_v26 = vmul.f32 %v2655_v15, %v2651_v21 }
0x12a6   :  { %v2663_v10 = vadd.f32 %v2661_v24, %v2657_v26  ;;  %v6605_v24 = vsub.s32 5, %v6234_v37 }
0x12a8   :  { %v2664_v31 = vpack.c.bf16 %v2663_v10, %v2662_v28 }
0x12aa   :  { %5434 = vmatmul.mubr.msk.bf16.vlgmr.msra.gmra.mxu1 %vm74_vm1, %v2664_v31  ;;  %v6612_v31 = vsub.s32 6, %v6234_v37  ;;  %v5742_v37 = vld [vmem:[%s7055_s5 + $0xe8] sm:$0xff]  }
0x12ab   :  { %5449 = vmatprep.mubr.msk.bf16.mxu1 %vm5914_vm0, %v5913_v0  ;;  %5446 = vmatpush3.bf16.msra.mxu1 %v5738_v59 }
0x12ac   :  { %5447 = vmatprep.subr.bf16.mxu1 %v5913_v0  ;;  %v2837_v58 = vrot.slane %v6508_v7, %v6612_v31 }
0x12af   :  { %5448 = vmatpush3.bf16.msra.mxu1 %v5740_v60 }
0x12b0   :  { %5477 = vmatprep.subr.bf16.mxu1 %v5913_v0 }
0x1320   :  { %v1618_v62 = vpop.xlane.xlu0 %1617 }
0x1321   :  { %v1628_v63 = vmul.f32 0.03125, %v1618_v62 }
0x1323   :  { %v1632_v18 = vadd.f32 1e-05, %v1628_v63 }
0x1325   :  { %5832 = vrsqrt.f32 %v1632_v18 }
0x1332   :  { %v5833_v26 = vpop.eup %5832 }
0x1333   :  { %v1640_v29 = vmul.f32 %v5833_v26, %v6546_v42  ;;  %v5743_v42 = vld [vmem:[%s7055_s5 + $0xe0] sm:$0xff]  }
0x136a   :  { %v2723_v8 = vpop.f32.mrf.mxu1 }
0x136b   :  { %v2724_v27 = vadd.f32 %v2723_v8, %v2673_v17 }
0x136c   :  { %v5435_v32 = vpop.f32.mrf.mxu1 }
0x136d   :  { %v2730_v25 = vmax.f32 %v2724_v27, 0.0 }
0x136e   :  { %v2726_v30 = vpop.f32.mrf.mxu1 }
0x136f   :  { %v2727_v9 = vadd.f32 %v2726_v30, %v2673_v17 }
0x1370   :  { %v5436_v34 = vpop.f32.mrf.mxu1 }
0x1371   :  { %v2731_v43 = vmax.f32 %v2727_v9, 0.0 }
0x1373   :  { %v2732_v46 = vpack.c.bf16 %v2731_v43, %v2730_v25  ;;  %v1624_v25 = vpop.xlane.xlu0 %1623 }
0x1374   :  { %v1630_v43 = vmul.f32 0.03125, %v1624_v25 }
0x1375   :  { %5442 = vmatmul.mubr.msk.bf16.vlgmr.msra.gmra.mxu0 %vm74_vm1, %v2732_v46 }
0x1376   :  { %5465 = vmatprep.mubr.msk.bf16.mxu0 %vm5914_vm0, %v5913_v0  ;;  %5462 = vmatpush3.bf16.msra.mxu0 %v5739_v55  ;;  %v1634_v46 = vadd.f32 1e-05, %v1630_v43 }
0x1377   :  { %5463 = vmatprep.subr.bf16.mxu0 %v5913_v0  ;;  %v1627_v48 = vpop.xlane.xlu0 %1626 }
0x137a   :  { %5464 = vmatpush3.bf16.msra.mxu0 %v5741_v61 }
0x1435   :  { %v2787_v51 = vpop.f32.mrf.mxu0 }
0x1436   :  { %v2794_v45 = vadd.f32 %v2787_v51, %v2662_v28  ;;  %v5910_v28 = vld [vmem:[%s7060_s9] sm:$0xff] }
0x1437   :  { %v5443_v2 = vpop.f32.mrf.mxu0  ;;  %v1655_v17 = vrot.slane %v5910_v28, %v6612_v31 }
0x1438   :  { %v2800_v4 = vadd.f32 %v2799_v1, %v2794_v45 }
0x1439   :  { %v2790_v50 = vpop.f32.mrf.mxu0 }
0x143a   :  { %v2795_v5 = vadd.f32 %v2790_v50, %v2663_v10  ;;  %v2802_v52 = vsel %vm74_vm1, %v2800_v4, 0.0  ;;  %v1647_v10 = vrot.slane %v5910_v28, %v6605_v24 }
0x143b   :  { %2803 = vadd.xlane.f32.xlu1 %v2802_v52  ;;  %v5444_v56 = vpop.f32.mrf.mxu0 }
0x143c   :  { %v2801_v57 = vadd.f32 %v2799_v1, %v2795_v5  ;;  %v1648_v8 = vmul.f32 %v1647_v10, %v1640_v29  ;;  %v1631_v1 = vmul.f32 0.03125, %v1627_v48  ;;  %v2831_v56 = vrot.slane %v6508_v7, %v6605_v24 }
0x143e   :  { %v2805_v23 = vsel %vm74_vm1, %v2801_v57, 0.0  ;;  %v6616_v30 = vadd.f32 %v1655_v17, %v1648_v8  ;;  %v1635_v45 = vadd.f32 1e-05, %v1631_v1 }
0x143f   :  { %2806 = vadd.xlane.f32.xlu1 %v2805_v23 }
0x1443   :  { %1620 = vadd.xlane.f32.xlu1 %v1619_v19 }
0x14c4   :  { %v2804_v3 = vpop.xlane.xlu1 %2803 }
0x14c5   :  { %v2808_v16 = vmul.f32 0.03125, %v2804_v3 }
0x14c7   :  { %v2810_v44 = vsub.f32 %v2800_v4, %v2808_v16 }
0x14c8   :  { %v2807_v35 = vpop.xlane.xlu1 %2806 }
0x14c9   :  { %v2809_v38 = vmul.f32 0.03125, %v2807_v35  ;;  %v2812_v11 = vmul.f32 %v2810_v44, %v2810_v44 }
0x14cb   :  { %v2811_v36 = vsub.f32 %v2801_v57, %v2809_v38  ;;  %v2814_v12 = vsel %vm74_vm1, %v2812_v11, 0.0  ;;  %v6688_v11 = vld [vmem:[%s7057_s6 + $0xc] ss:$0 sm:$0xff] }
0x14cc   :  { %2815 = vadd.xlane.f32.xlu1 %v2814_v12  ;;  %v1621_v39 = vpop.xlane.xlu1 %1620 }
0x14cd   :  { %v1629_v15 = vmul.f32 0.03125, %v1621_v39  ;;  %v2813_v20 = vmul.f32 %v2811_v36, %v2811_v36 }
0x14cf   :  { %v1633_v21 = vadd.f32 1e-05, %v1629_v15  ;;  %v2817_v22 = vsel %vm74_vm1, %v2813_v20, 0.0 }
0x14d0   :  { %2818 = vadd.xlane.f32.xlu1 %v2817_v22 }
0x14d1   :  { %5834 = vrsqrt.f32 %v1633_v21 }
0x14d2   :  { %5836 = vrsqrt.f32 %v1634_v46 }
0x14de   :  { %v5835_v40 = vpop.eup %5834 }
0x14df   :  { %v1641_v32 = vmul.f32 %v5835_v40, %v1609_v54  ;;  %v5837_v5 = vpop.eup %5836 }
0x14e0   :  { %v1642_v52 = vmul.f32 %v5837_v5, %v6550_v14 }
0x14e1   :  { %v1649_v27 = vmul.f32 %v1647_v10, %v1641_v32 }
0x14e2   :  { %v1650_v23 = vmul.f32 %v1647_v10, %v1642_v52 }
0x14e3   :  { %v6618_v9 = vadd.f32 %v1655_v17, %v1649_v27 }
0x14e4   :  { %v6644_v61 = vadd.f32 %v1655_v17, %v1650_v23 }
0x14e5   :  { %v6622_v34 = vpack.c.bf16 %v6618_v9, %v6616_v30 }
0x14e7   :  { %5450 = vmatmul.mubr.msk.bf16.vlgmr.msra.gmra.mxu1 %vm74_vm1, %v6622_v34  ;;  %5466 = vmatmul.mubr.msk.bf16.vlgmr.msra.gmra.mxu0 %vm74_vm1, %v6622_v34 }
0x14e8   :  { %5453 = vmatprep.mubr.msk.bf16.mxu1 %vm5914_vm0, %v5913_v0  ;;  %5469 = vmatprep.mubr.msk.bf16.mxu0 %vm5914_vm0, %v5913_v0 }
0x14e9   :  { %5478 = vmatpush3.bf16.msra.mxu1 %v5742_v37 }
0x14ea   :  { %5479 = vmatprep.subr.bf16.mxu1 %v5913_v0 }
0x14ed   :  { %5480 = vmatpush3.bf16.msra.mxu1 %v5743_v42 }
0x1555   :  { %v2816_v51 = vpop.xlane.xlu1 %2815 }
0x1556   :  { %v2820_v49 = vmul.f32 0.03125, %v2816_v51 }
0x1558   :  { %v2822_v2 = vadd.f32 1e-05, %v2820_v49 }
0x1559   :  { %v2819_v4 = vpop.xlane.xlu1 %2818 }
0x155a   :  { %5838 = vrsqrt.f32 %v2822_v2  ;;  %v2821_v50 = vmul.f32 0.03125, %v2819_v4 }
0x155b   :  { %5840 = vrsqrt.f32 %v1635_v45 }
0x155c   :  { %v2823_v54 = vadd.f32 1e-05, %v2821_v50 }
0x155e   :  { %5842 = vrsqrt.f32 %v2823_v54 }
0x1567   :  { %v5839_v57 = vpop.eup %5838 }
0x1568   :  { %v2826_v19 = vmul.f32 %v5839_v57, %v2810_v44  ;;  %v5841_v59 = vpop.eup %5840 }
0x1569   :  { %v1643_v62 = vmul.f32 %v5841_v59, %v6555_v6 }
0x156a   :  { %v2832_v55 = vmul.f32 %v2831_v56, %v2826_v19 }
0x156b   :  { %v5843_v60 = vpop.eup %5842  ;;  %v1651_v18 = vmul.f32 %v1647_v10, %v1643_v62 }
0x156c   :  { %v6647_v63 = vadd.f32 %v2837_v58, %v2832_v55  ;;  %v2827_v3 = vmul.f32 %v5843_v60, %v2811_v36  ;;  %v4871_v36 = vld [vmem:[%s7057_s6 + $0xd] ss:$0 sm:$0xff] }
0x156d   :  { %v6663_v6 = vadd.f32 %v1655_v17, %v1651_v18 }
0x156e   :  { %v2833_v14 = vmul.f32 %v2831_v56, %v2827_v3  ;;  %v6651_v16 = vpack.c.bf16 %v6644_v61, %v6647_v63 }
0x1570   :  { %5454 = vmatmul.mubr.msk.bf16.gmra.mxu1 %vm74_vm1, %v6651_v16  ;;  %5470 = vmatmul.mubr.msk.bf16.gmra.mxu0 %vm74_vm1, %v6651_v16  ;;  %v6661_v7 = vadd.f32 %v2837_v58, %v2833_v14 }
0x1571   :  { %5457 = vmatprep.mubr.msk.bf16.mxu1 %vm5914_vm0, %v5913_v0  ;;  %5473 = vmatprep.mubr.msk.bf16.mxu0 %vm5914_vm0, %v5913_v0 }
0x1572   :  { %v6667_v44 = vpack.c.bf16 %v6661_v7, %v6663_v6 }
0x1578   :  { %5458 = vmatmul.mubr.msk.bf16.gmra.mxu1 %vm74_vm1, %v6667_v44  ;;  %5474 = vmatmul.mubr.msk.bf16.gmra.mxu0 %vm74_vm1, %v6667_v44 }
0x1579   :  { %5481 = vmatprep.mubr.msk.bf16.mxu1 %vm5914_vm0, %v5913_v0 }
0x1580   :  { %5482 = vmatmul.mubr.msk.bf16.vlgmr.msra.gmra.mxu1 %vm74_vm1, %v6622_v34 }
0x1581   :  { %5485 = vmatprep.mubr.msk.bf16.mxu1 %vm5914_vm0, %v5913_v0 }
0x1588   :  { %5486 = vmatmul.mubr.msk.bf16.gmra.mxu1 %vm74_vm1, %v6651_v16 }
0x1589   :  { %5489 = vmatprep.mubr.msk.bf16.mxu1 %vm5914_vm0, %v5913_v0 }
0x1590   :  { %5490 = vmatmul.mubr.msk.bf16.gmra.mxu1 %vm74_vm1, %v6667_v44 }
0x15a7   :  { %v2913_v35 = vpop.f32.mrf.mxu1  ;;  %v2995_v38 = vpop.f32.mrf.mxu0 }
0x15a8   :  { %v2914_v21 = vadd.f32 %v6688_v11, %v2913_v35  ;;  %v2996_v22 = vadd.f32 %v4871_v36, %v2995_v38 }
0x15a9   :  { %v5451_v12 = vpop.f32.mrf.mxu1  ;;  %v5467_v39 = vpop.f32.mrf.mxu0 }
0x15ab   :  { %v2916_v15 = vpop.f32.mrf.mxu1  ;;  %v2998_v20 = vpop.f32.mrf.mxu0 }
0x15ac   :  { %v2917_v26 = vadd.f32 %v6688_v11, %v2916_v15  ;;  %v2999_v28 = vadd.f32 %v4871_v36, %v2998_v20  ;;  %v4882_v15 = vld [vmem:[%s7057_s6 + $0xe] ss:$0 sm:$0xff] }
0x15ad   :  { %v5452_v10 = vpop.f32.mrf.mxu1  ;;  %v5468_v29 = vpop.f32.mrf.mxu0 }
0x15ae   :  { %v3100_v40 = vpack.c.bf16 %v2917_v26, %v2914_v21  ;;  %v3104_v17 = vpack.c.bf16 %v2999_v28, %v2996_v22 }
0x15b0   :  { %5497 = vmatprep.mubr.msk.bf16.mxu0 %vm500_vm2, %v3100_v40  ;;  %v3119_v52 = vsel %vm500_vm2, %v3104_v17, 0 }
0x1630   :  { %v2921_v8 = vpop.f32.mrf.mxu1  ;;  %v3003_v32 = vpop.f32.mrf.mxu0 }
0x1631   :  { %v3004_v27 = vadd.f32 %v4871_v36, %v3003_v32  ;;  %v2922_v23 = vadd.f32 %v6688_v11, %v2921_v8 }
0x1632   :  { %v5455_v37 = vpop.f32.mrf.mxu1  ;;  %v5471_v42 = vpop.f32.mrf.mxu0 }
0x1633   :  { %v3105_v25 = vpack.c.bf16 %v3004_v27, %v3004_v27  ;;  %v3101_v3 = vpack.c.bf16 %v2922_v23, %v2922_v23  ;;  %v6723_v23 = vld [vmem:[%s7058_s1 + $0x1] ss:$0 sm:$0xff] }
0x1634   :  { %v2924_v43 = vpop.f32.mrf.mxu1  ;;  %v3006_v46 = vpop.f32.mrf.mxu0 }
0x1635   :  { %v3122_v48 = vsel %vm500_vm2, %v3105_v25, 0  ;;  %5681 = vmatprep.subr.msk.bf16.mxu0 %vm500_vm2, %v3105_v25  ;;  %v2925_v60 = vadd.f32 %v6688_v11, %v2924_v43  ;;  %v3007_v14 = vadd.f32 %v4871_v36, %v3006_v46 }
0x1636   :  { %v5456_v1 = vpop.f32.mrf.mxu1  ;;  %v5472_v51 = vpop.f32.mrf.mxu0  ;;  %5494 = vmatpush3.bf16.xpose.msra.mxu0 %v3122_v48 }
0x1637   :  { %5682 = vmatprep.subr.msk.bf16.mxu0 %vm500_vm2, %v3104_v17 }
0x1638   :  { %v2929_v49 = vpop.f32.mrf.mxu1  ;;  %v3011_v45 = vpop.f32.mrf.mxu0 }
0x1639   :  { %v2930_v19 = vadd.f32 %v6688_v11, %v2929_v49  ;;  %v3012_v55 = vadd.f32 %v4871_v36, %v3011_v45 }
0x163a   :  { %v5459_v2 = vpop.f32.mrf.mxu1  ;;  %v5475_v4 = vpop.f32.mrf.mxu0 }
0x163b   :  { %v3102_v18 = vpack.c.bf16 %v2930_v19, %v2925_v60  ;;  %v3106_v38 = vpack.c.bf16 %v3012_v55, %v3007_v14 }
0x163c   :  { %v2932_v50 = vpop.f32.mrf.mxu1  ;;  %v3014_v54 = vpop.f32.mrf.mxu0 }
0x163d   :  { %v3015_v5 = vadd.f32 %v4871_v36, %v3014_v54  ;;  %v3179_v17 = vsel %vm500_vm2, %v3106_v38, 0  ;;  %v2933_v32 = vadd.f32 %v6688_v11, %v2932_v50 }
0x163e   :  { %v5460_v56 = vpop.f32.mrf.mxu1  ;;  %v5476_v57 = vpop.f32.mrf.mxu0  ;;  %5496 = vmatpush3.bf16.xpose.msra.mxu0 %v3119_v52 }
0x163f   :  { %v3107_v58 = vpack.c.bf16 %v3015_v5, %v3015_v5  ;;  %v3103_v42 = vpack.c.bf16 %v2933_v32, %v2933_v32 }
0x1640   :  { %v3077_v59 = vpop.f32.mrf.mxu1 }
0x1641   :  { %5683 = vmatprep.subr.msk.bf16.mxu0 %vm500_vm2, %v3107_v58  ;;  %v3182_v12 = vsel %vm500_vm2, %v3107_v58, 0  ;;  %v3078_v26 = vadd.f32 %v4882_v15, %v3077_v59 }
0x1642   :  { %v5483_v62 = vpop.f32.mrf.mxu1 }
0x1644   :  { %v3080_v35 = vpop.f32.mrf.mxu1 }
0x1645   :  { %5498 = vmatmul.mubr.msk.bf16.vlgmr.msra.gmra.mxu0 %vm500_vm2, %v3101_v3  ;;  %v3081_v21 = vadd.f32 %v4882_v15, %v3080_v35 }
0x1646   :  { %v5484_v39 = vpop.f32.mrf.mxu1  ;;  %5502 = vmatpush3.bf16.xpose.msra.mxu0 %v3182_v12  ;;  %5505 = vmatprep.mubr.msk.bf16.mxu0 %vm500_vm2, %v3102_v18  ;;  %v6734_v12 = vld [vmem:[%s7058_s1] ss:$0 sm:$0xff] }
0x1647   :  { %5684 = vmatprep.subr.msk.bf16.mxu0 %vm500_vm2, %v3106_v38  ;;  %v3108_v29 = vpack.c.bf16 %v3081_v21, %v3078_v26 }
0x1648   :  { %v3085_v20 = vpop.f32.mrf.mxu1 }
0x1649   :  { %v3086_v36 = vadd.f32 %v4882_v15, %v3085_v20 }
0x164a   :  { %v5487_v22 = vpop.f32.mrf.mxu1 }
0x164b   :  { %v3109_v28 = vpack.c.bf16 %v3086_v36, %v3086_v36 }
0x164c   :  { %v3088_v10 = vpop.f32.mrf.mxu1 }
0x164d   :  { %v3322_v40 = vsel %vm2004_vm3, %v3109_v28, 0  ;;  %5685 = vmatprep.subr.msk.bf16.mxu1 %vm2004_vm3, %v3109_v28  ;;  %v3089_v1 = vadd.f32 %v4882_v15, %v3088_v10 }
0x164e   :  { %v5488_v8 = vpop.f32.mrf.mxu1  ;;  %5504 = vmatpush3.bf16.xpose.msra.mxu0 %v3179_v17  ;;  %5510 = vmatpush3.bf16.msra.mxu1 %v3322_v40 }
0x164f   :  { %5511 = vmatprep.subr.bf16.mxu1 %v3108_v29 }
0x1650   :  { %v3093_v27 = vpop.f32.mrf.mxu1 }
0x1651   :  { %v3094_v43 = vadd.f32 %v4882_v15, %v3093_v27 }
0x1652   :  { %v5491_v37 = vpop.f32.mrf.mxu1  ;;  %5512 = vmatpush3.bf16.msra.mxu1 %v3108_v29 }
0x1653   :  { %5525 = vmatprep.subr.bf16.mxu1 %v5913_v0  ;;  %v3110_v49 = vpack.c.bf16 %v3094_v43, %v3089_v1 }
0x1654   :  { %v3096_v25 = vpop.f32.mrf.mxu1 }
0x1655   :  { %v3097_v46 = vadd.f32 %v4882_v15, %v3096_v25  ;;  %5506 = vmatmul.mubr.msk.bf16.vlgmr.msra.gmra.mxu0 %vm500_vm2, %v3103_v42 }
0x1656   :  { %v5492_v48 = vpop.f32.mrf.mxu1 }
0x1657   :  { %v3111_v51 = vpack.c.bf16 %v3097_v46, %v3097_v46 }
0x1659   :  { %v3379_v45 = vsel %vm2004_vm3, %v3111_v51, 0  ;;  %5686 = vmatprep.subr.msk.bf16.mxu0 %vm2004_vm3, %v3111_v51 }
0x165a   :  { %5518 = vmatpush3.bf16.msra.mxu0 %v3379_v45 }
0x165b   :  { %5519 = vmatprep.subr.bf16.mxu0 %v3110_v49 }
0x165e   :  { %5520 = vmatpush3.bf16.msra.mxu0 %v3110_v49 }
0x165f   :  { %5541 = vmatprep.subr.bf16.mxu0 %v5913_v0 }
0x1705   :  { %v5499_v11 = vpop.f32.mrf.mxu0 }
0x1706   :  { %v3234_v18 = vmul.f32 0.25, %v5499_v11 }
0x1707   :  { %v3158_v2 = vpop.f32.mrf.mxu0 }
0x1708   :  { %v3232_v19 = vmul.f32 0.25, %v3158_v2  ;;  %v3240_v36 = vadd.f32 %v6734_v12, %v3234_v18 }
0x1709   :  { %v5500_v4 = vpop.f32.mrf.mxu0 }
0x170a   :  { %v3238_v15 = vadd.f32 %v6734_v12, %v3232_v19  ;;  %v3251_v22 = vsel %vm3244_vm5, %v3240_v36, -inf }
0x170b   :  { %v3161_v50 = vpop.f32.mrf.mxu0 }
0x170c   :  { %v3233_v55 = vmul.f32 0.25, %v3161_v50  ;;  %v3245_v21 = vsel %vm3244_vm5, %v3238_v15, -inf }
0x170e   :  { %v3239_v39 = vadd.f32 %v6734_v12, %v3233_v55 }
0x1710   :  { %v3248_v20 = vsel %vm3244_vm5, %v3239_v39, -inf }
0x1715   :  { %v5507_v54 = vpop.f32.mrf.mxu0 }
0x1716   :  { %v3237_v52 = vmul.f32 0.25, %v5507_v54 }
0x1717   :  { %v3218_v5 = vpop.f32.mrf.mxu0 }
0x1718   :  { %v3235_v56 = vmul.f32 0.25, %v3218_v5  ;;  %v3243_v3 = vadd.f32 %v6723_v23, %v3237_v52 }
0x1719   :  { %v5508_v57 = vpop.f32.mrf.mxu0 }
0x171a   :  { %v3241_v58 = vadd.f32 %v6723_v23, %v3235_v56  ;;  %v3260_v35 = vsel %vm3244_vm5, %v3243_v3, -inf }
0x171b   :  { %v3221_v59 = vpop.f32.mrf.mxu0 }
0x171c   :  { %v3236_v60 = vmul.f32 0.25, %v3221_v59  ;;  %v3254_v62 = vsel %vm3244_vm5, %v3241_v58, -inf }
0x171d   :  { %3255 = vmax.xlane.f32.xlu0 %v3254_v62 }
0x171e   :  { %v3242_v14 = vadd.f32 %v6723_v23, %v3236_v60 }
0x1720   :  { %v3257_v38 = vsel %vm3244_vm5, %v3242_v14, -inf }
0x1721   :  { %3261 = vmax.xlane.f32.xlu0 %v3260_v35  ;;  %3258 = vmax.xlane.f32.xlu1 %v3257_v38 }
0x1725   :  { %3249 = vmax.xlane.f32.xlu0 %v3248_v20  ;;  %3246 = vmax.xlane.f32.xlu1 %v3245_v21 }
0x1729   :  { %3252 = vmax.xlane.f32.xlu1 %v3251_v22 }
0x17a6   :  { %v3256_v26 = vpop.xlane.xlu0 %3255 }
0x17a7   :  { %v3266_v28 = vsub.f32 %v3241_v58, %v3256_v26  ;;  %v5744_v26 = vld [vmem:[%s7055_s5 + $0x108] sm:$0xff]  }
0x17a9   :  { %v3275_v10 = vmul.f32 1.442695, %v3266_v28 }
0x17aa   :  { %v3262_v29 = vpop.xlane.xlu0 %3261  ;;  %v3259_v40 = vpop.xlane.xlu1 %3258 }
0x17ab   :  { %5844 = vpow2.f32 %v3275_v10  ;;  %v3268_v17 = vsub.f32 %v3243_v3, %v3262_v29  ;;  %v3267_v8 = vsub.f32 %v3242_v14, %v3259_v40 }
0x17ad   :  { %v3279_v32 = vmul.f32 1.442695, %v3268_v17  ;;  %v3277_v27 = vmul.f32 1.442695, %v3267_v8  ;;  %v5745_v17 = vld [vmem:[%s7055_s5 + $0x100] sm:$0xff]  }
0x17ae   :  { %v3250_v37 = vpop.xlane.xlu0 %3249  ;;  %v3247_v42 = vpop.xlane.xlu1 %3246 }
0x17af   :  { %5846 = vpow2.f32 %v3279_v32  ;;  %v3264_v25 = vsub.f32 %v3239_v39, %v3250_v37  ;;  %v3263_v43 = vsub.f32 %v3238_v15, %v3247_v42  ;;  %v5747_v42 = vld [vmem:[%s7055_s5 + $0xf0] sm:$0xff]  }
0x17b0   :  { %5848 = vpow2.f32 %v3277_v27  ;;  %v5746_v27 = vld [vmem:[%s7055_s5 + $0xf8] sm:$0xff]  }
0x17b1   :  { %v3271_v46 = vmul.f32 1.442695, %v3264_v25  ;;  %v3269_v48 = vmul.f32 1.442695, %v3263_v43  ;;  %v5748_v25 = vld [vmem:[%s7055_s5 + $0x118] sm:$0xff]   ;;  %v5749_v43 = vld [vmem:[%s7055_s5 + $0x110] sm:$0xff]  }
0x17b2   :  { %v3253_v1 = vpop.xlane.xlu1 %3252 }
0x17b3   :  { %5850 = vpow2.f32 %v3271_v46  ;;  %v3265_v51 = vsub.f32 %v3240_v36, %v3253_v1 }
0x17b4   :  { %5852 = vpow2.f32 %v3269_v48 }
0x17b5   :  { %v3273_v49 = vmul.f32 1.442695, %v3265_v51 }
0x17b7   :  { %5854 = vpow2.f32 %v3273_v49 }
0x17b8   :  { %v5845_v45 = vpop.eup %5844 }
0x17b9   :  { %v3290_v11 = vsel %vm3244_vm5, %v5845_v45, 0.0 }
0x17ba   :  { %3291 = vadd.xlane.f32.xlu0 %v3290_v11 }
0x17bc   :  { %v5847_v2 = vpop.eup %5846 }
0x17bd   :  { %v5849_v4 = vpop.eup %5848  ;;  %v3296_v50 = vsel %vm3244_vm5, %v5847_v2, 0.0 }
0x17be   :  { %3297 = vadd.xlane.f32.xlu0 %v3296_v50  ;;  %v3293_v54 = vsel %vm3244_vm5, %v5849_v4, 0.0 }
0x17bf   :  { %3294 = vadd.xlane.f32.xlu1 %v3293_v54 }
0x17c0   :  { %v5851_v5 = vpop.eup %5850 }
0x17c1   :  { %v5853_v52 = vpop.eup %5852  ;;  %v3284_v56 = vsel %vm3244_vm5, %v5851_v5, 0.0 }
0x17c2   :  { %3285 = vadd.xlane.f32.xlu0 %v3284_v56  ;;  %v3281_v57 = vsel %vm3244_vm5, %v5853_v52, 0.0  ;;  %v4914_v56 = vld [vmem:[%s7057_s6 + $0x10] ss:$0 sm:$0xff] }
0x17c3   :  { %3282 = vadd.xlane.f32.xlu1 %v3281_v57 }
0x17c4   :  { %v5855_v58 = vpop.eup %5854 }
0x17c5   :  { %v3287_v19 = vsel %vm3244_vm5, %v5855_v58, 0.0 }
0x17c7   :  { %3288 = vadd.xlane.f32.xlu1 %v3287_v19  ;;  %v4903_v19 = vld [vmem:[%s7057_s6 + $0xf] ss:$0 sm:$0xff] }
0x1843   :  { %v3292_v59 = vpop.xlane.xlu0 %3291 }
0x1844   :  { %5856 = vrcp.f32 %v3292_v59 }
0x1847   :  { %v3298_v55 = vpop.xlane.xlu0 %3297 }
0x1848   :  { %5858 = vrcp.f32 %v3298_v55  ;;  %v3295_v60 = vpop.xlane.xlu1 %3294 }
0x1849   :  { %5860 = vrcp.f32 %v3295_v60 }
0x184b   :  { %v3286_v62 = vpop.xlane.xlu0 %3285 }
0x184c   :  { %5862 = vrcp.f32 %v3286_v62  ;;  %v3283_v3 = vpop.xlane.xlu1 %3282 }
0x184d   :  { %5864 = vrcp.f32 %v3283_v3 }
0x1850   :  { %v3289_v14 = vpop.xlane.xlu1 %3288 }
0x1851   :  { %5866 = vrcp.f32 %v3289_v14  ;;  %v5857_v18 = vpop.eup %5856 }
0x1852   :  { %v3306_v15 = vmul.f32 %v5857_v18, %v5845_v45 }
0x1855   :  { %v5859_v35 = vpop.eup %5858 }
0x1856   :  { %v5861_v38 = vpop.eup %5860  ;;  %v3310_v39 = vmul.f32 %v5859_v35, %v5847_v2 }
0x1857   :  { %v3308_v20 = vmul.f32 %v5861_v38, %v5849_v4 }
0x1858   :  { %v3314_v21 = vpack.c.bf16 %v3310_v39, %v3310_v39 }
0x1859   :  { %v5863_v36 = vpop.eup %5862  ;;  %v3313_v22 = vpack.c.bf16 %v3308_v20, %v3306_v15 }
0x185a   :  { %v5865_v28 = vpop.eup %5864  ;;  %v3302_v10 = vmul.f32 %v5863_v36, %v5851_v5 }
0x185b   :  { %5521 = vmatprep.mubr.msk.bf16.mxu0 %vm3244_vm5, %v3313_v22  ;;  %v3300_v29 = vmul.f32 %v5865_v28, %v5853_v52 }
0x185c   :  { %5522 = vmatmul.mubr.msk.bf16.vlgmr.msra.gmra.mxu0 %vm3244_vm5, %v3314_v21 }
0x185d   :  { %5542 = vmatpush3.bf16.msra.mxu0 %v5744_v26  ;;  %v3311_v40 = vpack.c.bf16 %v3302_v10, %v3300_v29  ;;  %5545 = vmatprep.mubr.msk.bf16.mxu0 %vm5914_vm0, %v5913_v0 }
0x185e   :  { %v5867_v8 = vpop.eup %5866  ;;  %5543 = vmatprep.subr.bf16.mxu0 %v5913_v0 }
0x185f   :  { %v3304_v32 = vmul.f32 %v5867_v8, %v5855_v58  ;;  %5513 = vmatprep.mubr.msk.bf16.mxu1 %vm3244_vm5, %v3311_v40 }
0x1861   :  { %v3312_v37 = vpack.c.bf16 %v3304_v32, %v3304_v32  ;;  %5544 = vmatpush3.bf16.msra.mxu0 %v5745_v17 }
0x1863   :  { %5514 = vmatmul.mubr.msk.bf16.vlgmr.msra.gmra.mxu1 %vm3244_vm5, %v3312_v37 }
0x1864   :  { %5526 = vmatpush3.bf16.msra.mxu1 %v5746_v27  ;;  %5546 = vmatmul.mubr.msk.bf16.vlgmr.msra.gmra.mxu0 %vm74_vm1, %v6622_v34 }
0x1865   :  { %5527 = vmatprep.subr.bf16.mxu1 %v5913_v0  ;;  %5529 = vmatprep.mubr.msk.bf16.mxu1 %vm5914_vm0, %v5913_v0 }
0x1866   :  { %5549 = vmatprep.mubr.msk.bf16.mxu0 %vm5914_vm0, %v5913_v0 }
0x1868   :  { %5528 = vmatpush3.bf16.msra.mxu1 %v5747_v42 }
0x1869   :  { %5557 = vmatprep.subr.bf16.mxu1 %v5913_v0 }
0x186b   :  { %5530 = vmatmul.mubr.msk.bf16.vlgmr.msra.gmra.mxu1 %vm74_vm1, %v6622_v34 }
0x186c   :  { %5550 = vmatmul.mubr.msk.bf16.gmra.mxu0 %vm74_vm1, %v6651_v16  ;;  %5533 = vmatprep.mubr.msk.bf16.mxu1 %vm5914_vm0, %v5913_v0 }
0x186d   :  { %5553 = vmatprep.mubr.msk.bf16.mxu0 %vm5914_vm0, %v5913_v0  ;;  %5558 = vmatpush3.bf16.msra.mxu1 %v5748_v25 }
0x186e   :  { %5559 = vmatprep.subr.bf16.mxu1 %v5913_v0 }
0x1871   :  { %5560 = vmatpush3.bf16.msra.mxu1 %v5749_v43 }
0x1873   :  { %5534 = vmatmul.mubr.msk.bf16.gmra.mxu1 %vm74_vm1, %v6651_v16 }
0x1874   :  { %5554 = vmatmul.mubr.msk.bf16.gmra.mxu0 %vm74_vm1, %v6667_v44  ;;  %5537 = vmatprep.mubr.msk.bf16.mxu1 %vm5914_vm0, %v5913_v0 }
0x187b   :  { %5538 = vmatmul.mubr.msk.bf16.gmra.mxu1 %vm74_vm1, %v6667_v44 }
0x187c   :  { %5561 = vmatprep.mubr.msk.bf16.mxu1 %vm5914_vm0, %v5913_v0 }
0x1883   :  { %5562 = vmatmul.mubr.msk.bf16.vlgmr.msra.gmra.mxu1 %vm74_vm1, %v6622_v34 }
0x1884   :  { %5565 = vmatprep.mubr.msk.bf16.mxu1 %vm5914_vm0, %v5913_v0 }
0x188b   :  { %5566 = vmatmul.mubr.msk.bf16.gmra.mxu1 %vm74_vm1, %v6651_v16 }
0x188c   :  { %5569 = vmatprep.mubr.msk.bf16.mxu1 %vm5914_vm0, %v5913_v0 }
0x1893   :  { %5570 = vmatmul.mubr.msk.bf16.gmra.mxu1 %vm74_vm1, %v6667_v44 }
0x191c   :  { %v6810_v46 = vpop.f32.mrf.mxu0 }
0x191e   :  { %v6812_v48 = vpop.f32.mrf.mxu0 }
0x1920   :  { %v5524_v1 = vpop.f32.mrf.mxu0 }
0x1922   :  { %v6814_v51 = vpop.f32.mrf.mxu0 }
0x1923   :  { %v3431_v34 = vpack.c.bf16 %v6810_v46, %v6814_v51  ;;  %v6818_v49 = vpop.f32.mrf.mxu1 }
0x1924   :  { %v3430_v16 = vpack.c.bf16 %v6812_v48, %v6818_v49  ;;  %v3576_v45 = vpop.f32.mrf.mxu0 }
0x1925   :  { %v6822_v11 = vpop.f32.mrf.mxu1  ;;  %v3577_v62 = vadd.f32 %v4914_v56, %v3576_v45 }
0x1926   :  { %v5547_v2 = vpop.f32.mrf.mxu0 }
0x1927   :  { %v5516_v44 = vpop.f32.mrf.mxu1 }
0x1928   :  { %v3579_v4 = vpop.f32.mrf.mxu0 }
0x1929   :  { %v6824_v50 = vpop.f32.mrf.mxu1  ;;  %v3580_v58 = vadd.f32 %v4914_v56, %v3579_v4 }
0x192a   :  { %v3429_v54 = vpack.c.bf16 %v6824_v50, %v6822_v11  ;;  %v5548_v5 = vpop.f32.mrf.mxu0  ;;  %v5751_v11 = vld [vmem:[%s7059_s7 + $0x28] sm:$0xff]  }
0x192b   :  { %v3494_v52 = vpop.f32.mrf.mxu1  ;;  %v3685_v39 = vpack.c.bf16 %v3580_v58, %v3577_v62 }
0x192c   :  { %v3584_v57 = vpop.f32.mrf.mxu0  ;;  %v3495_v18 = vadd.f32 %v4903_v19, %v3494_v52 }
0x192d   :  { %v3585_v59 = vadd.f32 %v4914_v56, %v3584_v57  ;;  %v5531_v55 = vpop.f32.mrf.mxu1  ;;  %v3700_v32 = vsel %vm500_vm2, %v3685_v39, 0 }
0x192e   :  { %v5551_v60 = vpop.f32.mrf.mxu0 }
0x192f   :  { %v3686_v3 = vpack.c.bf16 %v3585_v59, %v3585_v59  ;;  %v3497_v14 = vpop.f32.mrf.mxu1 }
0x1930   :  { %v3498_v35 = vadd.f32 %v4903_v19, %v3497_v14  ;;  %v3587_v38 = vpop.f32.mrf.mxu0 }
0x1931   :  { %v3703_v15 = vsel %vm500_vm2, %v3686_v3, 0  ;;  %v5532_v20 = vpop.f32.mrf.mxu1  ;;  %5687 = vmatprep.subr.msk.bf16.mxu0 %vm500_vm2, %v3686_v3  ;;  %v3588_v44 = vadd.f32 %v4914_v56, %v3587_v38 }
0x1932   :  { %v3681_v21 = vpack.c.bf16 %v3498_v35, %v3495_v18  ;;  %v5552_v36 = vpop.f32.mrf.mxu0  ;;  %5574 = vmatpush3.bf16.xpose.msra.mxu0 %v3703_v15  ;;  %v4925_v18 = vld [vmem:[%s7057_s6 + $0x11] ss:$0 sm:$0xff] }
0x1933   :  { %v3502_v22 = vpop.f32.mrf.mxu1  ;;  %5688 = vmatprep.subr.msk.bf16.mxu0 %vm500_vm2, %v3685_v39 }
0x1934   :  { %v3592_v26 = vpop.f32.mrf.mxu0  ;;  %5577 = vmatprep.mubr.msk.bf16.mxu0 %vm500_vm2, %v3681_v21  ;;  %v3503_v37 = vadd.f32 %v4903_v19, %v3502_v22 }
0x1935   :  { %v5535_v28 = vpop.f32.mrf.mxu1  ;;  %v3593_v1 = vadd.f32 %v4914_v56, %v3592_v26 }
0x1936   :  { %v5555_v10 = vpop.f32.mrf.mxu0  ;;  %v3682_v4 = vpack.c.bf16 %v3503_v37, %v3503_v37 }
0x1937   :  { %v3505_v29 = vpop.f32.mrf.mxu1  ;;  %v3687_v57 = vpack.c.bf16 %v3593_v1, %v3588_v44 }
0x1938   :  { %v3595_v40 = vpop.f32.mrf.mxu0  ;;  %v3506_v2 = vadd.f32 %v4903_v19, %v3505_v29 }
0x1939   :  { %v3596_v17 = vadd.f32 %v4914_v56, %v3595_v40  ;;  %v5536_v8 = vpop.f32.mrf.mxu1  ;;  %v3760_v56 = vsel %vm500_vm2, %v3687_v57, 0 }
0x193a   :  { %v5556_v27 = vpop.f32.mrf.mxu0  ;;  %5576 = vmatpush3.bf16.xpose.msra.mxu0 %v3700_v32 }
0x193b   :  { %v3688_v42 = vpack.c.bf16 %v3596_v17, %v3596_v17  ;;  %v3510_v25 = vpop.f32.mrf.mxu1 }
0x193c   :  { %v3511_v43 = vadd.f32 %v4903_v19, %v3510_v25 }
0x193d   :  { %v5539_v45 = vpop.f32.mrf.mxu1  ;;  %5689 = vmatprep.subr.msk.bf16.mxu0 %vm500_vm2, %v3688_v42  ;;  %v3763_v58 = vsel %vm500_vm2, %v3688_v42, 0 }
0x193e   :  { %v3683_v52 = vpack.c.bf16 %v3511_v43, %v3506_v2 }
0x193f   :  { %v3513_v5 = vpop.f32.mrf.mxu1 }
0x1940   :  { %v3514_v14 = vadd.f32 %v4903_v19, %v3513_v5 }
0x1941   :  { %v5540_v59 = vpop.f32.mrf.mxu1  ;;  %5578 = vmatmul.mubr.msk.bf16.vlgmr.msra.gmra.mxu0 %vm500_vm2, %v3682_v4 }
0x1942   :  { %5582 = vmatpush3.bf16.xpose.msra.mxu0 %v3763_v58  ;;  %5585 = vmatprep.mubr.msk.bf16.mxu0 %vm500_vm2, %v3683_v52  ;;  %v3684_v36 = vpack.c.bf16 %v3514_v14, %v3514_v14 }
0x1943   :  { %v3658_v55 = vpop.f32.mrf.mxu1  ;;  %5690 = vmatprep.subr.msk.bf16.mxu0 %vm500_vm2, %v3687_v57 }
0x1944   :  { %v3659_v20 = vadd.f32 %v4925_v18, %v3658_v55 }
0x1945   :  { %v5563_v60 = vpop.f32.mrf.mxu1 }
0x1947   :  { %v3661_v62 = vpop.f32.mrf.mxu1 }
0x1948   :  { %v3662_v38 = vadd.f32 %v4925_v18, %v3661_v62 }
0x1949   :  { %v5564_v3 = vpop.f32.mrf.mxu1 }
0x194a   :  { %5584 = vmatpush3.bf16.xpose.msra.mxu0 %v3760_v56  ;;  %v3689_v26 = vpack.c.bf16 %v3662_v38, %v3659_v20 }
0x194b   :  { %v3666_v35 = vpop.f32.mrf.mxu1 }
0x194c   :  { %v3667_v39 = vadd.f32 %v4925_v18, %v3666_v35 }
0x194d   :  { %v5567_v15 = vpop.f32.mrf.mxu1 }
0x194e   :  { %v3690_v21 = vpack.c.bf16 %v3667_v39, %v3667_v39 }
0x194f   :  { %v3669_v22 = vpop.f32.mrf.mxu1 }
0x1950   :  { %v3902_v28 = vsel %vm2004_vm3, %v3690_v21, 0  ;;  %5691 = vmatprep.subr.msk.bf16.mxu1 %vm2004_vm3, %v3690_v21  ;;  %v3670_v27 = vadd.f32 %v4925_v18, %v3669_v22 }
0x1951   :  { %v5568_v10 = vpop.f32.mrf.mxu1  ;;  %5586 = vmatmul.mubr.msk.bf16.vlgmr.msra.gmra.mxu0 %vm500_vm2, %v3684_v36  ;;  %5590 = vmatpush3.bf16.msra.mxu1 %v3902_v28 }
0x1952   :  { %5591 = vmatprep.subr.bf16.mxu1 %v3689_v26 }
0x1953   :  { %v3674_v19 = vpop.f32.mrf.mxu1 }
0x1954   :  { %v3675_v17 = vadd.f32 %v4925_v18, %v3674_v19 }
0x1955   :  { %v5571_v29 = vpop.f32.mrf.mxu1  ;;  %5592 = vmatpush3.bf16.msra.mxu1 %v3689_v26 }
0x1956   :  { %5605 = vmatprep.subr.bf16.mxu1 %v5913_v0  ;;  %v3691_v42 = vpack.c.bf16 %v3675_v17, %v3670_v27 }
0x1957   :  { %v3677_v40 = vpop.f32.mrf.mxu1 }
0x1958   :  { %v3678_v8 = vadd.f32 %v4925_v18, %v3677_v40 }
0x1959   :  { %v5572_v32 = vpop.f32.mrf.mxu1 }
0x195a   :  { %v3692_v37 = vpack.c.bf16 %v3678_v8, %v3678_v8 }
0x195c   :  { %v3959_v25 = vsel %vm2004_vm3, %v3692_v37, 0  ;;  %5692 = vmatprep.subr.msk.bf16.mxu0 %vm2004_vm3, %v3692_v37 }
0x195d   :  { %5598 = vmatpush3.bf16.msra.mxu0 %v3959_v25 }
0x195e   :  { %5599 = vmatprep.subr.bf16.mxu0 %v3691_v42 }
0x1961   :  { %5600 = vmatpush3.bf16.msra.mxu0 %v3691_v42 }
0x1962   :  { %5619 = vmatprep.subr.bf16.mxu0 %v5913_v0 }
0x1a01   :  { %v5579_v43 = vpop.f32.mrf.mxu0 }
0x1a02   :  { %v3815_v45 = vmul.f32 0.25, %v5579_v43 }
0x1a03   :  { %v3739_v1 = vpop.f32.mrf.mxu0 }
0x1a04   :  { %v3813_v2 = vmul.f32 0.25, %v3739_v1  ;;  %v3821_v58 = vadd.f32 %v6734_v12, %v3815_v45 }
0x1a05   :  { %v5580_v44 = vpop.f32.mrf.mxu0 }
0x1a06   :  { %v3819_v4 = vadd.f32 %v6734_v12, %v3813_v2  ;;  %v3831_v55 = vsel %vm3244_vm5, %v3821_v58, -inf }
0x1a07   :  { %v3742_v5 = vpop.f32.mrf.mxu0 }
0x1a08   :  { %v3814_v52 = vmul.f32 0.25, %v3742_v5  ;;  %v3825_v57 = vsel %vm3244_vm5, %v3819_v4, -inf }
0x1a09   :  { %3826 = vmax.xlane.f32.xlu0 %v3825_v57 }
0x1a0a   :  { %v3820_v59 = vadd.f32 %v6734_v12, %v3814_v52 }
0x1a0c   :  { %v3828_v60 = vsel %vm3244_vm5, %v3820_v59, -inf }
0x1a0d   :  { %3832 = vmax.xlane.f32.xlu0 %v3831_v55  ;;  %3829 = vmax.xlane.f32.xlu1 %v3828_v60 }
0x1a11   :  { %v5587_v62 = vpop.f32.mrf.mxu0 }
0x1a12   :  { %v3818_v56 = vmul.f32 0.25, %v5587_v62 }
0x1a13   :  { %v3799_v3 = vpop.f32.mrf.mxu0 }
0x1a14   :  { %v3816_v14 = vmul.f32 0.25, %v3799_v3  ;;  %v3824_v20 = vadd.f32 %v6723_v23, %v3818_v56 }
0x1a15   :  { %v5588_v18 = vpop.f32.mrf.mxu0 }
0x1a16   :  { %v3822_v35 = vadd.f32 %v6723_v23, %v3816_v14  ;;  %v3840_v21 = vsel %vm3244_vm5, %v3824_v20, -inf }
0x1a17   :  { %v3802_v38 = vpop.f32.mrf.mxu0 }
0x1a18   :  { %v3817_v39 = vmul.f32 0.25, %v3802_v38  ;;  %v3834_v15 = vsel %vm3244_vm5, %v3822_v35, -inf }
0x1a19   :  { %3835 = vmax.xlane.f32.xlu1 %v3834_v15 }
0x1a1a   :  { %v3823_v12 = vadd.f32 %v6723_v23, %v3817_v39 }
0x1a1c   :  { %v3837_v36 = vsel %vm3244_vm5, %v3823_v12, -inf }
0x1a1d   :  { %3841 = vmax.xlane.f32.xlu1 %v3840_v21  ;;  %3838 = vmax.xlane.f32.xlu0 %v3837_v36 }
0x1a92   :  { %v3827_v22 = vpop.xlane.xlu0 %3826 }
0x1a93   :  { %v3843_v26 = vsub.f32 %v3819_v4, %v3827_v22 }
0x1a95   :  { %v3849_v28 = vmul.f32 1.442695, %v3843_v26 }
0x1a96   :  { %v3833_v10 = vpop.xlane.xlu0 %3832  ;;  %v3830_v19 = vpop.xlane.xlu1 %3829 }
0x1a97   :  { %5868 = vpow2.f32 %v3849_v28  ;;  %v3845_v29 = vsub.f32 %v3821_v58, %v3833_v10  ;;  %v3844_v40 = vsub.f32 %v3820_v59, %v3830_v19 }
0x1a99   :  { %v3853_v17 = vmul.f32 1.442695, %v3845_v29  ;;  %v3851_v8 = vmul.f32 1.442695, %v3844_v40 }
0x1a9b   :  { %5870 = vpow2.f32 %v3853_v17 }
0x1a9c   :  { %5872 = vpow2.f32 %v3851_v8 }
0x1aa2   :  { %v3836_v32 = vpop.xlane.xlu1 %3835 }
0x1aa3   :  { %v3846_v23 = vsub.f32 %v3822_v35, %v3836_v32 }
0x1aa4   :  { %v5869_v27 = vpop.eup %5868 }
0x1aa5   :  { %v3855_v37 = vmul.f32 1.442695, %v3846_v23  ;;  %v3861_v42 = vsel %vm3244_vm5, %v5869_v27, 0.0 }
0x1aa6   :  { %v3842_v25 = vpop.xlane.xlu1 %3841  ;;  %3862 = vadd.xlane.f32.xlu0 %v3861_v42  ;;  %v3839_v43 = vpop.xlane.xlu0 %3838 }
0x1aa7   :  { %5874 = vpow2.f32 %v3855_v37  ;;  %v3848_v1 = vsub.f32 %v3824_v20, %v3842_v25  ;;  %v3847_v45 = vsub.f32 %v3823_v12, %v3839_v43 }
0x1aa8   :  { %v5871_v2 = vpop.eup %5870 }
0x1aa9   :  { %v5873_v44 = vpop.eup %5872  ;;  %v3859_v4 = vmul.f32 1.442695, %v3848_v1  ;;  %v3857_v5 = vmul.f32 1.442695, %v3847_v45  ;;  %v3867_v52 = vsel %vm3244_vm5, %v5871_v2, 0.0 }
0x1aaa   :  { %v3864_v57 = vsel %vm3244_vm5, %v5873_v44, 0.0  ;;  %3868 = vadd.xlane.f32.xlu0 %v3867_v52 }
0x1aab   :  { %5876 = vpow2.f32 %v3859_v4  ;;  %3865 = vadd.xlane.f32.xlu1 %v3864_v57 }
0x1aac   :  { %5878 = vpow2.f32 %v3857_v5 }
0x1ab4   :  { %v5875_v58 = vpop.eup %5874 }
0x1ab5   :  { %v3870_v59 = vsel %vm3244_vm5, %v5875_v58, 0.0 }
0x1ab6   :  { %3871 = vadd.xlane.f32.xlu1 %v3870_v59 }
0x1ab8   :  { %v5877_v55 = vpop.eup %5876 }
0x1ab9   :  { %v5879_v60 = vpop.eup %5878  ;;  %v3876_v62 = vsel %vm3244_vm5, %v5877_v55, 0.0 }
0x1aba   :  { %3877 = vadd.xlane.f32.xlu1 %v3876_v62  ;;  %v3873_v3 = vsel %vm3244_vm5, %v5879_v60, 0.0 }
0x1abb   :  { %3874 = vadd.xlane.f32.xlu0 %v3873_v3 }
0x1b2f   :  { %v3863_v56 = vpop.xlane.xlu0 %3862 }
0x1b30   :  { %5880 = vrcp.f32 %v3863_v56 }
0x1b33   :  { %v3869_v14 = vpop.xlane.xlu0 %3868 }
0x1b34   :  { %v3866_v18 = vpop.xlane.xlu1 %3865  ;;  %5882 = vrcp.f32 %v3869_v14 }
0x1b35   :  { %5884 = vrcp.f32 %v3866_v18 }
0x1b3d   :  { %v5881_v38 = vpop.eup %5880 }
0x1b3e   :  { %v3880_v21 = vmul.f32 %v5881_v38, %v5869_v27  ;;  %v5750_v27 = vld [vmem:[%s7059_s7 + $0x20] sm:$0xff]  }
0x1b3f   :  { %v3872_v35 = vpop.xlane.xlu1 %3871 }
0x1b40   :  { %5886 = vrcp.f32 %v3872_v35 }
0x1b41   :  { %v5883_v39 = vpop.eup %5882 }
0x1b42   :  { %v5885_v15 = vpop.eup %5884  ;;  %v3884_v20 = vmul.f32 %v5883_v39, %v5871_v2 }
0x1b43   :  { %v3878_v12 = vpop.xlane.xlu1 %3877  ;;  %v3882_v36 = vmul.f32 %v5885_v15, %v5873_v44 }
0x1b44   :  { %v3892_v22 = vpack.c.bf16 %v3884_v20, %v3884_v20  ;;  %5888 = vrcp.f32 %v3878_v12  ;;  %v3875_v26 = vpop.xlane.xlu0 %3874 }
0x1b45   :  { %5890 = vrcp.f32 %v3875_v26  ;;  %v3891_v28 = vpack.c.bf16 %v3882_v36, %v3880_v21 }
0x1b47   :  { %5593 = vmatprep.mubr.msk.bf16.mxu1 %vm3244_vm5, %v3891_v28 }
0x1b48   :  { %5594 = vmatmul.mubr.msk.bf16.vlgmr.msra.gmra.mxu1 %vm3244_vm5, %v3892_v22 }
0x1b49   :  { %5607 = vmatprep.mubr.msk.bf16.mxu1 %vm5914_vm0, %v5913_v0  ;;  %5606 = vmatpush3.bf16.msra.mxu1 %v5751_v11 }
0x1b4a   :  { %5633 = vmatprep.subr.bf16.mxu1 %v5913_v0 }
0x1b4d   :  { %v5887_v10 = vpop.eup %5886 }
0x1b4e   :  { %v3886_v17 = vmul.f32 %v5887_v10, %v5875_v58 }
0x1b51   :  { %v5889_v19 = vpop.eup %5888 }
0x1b52   :  { %v5891_v29 = vpop.eup %5890  ;;  %v3890_v40 = vmul.f32 %v5889_v19, %v5877_v55 }
0x1b53   :  { %v3888_v8 = vmul.f32 %v5891_v29, %v5879_v60  ;;  %v6919_v60 = vld [vmem:[%s7060_s9 + $0x10] sm:$0xff] }
0x1b54   :  { %v3894_v32 = vpack.c.bf16 %v3890_v40, %v3890_v40  ;;  %v4162_v62 = vrot.slane %v6919_v60, %v6237_v41 }
0x1b55   :  { %v3893_v23 = vpack.c.bf16 %v3888_v8, %v3886_v17 }
0x1b57   :  { %5601 = vmatprep.mubr.msk.bf16.mxu0 %vm3244_vm5, %v3893_v23 }
0x1b58   :  { %5602 = vmatmul.mubr.msk.bf16.vlgmr.msra.gmra.mxu0 %vm3244_vm5, %v3894_v32 }
0x1b59   :  { %5620 = vmatpush3.bf16.msra.mxu0 %v5750_v27  ;;  %5621 = vmatprep.mubr.msk.bf16.mxu0 %vm5914_vm0, %v5913_v0 }
0x1b5a   :  { %5649 = vmatprep.subr.bf16.mxu0 %v5913_v0 }
0x1b60   :  { %5622 = vmatmul.mubr.msk.bf16.vlgmr.msra.gmra.mxu0 %vm500_vm2, %v3429_v54 }
0x1b61   :  { %5625 = vmatprep.mubr.msk.bf16.mxu0 %vm5914_vm0, %v5913_v0 }
0x1b68   :  { %5626 = vmatmul.mubr.msk.bf16.gmra.mxu0 %vm500_vm2, %v3430_v16 }
0x1b69   :  { %5629 = vmatprep.mubr.msk.bf16.mxu0 %vm5914_vm0, %v5913_v0 }
0x1b70   :  { %5630 = vmatmul.mubr.msk.bf16.gmra.mxu0 %vm500_vm2, %v3431_v34 }
0x1b71   :  { %5653 = vmatprep.mubr.msk.bf16.mxu0 %vm5914_vm0, %v5913_v0 }
0x1c08   :  { %v5595_v48 = vpop.f32.mrf.mxu1 }
0x1c0a   :  { %v3938_v49 = vpop.f32.mrf.mxu1 }
0x1c0c   :  { %v5596_v16 = vpop.f32.mrf.mxu1 }
0x1c0e   :  { %v3941_v50 = vpop.f32.mrf.mxu1 }
0x1c0f   :  { %v4009_v54 = vpack.c.bf16 %v3941_v50, %v3938_v49 }
0x1c11   :  { %5608 = vmatmul.mubr.msk.bf16.vlgmr.msra.gmra.mxu1 %vm500_vm2, %v4009_v54 }
0x1c12   :  { %5611 = vmatprep.mubr.msk.bf16.mxu1 %vm5914_vm0, %v5913_v0 }
0x1c18   :  { %v5603_v46 = vpop.f32.mrf.mxu0 }
0x1c1a   :  { %v3995_v51 = vpop.f32.mrf.mxu0 }
0x1c1b   :  { %v4010_v34 = vpack.c.bf16 %v3995_v51, %v5595_v48 }
0x1c1c   :  { %v5604_v37 = vpop.f32.mrf.mxu0 }
0x1c1d   :  { %5612 = vmatmul.mubr.msk.bf16.gmra.mxu1 %vm500_vm2, %v4010_v34 }
0x1c1e   :  { %v3998_v42 = vpop.f32.mrf.mxu0  ;;  %5615 = vmatprep.mubr.msk.bf16.mxu1 %vm5914_vm0, %v5913_v0 }
0x1c1f   :  { %v4011_v1 = vpack.c.bf16 %v5603_v46, %v3998_v42 }
0x1c20   :  { %v4136_v25 = vpop.f32.mrf.mxu0 }
0x1c22   :  { %v5623_v43 = vpop.f32.mrf.mxu0 }
0x1c24   :  { %v4139_v45 = vpop.f32.mrf.mxu0 }
0x1c25   :  { %5616 = vmatmul.mubr.msk.bf16.gmra.mxu1 %vm500_vm2, %v4011_v1 }
0x1c26   :  { %v5624_v2 = vpop.f32.mrf.mxu0  ;;  %5637 = vmatprep.mubr.msk.bf16.mxu1 %vm5914_vm0, %v5913_v0 }
0x1c28   :  { %v4144_v44 = vpop.f32.mrf.mxu0 }
0x1c2a   :  { %v5627_v4 = vpop.f32.mrf.mxu0 }
0x1c2c   :  { %v4147_v5 = vpop.f32.mrf.mxu0 }
0x1c2e   :  { %v5628_v52 = vpop.f32.mrf.mxu0 }
0x1c30   :  { %v4152_v57 = vpop.f32.mrf.mxu0 }
0x1c32   :  { %v5631_v58 = vpop.f32.mrf.mxu0 }
0x1c34   :  { %v4155_v59 = vpop.f32.mrf.mxu0 }
0x1c36   :  { %v5632_v55 = vpop.f32.mrf.mxu0 }
0x1cd1   :  { %v4064_v3 = vpop.f32.mrf.mxu1 }
0x1cd2   :  { %v4137_v56 = vadd.f32 %v4136_v25, %v4064_v3 }
0x1cd3   :  { %v5609_v14 = vpop.f32.mrf.mxu1 }
0x1cd4   :  { %v4163_v18 = vadd.f32 %v4162_v62, %v4137_v56 }
0x1cd5   :  { %v4067_v35 = vpop.f32.mrf.mxu1 }
0x1cd6   :  { %v4140_v38 = vadd.f32 %v4139_v45, %v4067_v35  ;;  %v4169_v39 = vadd.f32 %v4163_v18, %v6616_v30 }
0x1cd7   :  { %v5610_v15 = vpop.f32.mrf.mxu1 }
0x1cd8   :  { %v4164_v20 = vadd.f32 %v4162_v62, %v4140_v38  ;;  %v4175_v12 = vsel %vm74_vm1, %v4169_v39, 0.0  ;;  %v5753_v38 = vld [vmem:[%s7061_s8 + $0x40] sm:$0xff]  }
0x1cd9   :  { %4176 = vadd.xlane.f32.xlu0 %v4175_v12 }
0x1cda   :  { %v4170_v21 = vadd.f32 %v4164_v20, %v6618_v9 }
0x1cdc   :  { %v4178_v36 = vsel %vm74_vm1, %v4170_v21, 0.0 }
0x1cdd   :  { %v4072_v22 = vpop.f32.mrf.mxu1  ;;  %4179 = vadd.xlane.f32.xlu1 %v4178_v36 }
0x1cde   :  { %v4145_v41 = vadd.f32 %v4144_v44, %v4072_v22 }
0x1cdf   :  { %v5613_v26 = vpop.f32.mrf.mxu1 }
0x1ce0   :  { %v4165_v28 = vadd.f32 %v4162_v62, %v4145_v41 }
0x1ce1   :  { %v4075_v10 = vpop.f32.mrf.mxu1 }
0x1ce2   :  { %v4148_v19 = vadd.f32 %v4147_v5, %v4075_v10  ;;  %v4171_v29 = vadd.f32 %v4165_v28, %v6647_v63 }
0x1ce3   :  { %v5614_v40 = vpop.f32.mrf.mxu1 }
0x1ce4   :  { %v4166_v17 = vadd.f32 %v4162_v62, %v4148_v19  ;;  %v4181_v8 = vsel %vm74_vm1, %v4171_v29, 0.0  ;;  %v6959_v40 = vrot.slane %v6919_v60, %v6266_v47 }
0x1ce5   :  { %v4080_v32 = vpop.f32.mrf.mxu1  ;;  %4182 = vadd.xlane.f32.xlu0 %v4181_v8 }
0x1ce6   :  { %v4153_v23 = vadd.f32 %v4152_v57, %v4080_v32  ;;  %v4172_v9 = vadd.f32 %v4166_v17, %v6644_v61 }
0x1ce7   :  { %v5617_v27 = vpop.f32.mrf.mxu1 }
0x1ce8   :  { %v4167_v11 = vadd.f32 %v4162_v62, %v4153_v23  ;;  %v4184_v48 = vsel %vm74_vm1, %v4172_v9, 0.0  ;;  %v6963_v23 = vrot.slane %v6919_v60, %v6275_v53 }
0x1ce9   :  { %v4083_v49 = vpop.f32.mrf.mxu1  ;;  %4185 = vadd.xlane.f32.xlu1 %v4184_v48 }
0x1cea   :  { %v4156_v16 = vadd.f32 %v4155_v59, %v4083_v49 }
0x1ceb   :  { %v5618_v50 = vpop.f32.mrf.mxu1 }
0x1cec   :  { %v4168_v54 = vadd.f32 %v4162_v62, %v4156_v16  ;;  %v6935_v62 = vadd.f32 %v4167_v11, %v6663_v6  ;;  %v5752_v6 = vld [vmem:[%s7061_s8 + $0x48] sm:$0xff]  }
0x1ced   :  { %5634 = vmatpush3.bf16.msra.mxu1 %v5752_v6 }
0x1cee   :  { %v4187_v14 = vsel %vm74_vm1, %v6935_v62, 0.0  ;;  %v6941_v18 = vadd.f32 %v4168_v54, %v6661_v7  ;;  %5635 = vmatprep.subr.bf16.mxu1 %v5913_v0 }
0x1cf0   :  { %v4190_v35 = vsel %vm74_vm1, %v6941_v18, 0.0 }
0x1cf1   :  { %5636 = vmatpush3.bf16.msra.mxu1 %v5753_v38 }
0x1cf2   :  { %5665 = vmatprep.subr.bf16.mxu1 %v5913_v0 }
0x1d62   :  { %v4177_v46 = vpop.xlane.xlu0 %4176 }
0x1d63   :  { %v4193_v51 = vmul.f32 0.03125, %v4177_v46 }
0x1d65   :  { %v4199_v34 = vsub.f32 %v4169_v39, %v4193_v51  ;;  %v5754_v39 = vld [vmem:[%s7061_s8 + $0x58] sm:$0xff]  }
0x1d66   :  { %v4180_v37 = vpop.xlane.xlu1 %4179  ;;  %5650 = vmatpush3.bf16.msra.mxu0 %v5754_v39 }
0x1d67   :  { %v4194_v42 = vmul.f32 0.03125, %v4180_v37  ;;  %v4205_v25 = vmul.f32 %v4199_v34, %v4199_v34  ;;  %5651 = vmatprep.subr.bf16.mxu0 %v5913_v0 }
0x1d69   :  { %v4200_v43 = vsub.f32 %v4170_v21, %v4194_v42  ;;  %v4211_v1 = vsel %vm74_vm1, %v4205_v25, 0.0  ;;  %v5755_v25 = vld [vmem:[%s7061_s8 + $0x50] sm:$0xff]  }
0x1d6a   :  { %4212 = vadd.xlane.f32.xlu0 %v4211_v1  ;;  %5652 = vmatpush3.bf16.msra.mxu0 %v5755_v25 }
0x1d6b   :  { %v4206_v45 = vmul.f32 %v4200_v43, %v4200_v43  ;;  %5673 = vmatprep.subr.bf16.mxu0 %v5913_v0 }
0x1d6d   :  { %v4214_v2 = vsel %vm74_vm1, %v4206_v45, 0.0 }
0x1d6e   :  { %v4183_v44 = vpop.xlane.xlu0 %4182  ;;  %4215 = vadd.xlane.f32.xlu1 %v4214_v2 }
0x1d6f   :  { %v4195_v4 = vmul.f32 0.03125, %v4183_v44 }
0x1d71   :  { %v4201_v5 = vsub.f32 %v4171_v29, %v4195_v4 }
0x1d72   :  { %v4186_v52 = vpop.xlane.xlu1 %4185 }
0x1d73   :  { %v4196_v57 = vmul.f32 0.03125, %v4186_v52  ;;  %v4207_v58 = vmul.f32 %v4201_v5, %v4201_v5 }
0x1d75   :  { %v4202_v59 = vsub.f32 %v4172_v9, %v4196_v57  ;;  %v4217_v55 = vsel %vm74_vm1, %v4207_v58, 0.0 }
0x1d76   :  { %4218 = vadd.xlane.f32.xlu0 %v4217_v55 }
0x1d77   :  { %v4208_v3 = vmul.f32 %v4202_v59, %v4202_v59 }
0x1d79   :  { %v4220_v56 = vsel %vm74_vm1, %v4208_v3, 0.0 }
0x1d7a   :  { %4221 = vadd.xlane.f32.xlu1 %v4220_v56  ;;  %4188 = vadd.xlane.f32.xlu0 %v4187_v14 }
0x1d7e   :  { %4191 = vadd.xlane.f32.xlu1 %v4190_v35 }
0x1df3   :  { %v4213_v15 = vpop.xlane.xlu0 %4212 }
0x1df4   :  { %v4229_v20 = vmul.f32 0.03125, %v4213_v15 }
0x1df6   :  { %v4235_v12 = vadd.f32 1e-05, %v4229_v20  ;;  %v4456_v20 = vrot.slane %v6919_v60, %v6517_v33 }
0x1df7   :  { %v4216_v21 = vpop.xlane.xlu1 %4215 }
0x1df8   :  { %5892 = vrsqrt.f32 %v4235_v12  ;;  %v4230_v36 = vmul.f32 0.03125, %v4216_v21 }
0x1dfa   :  { %v4236_v22 = vadd.f32 1e-05, %v4230_v36 }
0x1dfc   :  { %5894 = vrsqrt.f32 %v4236_v22 }
0x1dff   :  { %v4219_v41 = vpop.xlane.xlu0 %4218 }
0x1e00   :  { %v4231_v26 = vmul.f32 0.03125, %v4219_v41 }
0x1e02   :  { %v4237_v28 = vadd.f32 1e-05, %v4231_v26 }
0x1e03   :  { %v4222_v10 = vpop.xlane.xlu1 %4221  ;;  %v4189_v39 = vpop.xlane.xlu0 %4188 }
0x1e04   :  { %5896 = vrsqrt.f32 %v4237_v28  ;;  %v4232_v19 = vmul.f32 0.03125, %v4222_v10  ;;  %v4197_v15 = vmul.f32 0.03125, %v4189_v39 }
0x1e05   :  { %v5893_v29 = vpop.eup %5892 }
0x1e06   :  { %v4247_v17 = vmul.f32 %v5893_v29, %v4199_v34  ;;  %v4238_v8 = vadd.f32 1e-05, %v4232_v19  ;;  %v4203_v21 = vsub.f32 %v6935_v62, %v4197_v15 }
0x1e08   :  { %5898 = vrsqrt.f32 %v4238_v8  ;;  %v4257_v9 = vmul.f32 %v6959_v40, %v4247_v17  ;;  %v4209_v10 = vmul.f32 %v4203_v21, %v4203_v21  ;;  %v4192_v17 = vpop.xlane.xlu1 %4191 }
0x1e09   :  { %v5895_v32 = vpop.eup %5894 }
0x1e0a   :  { %v4248_v27 = vmul.f32 %v5895_v32, %v4200_v43  ;;  %v4267_v48 = vadd.f32 %v6963_v23, %v4257_v9  ;;  %v6985_v43 = vrot.slane %v6919_v60, %v6336_v13  ;;  %v4223_v29 = vsel %vm74_vm1, %v4209_v10, 0.0 }
0x1e0b   :  { %v4198_v32 = vmul.f32 0.03125, %v4192_v17  ;;  %v4506_v10 = vrot.slane %v6661_v7, 5  ;;  %v4499_v17 = vrot.slane %v6644_v61, 7 }
0x1e0c   :  { %v4258_v11 = vmul.f32 %v6959_v40, %v4248_v27 }
0x1e0d   :  { %v4204_v27 = vsub.f32 %v6941_v18, %v4198_v32 }
0x1e0e   :  { %v4268_v49 = vadd.f32 %v6963_v23, %v4258_v11 }
0x1e10   :  { %v4273_v16 = vpack.c.bf16 %v4268_v49, %v4267_v48 }
0x1e11   :  { %v5897_v47 = vpop.eup %5896 }
0x1e12   :  { %v4249_v50 = vmul.f32 %v5897_v47, %v4201_v5  ;;  %5638 = vmatmul.mubr.msk.bf16.vlgmr.msra.gmra.mxu1 %vm74_vm1, %v4273_v16  ;;  %v4210_v16 = vmul.f32 %v4204_v27, %v4204_v27 }
0x1e13   :  { %5641 = vmatprep.mubr.msk.bf16.mxu1 %vm5914_vm0, %v5913_v0 }
0x1e14   :  { %v4259_v46 = vmul.f32 %v6959_v40, %v4249_v50  ;;  %v4226_v47 = vsel %vm74_vm1, %v4210_v16, 0.0 }
0x1e15   :  { %v5899_v54 = vpop.eup %5898 }
0x1e16   :  { %v4250_v53 = vmul.f32 %v5899_v54, %v4202_v59  ;;  %v4269_v34 = vadd.f32 %v6963_v23, %v4259_v46 }
0x1e18   :  { %v4260_v51 = vmul.f32 %v6959_v40, %v4250_v53 }
0x1e1a   :  { %v4270_v37 = vadd.f32 %v6963_v23, %v4260_v51 }
0x1e1c   :  { %v4274_v42 = vpack.c.bf16 %v4270_v37, %v4269_v34 }
0x1e1e   :  { %5642 = vmatmul.mubr.msk.bf16.gmra.mxu1 %vm74_vm1, %v4274_v42 }
0x1e1f   :  { %5645 = vmatprep.mubr.msk.bf16.mxu1 %vm5914_vm0, %v5913_v0 }
0x1ed2   :  { %v4340_v1 = vpop.f32.mrf.mxu1 }
0x1ed3   :  { %v4341_v2 = vadd.f32 %v4340_v1, %v6985_v43 }
0x1ed4   :  { %v5639_v45 = vpop.f32.mrf.mxu1 }
0x1ed5   :  { %v4363_v52 = vmax.f32 %v4341_v2, 0.0 }
0x1ed6   :  { %v4343_v44 = vpop.f32.mrf.mxu1 }
0x1ed7   :  { %v4344_v4 = vadd.f32 %v4343_v44, %v6985_v43 }
0x1ed8   :  { %v5640_v5 = vpop.f32.mrf.mxu1 }
0x1ed9   :  { %v4364_v57 = vmax.f32 %v4344_v4, 0.0 }
0x1edb   :  { %v4369_v58 = vpack.c.bf16 %v4364_v57, %v4363_v52 }
0x1edd   :  { %5654 = vmatmul.mubr.msk.bf16.vlgmr.msra.gmra.mxu0 %vm74_vm1, %v4369_v58 }
0x1ede   :  { %v4348_v59 = vpop.f32.mrf.mxu1  ;;  %5657 = vmatprep.mubr.msk.bf16.mxu0 %vm5914_vm0, %v5913_v0 }
0x1edf   :  { %v4349_v13 = vadd.f32 %v4348_v59, %v6985_v43 }
0x1ee0   :  { %v5643_v55 = vpop.f32.mrf.mxu1 }
0x1ee1   :  { %v4365_v35 = vmax.f32 %v4349_v13, 0.0 }
0x1ee2   :  { %v4351_v3 = vpop.f32.mrf.mxu1 }
0x1ee3   :  { %v4352_v56 = vadd.f32 %v4351_v3, %v6985_v43 }
0x1ee4   :  { %v5644_v14 = vpop.f32.mrf.mxu1 }
0x1ee5   :  { %v4366_v6 = vmax.f32 %v4352_v56, 0.0 }
0x1ee7   :  { %v4370_v38 = vpack.c.bf16 %v4366_v6, %v4365_v35  ;;  %v5756_v35 = vld [vmem:[%s7053_s3 + $0x38] sm:$0xff]  }
0x1ee8   :  { %5666 = vmatpush3.bf16.msra.mxu1 %v5756_v35 }
0x1ee9   :  { %5658 = vmatmul.mubr.msk.bf16.gmra.mxu0 %vm74_vm1, %v4370_v38  ;;  %5667 = vmatprep.subr.bf16.mxu1 %v5913_v0 }
0x1eea   :  { %5661 = vmatprep.mubr.msk.bf16.mxu0 %vm5914_vm0, %v5913_v0 }
0x1f9d   :  { %v4432_v12 = vpop.f32.mrf.mxu0 }
0x1f9e   :  { %v4451_v36 = vadd.f32 %v4432_v12, %v4267_v48 }
0x1f9f   :  { %v5655_v22 = vpop.f32.mrf.mxu0 }
0x1fa0   :  { %v4457_v41 = vadd.f32 %v4456_v20, %v4451_v36  ;;  %v4494_v22 = vrot.slane %v6919_v60, %v6612_v31  ;;  %v4501_v31 = vsel %vm4500_vm7, %v4499_v17, %v6616_v30  ;;  %v5758_v30 = vld [vmem:[%s7063_s10 + $0x8] sm:$0xff]  }
0x1fa1   :  { %v4435_v26 = vpop.f32.mrf.mxu0  ;;  %5674 = vmatpush3.bf16.msra.mxu0 %v5758_v30 }
0x1fa2   :  { %v4459_v28 = vsel %vm74_vm1, %v4457_v41, 0.0  ;;  %5675 = vmatprep.subr.bf16.mxu0 %v5913_v0 }
0x1fa3   :  { %4460 = vadd.xlane.f32.xlu0 %v4459_v28  ;;  %v5656_v19 = vpop.f32.mrf.mxu0 }
0x1fa7   :  { %4224 = vadd.xlane.f32.xlu0 %v4223_v29 }
0x1fa9   :  { %v4439_v8 = vpop.f32.mrf.mxu0 }
0x1faa   :  { %v4505_v8 = vrot.slane %v6647_v63, 6 }
0x1fab   :  { %v5659_v9 = vpop.f32.mrf.mxu0 }
0x1fac   :  { %v4508_v9 = vsel %vm4507_vm6, %v4506_v10, %v4505_v8 }
0x1fad   :  { %v4441_v33 = vpop.f32.mrf.mxu0 }
0x1fae   :  { %v4452_v62 = vadd.f32 %v4441_v33, %v4270_v37 }
0x1faf   :  { %v5660_v11 = vpop.f32.mrf.mxu0 }
0x1fb0   :  { %v4458_v48 = vadd.f32 %v4456_v20, %v4452_v62 }
0x1fb2   :  { %v4462_v49 = vsel %vm74_vm1, %v4458_v48, 0.0 }
0x1fb3   :  { %4463 = vadd.xlane.f32.xlu1 %v4462_v49 }
0x1fb7   :  { %4227 = vadd.xlane.f32.xlu1 %v4226_v47 }
0x202c   :  { %v4461_v50 = vpop.xlane.xlu0 %4460 }
0x202d   :  { %v4465_v54 = vmul.f32 0.03125, %v4461_v50 }
0x202f   :  { %v4467_v53 = vsub.f32 %v4457_v41, %v4465_v54 }
0x2030   :  { %v4225_v34 = vpop.xlane.xlu0 %4224 }
0x2031   :  { %v4469_v46 = vmul.f32 %v4467_v53, %v4467_v53  ;;  %v4233_v42 = vmul.f32 0.03125, %v4225_v34 }
0x2033   :  { %v4471_v51 = vsel %vm74_vm1, %v4469_v46, 0.0  ;;  %v4239_v18 = vadd.f32 1e-05, %v4233_v42 }
0x2034   :  { %4472 = vadd.xlane.f32.xlu0 %v4471_v51 }
0x2035   :  { %5900 = vrsqrt.f32 %v4239_v18 }
0x203c   :  { %v4464_v37 = vpop.xlane.xlu1 %4463 }
0x203d   :  { %v4466_v25 = vmul.f32 0.03125, %v4464_v37 }
0x203f   :  { %v4468_v1 = vsub.f32 %v4458_v48, %v4466_v25 }
0x2040   :  { %v4228_v45 = vpop.xlane.xlu1 %4227 }
0x2041   :  { %v4234_v2 = vmul.f32 0.03125, %v4228_v45  ;;  %v4470_v44 = vmul.f32 %v4468_v1, %v4468_v1 }
0x2042   :  { %v5901_v52 = vpop.eup %5900 }
0x2043   :  { %v4240_v4 = vadd.f32 1e-05, %v4234_v2  ;;  %v4474_v5 = vsel %vm74_vm1, %v4470_v44, 0.0  ;;  %v4251_v57 = vmul.f32 %v5901_v52, %v4203_v21  ;;  %v4488_v21 = vrot.slane %v6919_v60, %v6605_v24  ;;  %v4976_v44 = vld [vmem:[%s7064_s11] ss:$0 sm:$0xff] }
0x2044   :  { %4475 = vadd.xlane.f32.xlu1 %v4474_v5 }
0x2045   :  { %5902 = vrsqrt.f32 %v4240_v4  ;;  %v4261_v55 = vmul.f32 %v6959_v40, %v4251_v57 }
0x2047   :  { %v4271_v3 = vadd.f32 %v6963_v23, %v4261_v55 }
0x2052   :  { %v5903_v58 = vpop.eup %5902 }
0x2053   :  { %v4252_v59 = vmul.f32 %v5903_v58, %v4204_v27  ;;  %v4518_v27 = vsel %vm4517_vm9, %v4501_v31, %v4508_v9 }
0x2055   :  { %v4262_v13 = vmul.f32 %v6959_v40, %v4252_v59  ;;  %v5757_v40 = vld [vmem:[%s7053_s3 + $0x30] sm:$0xff]  }
0x2056   :  { %5668 = vmatpush3.bf16.msra.mxu1 %v5757_v40 }
0x2057   :  { %v4272_v56 = vadd.f32 %v6963_v23, %v4262_v13 }
0x2059   :  { %v4275_v14 = vpack.c.bf16 %v4272_v56, %v4271_v3 }
0x205b   :  { %5646 = vmatmul.mubr.msk.bf16.gmra.mxu1 %vm74_vm1, %v4275_v14 }
0x205c   :  { %5669 = vmatprep.mubr.msk.bf16.mxu1 %vm5914_vm0, %v5913_v0 }
0x20bd   :  { %v4473_v6 = vpop.xlane.xlu0 %4472 }
0x20be   :  { %v4477_v23 = vmul.f32 0.03125, %v4473_v6 }
0x20c0   :  { %v4479_v38 = vadd.f32 1e-05, %v4477_v23 }
0x20c2   :  { %5904 = vrsqrt.f32 %v4479_v38 }
0x20cd   :  { %v4476_v39 = vpop.xlane.xlu1 %4475 }
0x20ce   :  { %v4478_v15 = vmul.f32 0.03125, %v4476_v39 }
0x20cf   :  { %v5905_v12 = vpop.eup %5904 }
0x20d0   :  { %v4480_v20 = vadd.f32 1e-05, %v4478_v15  ;;  %v4483_v36 = vmul.f32 %v5905_v12, %v4467_v53  ;;  %v4972_v53 = vld [vmem:[%s7056_s4 + $0x3] ss:$0 sm:$0xff] }
0x20d2   :  { %5906 = vrsqrt.f32 %v4480_v20  ;;  %v4489_v41 = vmul.f32 %v4488_v21, %v4483_v36 }
0x20d4   :  { %v4495_v19 = vadd.f32 %v4494_v22, %v4489_v41 }
0x20d6   :  { %v4512_v24 = vrot.slane %v4495_v19, 4 }
0x20df   :  { %v5907_v26 = vpop.eup %5906 }
0x20e0   :  { %v4484_v28 = vmul.f32 %v5907_v26, %v4468_v1 }
0x20e2   :  { %v4490_v29 = vmul.f32 %v4488_v21, %v4484_v28 }
0x20e4   :  { %v4496_v32 = vadd.f32 %v4494_v22, %v4490_v29 }
0x20e6   :  { %v4513_v33 = vrot.slane %v4496_v32, 3 }
0x20e8   :  { %v4515_v60 = vsel %vm4514_vm8, %v4513_v33, %v4512_v24 }
0x20e9   :  { %v4519_v7 = vsel %vm2004_vm3, %v4518_v27, %v4515_v60 }
0x20ea   :  { %v4520_v62 = vpack.c.bf16 %v4519_v7, %v4519_v7 }
0x20ec   :  { %5670 = vmatmul.mubr.msk.bf16.vlgmr.msra.gmra.mxu1 %vm74_vm1, %v4520_v62 }
0x211b   :  { %v4356_v11 = vpop.f32.mrf.mxu1 }
0x211c   :  { %v4357_v63 = vadd.f32 %v4356_v11, %v6985_v43 }
0x211d   :  { %v5647_v61 = vpop.f32.mrf.mxu1 }
0x211e   :  { %v4367_v47 = vmax.f32 %v4357_v63, 0.0 }
0x211f   :  { %v4359_v48 = vpop.f32.mrf.mxu1 }
0x2120   :  { %v4360_v49 = vadd.f32 %v4359_v48, %v6985_v43  ;;  %v5759_v43 = vld [vmem:[%s7063_s10] sm:$0xff]  }
0x2121   :  { %v5648_v16 = vpop.f32.mrf.mxu1  ;;  %5676 = vmatpush3.bf16.msra.mxu0 %v5759_v43 }
0x2122   :  { %v4368_v50 = vmax.f32 %v4360_v49, 0.0 }
0x2124   :  { %v4371_v54 = vpack.c.bf16 %v4368_v50, %v4367_v47 }
0x2126   :  { %5662 = vmatmul.mubr.msk.bf16.gmra.mxu0 %vm74_vm1, %v4371_v54 }
0x2127   :  { %5677 = vmatprep.mubr.msk.bf16.mxu0 %vm5914_vm0, %v5913_v0 }
0x21ac   :  { %v4583_v46 = vpop.f32.mrf.mxu1 }
0x21ad   :  { %v4584_v51 = vadd.f32 %v4972_v53, %v4583_v46 }
0x21ae   :  { %v5671_v34 = vpop.f32.mrf.mxu1 }
0x21af   :  { %5908 = vtanh.f32 %v4584_v51 }
0x21b0   :  { %v4586_v42 = vpop.f32.mrf.mxu1 }
0x21b2   :  { %v5672_v18 = vpop.f32.mrf.mxu1 }
0x21bc   :  { %v5909_v37 = vpop.eup %5908 }
0x21bd   :  { %v4590_v25 = vpack.c.bf16 %v5909_v37, %v5909_v37 }
0x21bf   :  { %5678 = vmatmul.mubr.msk.bf16.vlgmr.msra.gmra.mxu0 %vm74_vm1, %v4590_v25 }
0x21e6   :  { %v4446_v0 = vpop.f32.mrf.mxu0 }
0x21e8   :  { %v5663_v1 = vpop.f32.mrf.mxu0 }
0x21ea   :  { %v4448_v45 = vpop.f32.mrf.mxu0 }
0x21ec   :  { %v5664_v2 = vpop.f32.mrf.mxu0 }
0x227f   :  { %v4651_v4 = vpop.f32.mrf.mxu0 }
0x2280   :  { %v4652_v5 = vadd.f32 %v4976_v44, %v4651_v4 }
0x2281   :  { %v5679_v52 = vpop.f32.mrf.mxu0 }
0x2282   :  { %4657 = vst [vmem:[%s7065_s12] sm:$0x3f] %v4652_v5 }
0x2283   :  { %v4654_v57 = vpop.f32.mrf.mxu0 }
0x2285   :  { %v5680_v58 = vpop.f32.mrf.mxu0 }

</bundles_post_ra>
